<compile_context>
chip_gen: v7x
topology: tpu7x:2x2x1
jax: 0.10.0
libtpu: 0.0.40
codegen_flags: <defaults>
</compile_context>

<pallas_src>
import jax
import jax.numpy as jnp
from jax import lax
from jax.experimental import pallas as pl
from jax.experimental.pallas import tpu as pltpu


# --------------------------------------------------------------------------
# Pallas kernel: fused 2-layer bidirectional LSTM (both recurrences + the
# layer-1 input projection) in a single invocation.
# --------------------------------------------------------------------------
def _bilstm2_kernel(gx0_ref, wih1_ref, whh0_ref, whh1_ref, b1_ref,
                    h0_ref, c0_ref, valid_ref,
                    out_ref, hn_ref,
                    gxs_scr, x1s_scr):
    # gx0_ref:   (S, B, 8H) f32   x @ [Wih0_f | Wih0_b] + biases (hoisted)
    # wih1_ref:  (2H, 8H)   bf16  layer-1 input weights  [fwd | bwd]
    # whh0_ref:  (H, 8H)    bf16  layer-0 recurrent weights [fwd | bwd]
    # whh1_ref:  (H, 8H)    bf16  layer-1 recurrent weights [fwd | bwd]
    # b1_ref:    (1, 8H)    f32   layer-1 folded biases [fwd | bwd]
    # h0_ref:    (2, 2B, H) f32   initial h per layer (rows [0:B] fwd, [B:2B] bwd)
    # c0_ref:    (2, 2B, H) f32   initial c per layer
    # valid_ref: (S, 2B, H) f32   0/1 validity per stacked step, full-lane
    # out_ref:   (S, B, 2H) f32   layer-1 output, final layout (fwd | bwd lanes)
    # hn_ref:    (B, 4H)    f32   h_n as [l0_fwd | l0_bwd | l1_fwd | l1_bwd]
    # gxs_scr:   (S, 2B, 4H) f32  stacked layer-0 gate inputs
    # x1s_scr:   (S, 2B, 2H) f32  stacked layer-1 inputs (layer-0 hidden states)
    S = gx0_ref.shape[0]
    B = gx0_ref.shape[1]
    H = whh0_ref.shape[0]
    G = 4 * H
    R = 2 * B                         # stacked rows: [0:B] fwd, [B:2B] bwd

    whh0 = whh0_ref[...]              # (H, 8H) bf16, loaded once
    whh1 = whh1_ref[...]
    wih1 = wih1_ref[...]
    # Direction selector and bias broadcast hoisted (JAX does not CSE these).
    is_fwd = lax.broadcasted_iota(jnp.int32, (R, G), 0) < B
    b1b = jnp.broadcast_to(b1_ref[...], (R, 2 * G))

    # Prologue (off the serial recurrence): restack layer-0 gate inputs from
    # true-time [fwd-cols | bwd-cols] layout into stacked-row layout:
    #   gxs[t] = [ gx0[t, :, :4H] ; gx0[S-1-t, :, 4H:] ]   -> (2B, 4H)
    for t in range(S):
        gxs_scr[t, :B, :] = gx0_ref[t, :, :G]
        gxs_scr[t, B:, :] = gx0_ref[S - 1 - t, :, G:]

    def cell(gates, c_prev):
        # Lane-dense nonlinearities: one sigmoid + one tanh over the full
        # (2B, 4H) gates tile (2 EUP pushes/step instead of 4), then 32-lane
        # slices pick [i, f, g, o] (PyTorch gate order).
        sg = jax.nn.sigmoid(gates)
        th = jnp.tanh(gates)
        i_g = sg[:, 0 * H:1 * H]
        f_g = sg[:, 1 * H:2 * H]
        o_g = sg[:, 3 * H:4 * H]
        g_g = th[:, 2 * H:3 * H]
        c_new = f_g * c_prev + i_g * g_g
        h_new = o_g * jnp.tanh(c_new)
        return h_new, c_new

    # ------------------------- layer 0 recurrence -------------------------
    h = h0_ref[0]
    c = c0_ref[0]
    for t in range(S):                         # fully unrolled (S static)
        ga = jnp.dot(h.astype(jnp.bfloat16), whh0,
                     preferred_element_type=jnp.float32)          # (2B, 8H)
        # fwd rows use W_hh_fwd columns [0:4H], bwd rows [4H:8H] (lane-aligned)
        gates = jnp.where(is_fwd, ga[:, :G], ga[:, G:]) + gxs_scr[t]
        h_new, c_new = cell(gates, c)

        v = valid_ref[t]                       # (2B, H) 0/1, no compare/bcast
        vn = 1.0 - v
        vh = v * h_new                         # masked output (0 at pad steps)
        h = vh + vn * h                        # exact blend == where(v, new, old)
        c = v * c_new + vn * c

        # Scatter layer-0 hidden states straight into the stacked layer-1
        # input layout x1s[u] = [ y0_true[u] ; y0_true[S-1-u] ]:
        #   rows [:B]  of this step are h_fwd at true time t,
        #   rows [B:]  of this step are h_bwd at true time S-1-t.
        x1s_scr[t, :B, :H] = vh[:B, :]
        x1s_scr[S - 1 - t, B:, :H] = vh[:B, :]
        x1s_scr[S - 1 - t, :B, H:] = vh[B:, :]
        x1s_scr[t, B:, H:] = vh[B:, :]
    hn_ref[:, 0 * H:1 * H] = h[:B, :]
    hn_ref[:, 1 * H:2 * H] = h[B:, :]

    # ------------------------- layer 1 recurrence -------------------------
    h = h0_ref[1]
    c = c0_ref[1]
    for t in range(S):
        x1 = x1s_scr[t]                                            # (2B, 2H)
        # Input projection does not depend on the carry -> off the serial
        # path; the scheduler overlaps it with the previous step's EUP work.
        gxa = jnp.dot(x1.astype(jnp.bfloat16), wih1,
                      preferred_element_type=jnp.float32)          # (2B, 8H)
        ga = jnp.dot(h.astype(jnp.bfloat16), whh1,
                     preferred_element_type=jnp.float32)           # (2B, 8H)
        s = gxa + ga + b1b
        gates = jnp.where(is_fwd, s[:, :G], s[:, G:])
        h_new, c_new = cell(gates, c)

        v = valid_ref[t]
        vn = 1.0 - v
        vh = v * h_new
        h = vh + vn * h
        c = v * c_new + vn * c

        # Emit the final (S, B, 2H) layout directly: fwd half at true time t,
        # bwd half at true time S-1-t (static indices, no wrapper un-reverse).
        out_ref[t, :, :H] = vh[:B, :]
        out_ref[S - 1 - t, :, H:] = vh[B:, :]
    hn_ref[:, 2 * H:3 * H] = h[:B, :]
    hn_ref[:, 3 * H:4 * H] = h[B:, :]


# --------------------------------------------------------------------------
# One-time parameter preprocessing (hoisted out of the per-call path).
# --------------------------------------------------------------------------
def preprocess_params(params, batch):
    H = params["init_hidden"].shape[1]
    L = len(params["wih_t"]) // 2
    assert L == 2, "fused kernel is specialized for num_layers == 2"

    cat = lambda a, b: jnp.concatenate([a, b], axis=1)
    wih0 = cat(params["wih_t"][0], params["wih_t"][1]).astype(jnp.bfloat16)  # (300, 8H)
    wih1 = cat(params["wih_t"][2], params["wih_t"][3]).astype(jnp.bfloat16)  # (2H, 8H)
    whh0 = cat(params["whh_t"][0], params["whh_t"][1]).astype(jnp.bfloat16)  # (H, 8H)
    whh1 = cat(params["whh_t"][2], params["whh_t"][3]).astype(jnp.bfloat16)  # (H, 8H)
    b0 = cat(params["b"][0], params["b"][1])[None].astype(jnp.float32)       # (1,1,8H)
    b1 = cat(params["b"][2], params["b"][3]).astype(jnp.float32)             # (1, 8H)

    ih = params["init_hidden"]            # nn.Embedding(2*2*L, H)

    def stack(rows):                      # -> (L, 2*batch, H), [fwd; bwd] rows
        per_layer = []
        for l in range(L):
            f = jnp.broadcast_to(rows[2 * l][None, :], (batch, H))
            b = jnp.broadcast_to(rows[2 * l + 1][None, :], (batch, H))
            per_layer.append(jnp.concatenate([f, b], axis=0))
        return jnp.stack(per_layer, axis=0).astype(jnp.float32)

    h0 = stack([ih[i] for i in range(2 * L)])
    c0 = stack([ih[2 * L + i] for i in range(2 * L)])
    return dict(wih0=wih0, wih1=wih1, whh0=whh0, whh1=whh1,
                b0=b0, b1=b1, h0=h0, c0=c0)


# --------------------------------------------------------------------------
# Module forward (Pallas path): one pallas_call for the whole bi-LSTM stack.
# --------------------------------------------------------------------------
def lstm_forward_pallas(prep, inputs, mask):
    B, S, E = inputs.shape
    H = prep["whh0"].shape[0]

    lengths = jnp.sum(mask, axis=1).astype(jnp.int32)
    # NOTE: pack/pad_packed would truncate the time axis to max(lengths); we
    # assume max(lengths) == S (static shapes), satisfied by the example.

    x = jnp.transpose(inputs, (1, 0, 2))                 # time-major (S, B, 300)
    # Hoisted layer-0 input projection (~90% of layer-0 FLOPs), bf16 operands
    # with f32 accumulation (native MXU rate); biases (b_ih + b_hh) folded in.
    gx0 = jnp.dot(x.reshape(S * B, E).astype(jnp.bfloat16), prep["wih0"],
                  preferred_element_type=jnp.float32)
    gx0 = gx0.reshape(S, B, 8 * H) + prep["b0"]          # (S, B, 8H)

    # Packed-sequence validity in stacked-step layout, pre-broadcast to full
    # H lanes so the kernel needs no per-step compare/broadcast:
    #   fwd rows valid at stacked step t  <=>  t < len
    #   bwd rows valid at stacked step t  <=>  (S-1-t) < len  <=>  t >= S-len
    ts = jnp.arange(S)[:, None, None]
    lens = lengths[None, :, None]
    valid = jnp.concatenate([ts < lens, ts >= (S - lens)], axis=1)   # (S,2B,1)
    valid = jnp.broadcast_to(valid, (S, 2 * B, H)).astype(jnp.float32)

    vmem = pl.BlockSpec(memory_space=pltpu.MemorySpace.VMEM)
    out, hn = pl.pallas_call(
        _bilstm2_kernel,
        out_shape=(jax.ShapeDtypeStruct((S, B, 2 * H), jnp.float32),
                   jax.ShapeDtypeStruct((B, 4 * H), jnp.float32)),
        in_specs=[vmem] * 8,
        out_specs=(vmem, vmem),
        scratch_shapes=[pltpu.VMEM((S, 2 * B, 4 * H), jnp.float32),   # gxs
                        pltpu.VMEM((S, 2 * B, 2 * H), jnp.float32)],  # x1 stacked
    )(gx0, prep["wih1"], prep["whh0"], prep["whh1"], prep["b1"],
      prep["h0"], prep["c0"], valid)

    lstm_out = jnp.transpose(out, (1, 0, 2))             # (B, S, 2H)
    inputs_z = inputs * mask[..., None]                  # unpack() zero-pads padding
    outputs = jnp.concatenate([inputs_z, lstm_out], axis=-1)   # residual_embeddings
    # TODO(synk): nn.Dropout / inter-layer LSTM dropout are identity in eval mode.
    return outputs, hn, mask


# --------------------------------------------------------------------------
# Pure-JAX reference (per-direction lax.scan), works from the raw params.
# --------------------------------------------------------------------------
def bilstm_layer_ref(x_sbd, wih_f, whh_f, b_f, wih_b, whh_b, b_b,
                     h0f, c0f, h0b, c0b, len2d):
    S = x_sbd.shape[0]
    H = h0f.shape[1]

    def run_dir(wih, whh, b, h0, c0, reverse):
        def step(carry, t):
            h, c = carry
            gates = x_sbd[t] @ wih + h @ whh + b
            i = jax.nn.sigmoid(gates[:, :H])
            f = jax.nn.sigmoid(gates[:, H:2 * H])
            g = jnp.tanh(gates[:, 2 * H:3 * H])
            o = jax.nn.sigmoid(gates[:, 3 * H:])
            c_new = f * c + i * g
            h_new = o * jnp.tanh(c_new)
            valid = t < len2d
            h = jnp.where(valid, h_new, h)
            c = jnp.where(valid, c_new, c)
            return (h, c), jnp.where(valid, h_new, 0.0)

        ts = jnp.arange(S - 1, -1, -1) if reverse else jnp.arange(S)
        (h, _), outs = lax.scan(step, (h0, c0), ts)
        if reverse:
            outs = outs[::-1]
        return outs, h

    out_f, hn_f = run_dir(wih_f, whh_f, b_f, h0f, c0f, False)
    out_b, hn_b = run_dir(wih_b, whh_b, b_b, h0b, c0b, True)
    return jnp.concatenate([out_f, out_b], axis=-1), hn_f, hn_b


def lstm_forward_ref(params, inputs, mask):
    B, S, _ = inputs.shape
    H = params["init_hidden"].shape[1]
    L = len(params["wih_t"]) // 2

    lengths = jnp.sum(mask, axis=1).astype(jnp.int32)
    len2d = lengths[:, None]

    x = jnp.transpose(inputs, (1, 0, 2))
    h_n = []
    for l in range(L):
        i_f, i_b = 2 * l, 2 * l + 1
        h0f = jnp.broadcast_to(params["init_hidden"][i_f][None, :], (B, H))
        h0b = jnp.broadcast_to(params["init_hidden"][i_b][None, :], (B, H))
        c0f = jnp.broadcast_to(params["init_hidden"][2 * L + i_f][None, :], (B, H))
        c0b = jnp.broadcast_to(params["init_hidden"][2 * L + i_b][None, :], (B, H))
        x, hn_f, hn_b = bilstm_layer_ref(
            x,
            params["wih_t"][i_f], params["whh_t"][i_f], params["b"][i_f],
            params["wih_t"][i_b], params["whh_t"][i_b], params["b"][i_b],
            h0f, c0f, h0b, c0b, len2d)
        h_n.extend([hn_f, hn_b])

    lstm_out = jnp.transpose(x, (1, 0, 2))
    hidden_t = jnp.concatenate(h_n, axis=-1)            # (B, 2*L*H): l0f,l0b,l1f,l1b
    inputs_z = inputs * mask[..., None]
    outputs = jnp.concatenate([inputs_z, lstm_out], axis=-1)
    return outputs, hidden_t, mask


# --------------------------------------------------------------------------
# Deterministic parameter init (shapes from the PyTorch module __init__).
# --------------------------------------------------------------------------
def init_params(key, dim=364, num_layers=2):
    H = (dim - 300) // 2  # rnn_dim (residual_embeddings=True)
    L = num_layers
    k = 1.0 / float(jnp.sqrt(jnp.float32(H)))
    keys = jax.random.split(key, 4 * 2 * L + 1)
    wih_t, whh_t, b = [], [], []
    ki = 0
    for l in range(L):
        din = 300 if l == 0 else 2 * H
        for _ in range(2):  # two directions
            wih = jax.random.uniform(keys[ki], (4 * H, din), minval=-k, maxval=k); ki += 1
            whh = jax.random.uniform(keys[ki], (4 * H, H), minval=-k, maxval=k); ki += 1
            bih = jax.random.uniform(keys[ki], (4 * H,), minval=-k, maxval=k); ki += 1
            bhh = jax.random.uniform(keys[ki], (4 * H,), minval=-k, maxval=k); ki += 1
            wih_t.append(jnp.asarray(wih.T, jnp.float32))            # (din, 4H)
            whh_t.append(jnp.asarray(whh.T, jnp.float32))            # (H, 4H)
            b.append(((bih + bhh)[None, :]).astype(jnp.float32))     # (1, 4H)
    # nn.Embedding(2*2*L, H): rows 0..2L-1 -> h0, rows 2L..4L-1 -> c0
    init_hidden = jax.random.normal(keys[ki], (2 * 2 * L, H), jnp.float32)
    return dict(wih_t=wih_t, whh_t=whh_t, b=b, init_hidden=init_hidden)


if __name__ == "__main__":
    key = jax.random.PRNGKey(0)
    k_param, k_in = jax.random.split(key)

    B, S, E = 4, 8, 300
    dim, num_layers = 364, 2      # -> rnn_dim = 32, bidirectional output = 64
    params = init_params(k_param, dim=dim, num_layers=num_layers)

    inputs = jax.random.normal(k_in, (B, S, E), jnp.float32)
    lengths = jnp.array([8, 5, 3, 8], jnp.int32)  # max == S, so no truncation
    mask = (jnp.arange(S)[None, :] < lengths[:, None]).astype(jnp.float32)

    # One-time parameter preprocessing (off the per-call path).
    prep = preprocess_params(params, batch=B)

    fwd_pallas = jax.jit(lstm_forward_pallas)
    fwd_ref = jax.jit(lstm_forward_ref)

    out_p, hid_p, mask_p = jax.block_until_ready(fwd_pallas(prep, inputs, mask))
    out_r, hid_r, mask_r = jax.block_until_ready(fwd_ref(params, inputs, mask))

    assert out_p.shape == (B, S, dim)
    assert hid_p.shape == (B, 2 * num_layers * ((dim - 300) // 2))
    assert mask_p.shape == (B, S)
    # Both matmul stages (hoisted input projection and in-kernel recurrence /
    # layer-1 projection) use bf16 operands with f32 accumulation (native MXU
    # rate); tolerance vs the all-f32 reference accounts for that on O(1)
    # outputs accumulated over S=8 serial steps and 2 layers.
    assert jnp.allclose(out_p, out_r, atol=5e-2, rtol=5e-2), \
        float(jnp.max(jnp.abs(out_p - out_r)))
    assert jnp.allclose(hid_p, hid_r, atol=5e-2, rtol=5e-2), \
        float(jnp.max(jnp.abs(hid_p - hid_r)))
    assert jnp.array_equal(mask_p, mask_r)

    print("KERNEL_OK")
</pallas_src>

<mosaic_0001>
module attributes {stable_mosaic.version = 11 : i64} {
  func.func @_bilstm2_kernel(%arg0: memref<8x4x256xf32, #tpu.memory_space<vmem>>, %arg1: memref<64x256xbf16, #tpu.memory_space<vmem>>, %arg2: memref<32x256xbf16, #tpu.memory_space<vmem>>, %arg3: memref<32x256xbf16, #tpu.memory_space<vmem>>, %arg4: memref<1x256xf32, #tpu.memory_space<vmem>>, %arg5: memref<2x8x32xf32, #tpu.memory_space<vmem>>, %arg6: memref<2x8x32xf32, #tpu.memory_space<vmem>>, %arg7: memref<8x8x32xf32, #tpu.memory_space<vmem>>, %arg8: memref<8x4x64xf32, #tpu.memory_space<vmem>>, %arg9: memref<4x128xf32, #tpu.memory_space<vmem>>, %arg10: memref<8x8x128xf32, #tpu.memory_space<vmem>>, %arg11: memref<8x8x64xf32, #tpu.memory_space<vmem>>) attributes {dimension_semantics = [], scalar_prefetch = 0 : i64, scratch_operands = 2 : i64, tpu.core_type = #tpu.core_type<tc>} {
    %c0 = arith.constant 0 : index
    %c0_0 = arith.constant 0 : index
    %0 = vector.load %arg2[%c0, %c0_0] : memref<32x256xbf16, #tpu.memory_space<vmem>>, vector<32x256xbf16>
    %c0_1 = arith.constant 0 : index
    %c0_2 = arith.constant 0 : index
    %1 = vector.load %arg3[%c0_1, %c0_2] : memref<32x256xbf16, #tpu.memory_space<vmem>>, vector<32x256xbf16>
    %c0_3 = arith.constant 0 : index
    %c0_4 = arith.constant 0 : index
    %2 = vector.load %arg1[%c0_3, %c0_4] : memref<64x256xbf16, #tpu.memory_space<vmem>>, vector<64x256xbf16>
    %3 = tpu.iota {dimensions = array<i32: 0>} : vector<8x128xi32>
    %c4_i32 = arith.constant 4 : i32
    %4 = vector.broadcast %c4_i32 : i32 to vector<8x128xi32>
    %5 = arith.cmpi slt, %3, %4 : vector<8x128xi32>
    %c0_5 = arith.constant 0 : index
    %c0_6 = arith.constant 0 : index
    %6 = vector.load %arg4[%c0_5, %c0_6] : memref<1x256xf32, #tpu.memory_space<vmem>>, vector<1x256xf32>
    %7 = vector.shape_cast %6 : vector<1x256xf32> to vector<1x256xf32>
    %8 = vector.broadcast %7 : vector<1x256xf32> to vector<8x256xf32>
    %c0_7 = arith.constant 0 : index
    %c0_8 = arith.constant 0 : index
    %c0_9 = arith.constant 0 : index
    %9 = vector.load %arg0[%c0_7, %c0_8, %c0_9] : memref<8x4x256xf32, #tpu.memory_space<vmem>>, vector<1x4x128xf32>
    %10 = vector.shape_cast %9 : vector<1x4x128xf32> to vector<4x128xf32>
    %c0_10 = arith.constant 0 : index
    %c0_11 = arith.constant 0 : index
    %c0_12 = arith.constant 0 : index
    %11 = vector.load %arg10[%c0_10, %c0_11, %c0_12] : memref<8x8x128xf32, #tpu.memory_space<vmem>>, vector<1x4x128xf32>
    %12 = vector.shape_cast %11 : vector<1x4x128xf32> to vector<4x128xf32>
    %13 = vector.shape_cast %10 : vector<4x128xf32> to vector<1x4x128xf32>
    tpu.vector_store %arg10[%c0_10, %c0_11, %c0_12], %13 {strides = array<i32>} : memref<8x8x128xf32, #tpu.memory_space<vmem>>, vector<1x4x128xf32>,
    %c7 = arith.constant 7 : index
    %c0_13 = arith.constant 0 : index
    %c128 = arith.constant 128 : index
    %14 = vector.load %arg0[%c7, %c0_13, %c128] : memref<8x4x256xf32, #tpu.memory_space<vmem>>, vector<1x4x128xf32>
    %15 = vector.shape_cast %14 : vector<1x4x128xf32> to vector<4x128xf32>
    %c0_14 = arith.constant 0 : index
    %c4 = arith.constant 4 : index
    %c0_15 = arith.constant 0 : index
    %16 = vector.load %arg10[%c0_14, %c4, %c0_15] : memref<8x8x128xf32, #tpu.memory_space<vmem>>, vector<1x4x128xf32>
    %17 = vector.shape_cast %16 : vector<1x4x128xf32> to vector<4x128xf32>
    %18 = vector.shape_cast %15 : vector<4x128xf32> to vector<1x4x128xf32>
    tpu.vector_store %arg10[%c0_14, %c4, %c0_15], %18 {strides = array<i32>} : memref<8x8x128xf32, #tpu.memory_space<vmem>>, vector<1x4x128xf32>,
    %c1 = arith.constant 1 : index
    %c0_16 = arith.constant 0 : index
    %c0_17 = arith.constant 0 : index
    %19 = vector.load %arg0[%c1, %c0_16, %c0_17] : memref<8x4x256xf32, #tpu.memory_space<vmem>>, vector<1x4x128xf32>
    %20 = vector.shape_cast %19 : vector<1x4x128xf32> to vector<4x128xf32>
    %c1_18 = arith.constant 1 : index
    %c0_19 = arith.constant 0 : index
    %c0_20 = arith.constant 0 : index
    %21 = vector.load %arg10[%c1_18, %c0_19, %c0_20] : memref<8x8x128xf32, #tpu.memory_space<vmem>>, vector<1x4x128xf32>
    %22 = vector.shape_cast %21 : vector<1x4x128xf32> to vector<4x128xf32>
    %23 = vector.shape_cast %20 : vector<4x128xf32> to vector<1x4x128xf32>
    tpu.vector_store %arg10[%c1_18, %c0_19, %c0_20], %23 {strides = array<i32>} : memref<8x8x128xf32, #tpu.memory_space<vmem>>, vector<1x4x128xf32>,
    %c6 = arith.constant 6 : index
    %c0_21 = arith.constant 0 : index
    %c128_22 = arith.constant 128 : index
    %24 = vector.load %arg0[%c6, %c0_21, %c128_22] : memref<8x4x256xf32, #tpu.memory_space<vmem>>, vector<1x4x128xf32>
    %25 = vector.shape_cast %24 : vector<1x4x128xf32> to vector<4x128xf32>
    %c1_23 = arith.constant 1 : index
    %c4_24 = arith.constant 4 : index
    %c0_25 = arith.constant 0 : index
    %26 = vector.load %arg10[%c1_23, %c4_24, %c0_25] : memref<8x8x128xf32, #tpu.memory_space<vmem>>, vector<1x4x128xf32>
    %27 = vector.shape_cast %26 : vector<1x4x128xf32> to vector<4x128xf32>
    %28 = vector.shape_cast %25 : vector<4x128xf32> to vector<1x4x128xf32>
    tpu.vector_store %arg10[%c1_23, %c4_24, %c0_25], %28 {strides = array<i32>} : memref<8x8x128xf32, #tpu.memory_space<vmem>>, vector<1x4x128xf32>,
    %c2 = arith.constant 2 : index
    %c0_26 = arith.constant 0 : index
    %c0_27 = arith.constant 0 : index
    %29 = vector.load %arg0[%c2, %c0_26, %c0_27] : memref<8x4x256xf32, #tpu.memory_space<vmem>>, vector<1x4x128xf32>
    %30 = vector.shape_cast %29 : vector<1x4x128xf32> to vector<4x128xf32>
    %c2_28 = arith.constant 2 : index
    %c0_29 = arith.constant 0 : index
    %c0_30 = arith.constant 0 : index
    %31 = vector.load %arg10[%c2_28, %c0_29, %c0_30] : memref<8x8x128xf32, #tpu.memory_space<vmem>>, vector<1x4x128xf32>
    %32 = vector.shape_cast %31 : vector<1x4x128xf32> to vector<4x128xf32>
    %33 = vector.shape_cast %30 : vector<4x128xf32> to vector<1x4x128xf32>
    tpu.vector_store %arg10[%c2_28, %c0_29, %c0_30], %33 {strides = array<i32>} : memref<8x8x128xf32, #tpu.memory_space<vmem>>, vector<1x4x128xf32>,
    %c5 = arith.constant 5 : index
    %c0_31 = arith.constant 0 : index
    %c128_32 = arith.constant 128 : index
    %34 = vector.load %arg0[%c5, %c0_31, %c128_32] : memref<8x4x256xf32, #tpu.memory_space<vmem>>, vector<1x4x128xf32>
    %35 = vector.shape_cast %34 : vector<1x4x128xf32> to vector<4x128xf32>
    %c2_33 = arith.constant 2 : index
    %c4_34 = arith.constant 4 : index
    %c0_35 = arith.constant 0 : index
    %36 = vector.load %arg10[%c2_33, %c4_34, %c0_35] : memref<8x8x128xf32, #tpu.memory_space<vmem>>, vector<1x4x128xf32>
    %37 = vector.shape_cast %36 : vector<1x4x128xf32> to vector<4x128xf32>
    %38 = vector.shape_cast %35 : vector<4x128xf32> to vector<1x4x128xf32>
    tpu.vector_store %arg10[%c2_33, %c4_34, %c0_35], %38 {strides = array<i32>} : memref<8x8x128xf32, #tpu.memory_space<vmem>>, vector<1x4x128xf32>,
    %c3 = arith.constant 3 : index
    %c0_36 = arith.constant 0 : index
    %c0_37 = arith.constant 0 : index
    %39 = vector.load %arg0[%c3, %c0_36, %c0_37] : memref<8x4x256xf32, #tpu.memory_space<vmem>>, vector<1x4x128xf32>
    %40 = vector.shape_cast %39 : vector<1x4x128xf32> to vector<4x128xf32>
    %c3_38 = arith.constant 3 : index
    %c0_39 = arith.constant 0 : index
    %c0_40 = arith.constant 0 : index
    %41 = vector.load %arg10[%c3_38, %c0_39, %c0_40] : memref<8x8x128xf32, #tpu.memory_space<vmem>>, vector<1x4x128xf32>
    %42 = vector.shape_cast %41 : vector<1x4x128xf32> to vector<4x128xf32>
    %43 = vector.shape_cast %40 : vector<4x128xf32> to vector<1x4x128xf32>
    tpu.vector_store %arg10[%c3_38, %c0_39, %c0_40], %43 {strides = array<i32>} : memref<8x8x128xf32, #tpu.memory_space<vmem>>, vector<1x4x128xf32>,
    %c4_41 = arith.constant 4 : index
    %c0_42 = arith.constant 0 : index
    %c128_43 = arith.constant 128 : index
    %44 = vector.load %arg0[%c4_41, %c0_42, %c128_43] : memref<8x4x256xf32, #tpu.memory_space<vmem>>, vector<1x4x128xf32>
    %45 = vector.shape_cast %44 : vector<1x4x128xf32> to vector<4x128xf32>
    %c3_44 = arith.constant 3 : index
    %c4_45 = arith.constant 4 : index
    %c0_46 = arith.constant 0 : index
    %46 = vector.load %arg10[%c3_44, %c4_45, %c0_46] : memref<8x8x128xf32, #tpu.memory_space<vmem>>, vector<1x4x128xf32>
    %47 = vector.shape_cast %46 : vector<1x4x128xf32> to vector<4x128xf32>
    %48 = vector.shape_cast %45 : vector<4x128xf32> to vector<1x4x128xf32>
    tpu.vector_store %arg10[%c3_44, %c4_45, %c0_46], %48 {strides = array<i32>} : memref<8x8x128xf32, #tpu.memory_space<vmem>>, vector<1x4x128xf32>,
    %c4_47 = arith.constant 4 : index
    %c0_48 = arith.constant 0 : index
    %c0_49 = arith.constant 0 : index
    %49 = vector.load %arg0[%c4_47, %c0_48, %c0_49] : memref<8x4x256xf32, #tpu.memory_space<vmem>>, vector<1x4x128xf32>
    %50 = vector.shape_cast %49 : vector<1x4x128xf32> to vector<4x128xf32>
    %c4_50 = arith.constant 4 : index
    %c0_51 = arith.constant 0 : index
    %c0_52 = arith.constant 0 : index
    %51 = vector.load %arg10[%c4_50, %c0_51, %c0_52] : memref<8x8x128xf32, #tpu.memory_space<vmem>>, vector<1x4x128xf32>
    %52 = vector.shape_cast %51 : vector<1x4x128xf32> to vector<4x128xf32>
    %53 = vector.shape_cast %50 : vector<4x128xf32> to vector<1x4x128xf32>
    tpu.vector_store %arg10[%c4_50, %c0_51, %c0_52], %53 {strides = array<i32>} : memref<8x8x128xf32, #tpu.memory_space<vmem>>, vector<1x4x128xf32>,
    %c3_53 = arith.constant 3 : index
    %c0_54 = arith.constant 0 : index
    %c128_55 = arith.constant 128 : index
    %54 = vector.load %arg0[%c3_53, %c0_54, %c128_55] : memref<8x4x256xf32, #tpu.memory_space<vmem>>, vector<1x4x128xf32>
    %55 = vector.shape_cast %54 : vector<1x4x128xf32> to vector<4x128xf32>
    %c4_56 = arith.constant 4 : index
    %c4_57 = arith.constant 4 : index
    %c0_58 = arith.constant 0 : index
    %56 = vector.load %arg10[%c4_56, %c4_57, %c0_58] : memref<8x8x128xf32, #tpu.memory_space<vmem>>, vector<1x4x128xf32>
    %57 = vector.shape_cast %56 : vector<1x4x128xf32> to vector<4x128xf32>
    %58 = vector.shape_cast %55 : vector<4x128xf32> to vector<1x4x128xf32>
    tpu.vector_store %arg10[%c4_56, %c4_57, %c0_58], %58 {strides = array<i32>} : memref<8x8x128xf32, #tpu.memory_space<vmem>>, vector<1x4x128xf32>,
    %c5_59 = arith.constant 5 : index
    %c0_60 = arith.constant 0 : index
    %c0_61 = arith.constant 0 : index
    %59 = vector.load %arg0[%c5_59, %c0_60, %c0_61] : memref<8x4x256xf32, #tpu.memory_space<vmem>>, vector<1x4x128xf32>
    %60 = vector.shape_cast %59 : vector<1x4x128xf32> to vector<4x128xf32>
    %c5_62 = arith.constant 5 : index
    %c0_63 = arith.constant 0 : index
    %c0_64 = arith.constant 0 : index
    %61 = vector.load %arg10[%c5_62, %c0_63, %c0_64] : memref<8x8x128xf32, #tpu.memory_space<vmem>>, vector<1x4x128xf32>
    %62 = vector.shape_cast %61 : vector<1x4x128xf32> to vector<4x128xf32>
    %63 = vector.shape_cast %60 : vector<4x128xf32> to vector<1x4x128xf32>
    tpu.vector_store %arg10[%c5_62, %c0_63, %c0_64], %63 {strides = array<i32>} : memref<8x8x128xf32, #tpu.memory_space<vmem>>, vector<1x4x128xf32>,
    %c2_65 = arith.constant 2 : index
    %c0_66 = arith.constant 0 : index
    %c128_67 = arith.constant 128 : index
    %64 = vector.load %arg0[%c2_65, %c0_66, %c128_67] : memref<8x4x256xf32, #tpu.memory_space<vmem>>, vector<1x4x128xf32>
    %65 = vector.shape_cast %64 : vector<1x4x128xf32> to vector<4x128xf32>
    %c5_68 = arith.constant 5 : index
    %c4_69 = arith.constant 4 : index
    %c0_70 = arith.constant 0 : index
    %66 = vector.load %arg10[%c5_68, %c4_69, %c0_70] : memref<8x8x128xf32, #tpu.memory_space<vmem>>, vector<1x4x128xf32>
    %67 = vector.shape_cast %66 : vector<1x4x128xf32> to vector<4x128xf32>
    %68 = vector.shape_cast %65 : vector<4x128xf32> to vector<1x4x128xf32>
    tpu.vector_store %arg10[%c5_68, %c4_69, %c0_70], %68 {strides = array<i32>} : memref<8x8x128xf32, #tpu.memory_space<vmem>>, vector<1x4x128xf32>,
    %c6_71 = arith.constant 6 : index
    %c0_72 = arith.constant 0 : index
    %c0_73 = arith.constant 0 : index
    %69 = vector.load %arg0[%c6_71, %c0_72, %c0_73] : memref<8x4x256xf32, #tpu.memory_space<vmem>>, vector<1x4x128xf32>
    %70 = vector.shape_cast %69 : vector<1x4x128xf32> to vector<4x128xf32>
    %c6_74 = arith.constant 6 : index
    %c0_75 = arith.constant 0 : index
    %c0_76 = arith.constant 0 : index
    %71 = vector.load %arg10[%c6_74, %c0_75, %c0_76] : memref<8x8x128xf32, #tpu.memory_space<vmem>>, vector<1x4x128xf32>
    %72 = vector.shape_cast %71 : vector<1x4x128xf32> to vector<4x128xf32>
    %73 = vector.shape_cast %70 : vector<4x128xf32> to vector<1x4x128xf32>
    tpu.vector_store %arg10[%c6_74, %c0_75, %c0_76], %73 {strides = array<i32>} : memref<8x8x128xf32, #tpu.memory_space<vmem>>, vector<1x4x128xf32>,
    %c1_77 = arith.constant 1 : index
    %c0_78 = arith.constant 0 : index
    %c128_79 = arith.constant 128 : index
    %74 = vector.load %arg0[%c1_77, %c0_78, %c128_79] : memref<8x4x256xf32, #tpu.memory_space<vmem>>, vector<1x4x128xf32>
    %75 = vector.shape_cast %74 : vector<1x4x128xf32> to vector<4x128xf32>
    %c6_80 = arith.constant 6 : index
    %c4_81 = arith.constant 4 : index
    %c0_82 = arith.constant 0 : index
    %76 = vector.load %arg10[%c6_80, %c4_81, %c0_82] : memref<8x8x128xf32, #tpu.memory_space<vmem>>, vector<1x4x128xf32>
    %77 = vector.shape_cast %76 : vector<1x4x128xf32> to vector<4x128xf32>
    %78 = vector.shape_cast %75 : vector<4x128xf32> to vector<1x4x128xf32>
    tpu.vector_store %arg10[%c6_80, %c4_81, %c0_82], %78 {strides = array<i32>} : memref<8x8x128xf32, #tpu.memory_space<vmem>>, vector<1x4x128xf32>,
    %c7_83 = arith.constant 7 : index
    %c0_84 = arith.constant 0 : index
    %c0_85 = arith.constant 0 : index
    %79 = vector.load %arg0[%c7_83, %c0_84, %c0_85] : memref<8x4x256xf32, #tpu.memory_space<vmem>>, vector<1x4x128xf32>
    %80 = vector.shape_cast %79 : vector<1x4x128xf32> to vector<4x128xf32>
    %c7_86 = arith.constant 7 : index
    %c0_87 = arith.constant 0 : index
    %c0_88 = arith.constant 0 : index
    %81 = vector.load %arg10[%c7_86, %c0_87, %c0_88] : memref<8x8x128xf32, #tpu.memory_space<vmem>>, vector<1x4x128xf32>
    %82 = vector.shape_cast %81 : vector<1x4x128xf32> to vector<4x128xf32>
    %83 = vector.shape_cast %80 : vector<4x128xf32> to vector<1x4x128xf32>
    tpu.vector_store %arg10[%c7_86, %c0_87, %c0_88], %83 {strides = array<i32>} : memref<8x8x128xf32, #tpu.memory_space<vmem>>, vector<1x4x128xf32>,
    %c0_89 = arith.constant 0 : index
    %c0_90 = arith.constant 0 : index
    %c128_91 = arith.constant 128 : index
    %84 = vector.load %arg0[%c0_89, %c0_90, %c128_91] : memref<8x4x256xf32, #tpu.memory_space<vmem>>, vector<1x4x128xf32>
    %85 = vector.shape_cast %84 : vector<1x4x128xf32> to vector<4x128xf32>
    %c7_92 = arith.constant 7 : index
    %c4_93 = arith.constant 4 : index
    %c0_94 = arith.constant 0 : index
    %86 = vector.load %arg10[%c7_92, %c4_93, %c0_94] : memref<8x8x128xf32, #tpu.memory_space<vmem>>, vector<1x4x128xf32>
    %87 = vector.shape_cast %86 : vector<1x4x128xf32> to vector<4x128xf32>
    %88 = vector.shape_cast %85 : vector<4x128xf32> to vector<1x4x128xf32>
    tpu.vector_store %arg10[%c7_92, %c4_93, %c0_94], %88 {strides = array<i32>} : memref<8x8x128xf32, #tpu.memory_space<vmem>>, vector<1x4x128xf32>,
    %c0_95 = arith.constant 0 : index
    %c0_96 = arith.constant 0 : index
    %c0_97 = arith.constant 0 : index
    %89 = vector.load %arg5[%c0_95, %c0_96, %c0_97] : memref<2x8x32xf32, #tpu.memory_space<vmem>>, vector<1x8x32xf32>
    %90 = vector.shape_cast %89 : vector<1x8x32xf32> to vector<8x32xf32>
    %c0_98 = arith.constant 0 : index
    %c0_99 = arith.constant 0 : index
    %c0_100 = arith.constant 0 : index
    %91 = vector.load %arg6[%c0_98, %c0_99, %c0_100] : memref<2x8x32xf32, #tpu.memory_space<vmem>>, vector<1x8x32xf32>
    %92 = vector.shape_cast %91 : vector<1x8x32xf32> to vector<8x32xf32>
    %93 = arith.truncf %90 : vector<8x32xf32> to vector<8x32xbf16>
    %cst = arith.constant dense<0.000000e+00> : vector<8x256xf32>
    %94 = tpu.matmul %93, %0, %cst {dimension_numbers = #tpu.dot_dimension_numbers<[1], [0], [0], [1], [0, 0, 1, 1], [], []>} : vector<8x32xbf16>, vector<32x256xbf16>, vector<8x256xf32> -> vector<8x256xf32>
    %95 = vector.extract_strided_slice %94 {offsets = [0, 0], sizes = [8, 128], strides = [1, 1]} : vector<8x256xf32> to vector<8x128xf32>
    %96 = vector.extract_strided_slice %94 {offsets = [0, 128], sizes = [8, 128], strides = [1, 1]} : vector<8x256xf32> to vector<8x128xf32>
    %97 = arith.select %5, %95, %96 : vector<8x128xi1>, vector<8x128xf32>
    %c0_101 = arith.constant 0 : index
    %c0_102 = arith.constant 0 : index
    %c0_103 = arith.constant 0 : index
    %98 = vector.load %arg10[%c0_101, %c0_102, %c0_103] : memref<8x8x128xf32, #tpu.memory_space<vmem>>, vector<1x8x128xf32>
    %99 = vector.shape_cast %98 : vector<1x8x128xf32> to vector<8x128xf32>
    %100 = arith.addf %97, %99 : vector<8x128xf32>
    %101 = arith.negf %100 : vector<8x128xf32>
    %102 = math.exp %101 : vector<8x128xf32>
    %cst_104 = arith.constant 1.000000e+00 : f32
    %103 = vector.broadcast %cst_104 : f32 to vector<8x128xf32>
    %104 = arith.addf %103, %102 : vector<8x128xf32>
    %105 = arith.divf %103, %104 : vector<8x128xf32>
    %106 = math.tanh %100 : vector<8x128xf32>
    %107 = vector.extract_strided_slice %105 {offsets = [0, 0], sizes = [8, 32], strides = [1, 1]} : vector<8x128xf32> to vector<8x32xf32>
    %108 = vector.extract_strided_slice %105 {offsets = [0, 32], sizes = [8, 32], strides = [1, 1]} : vector<8x128xf32> to vector<8x32xf32>
    %109 = vector.extract_strided_slice %105 {offsets = [0, 96], sizes = [8, 32], strides = [1, 1]} : vector<8x128xf32> to vector<8x32xf32>
    %110 = vector.extract_strided_slice %106 {offsets = [0, 64], sizes = [8, 32], strides = [1, 1]} : vector<8x128xf32> to vector<8x32xf32>
    %111 = arith.mulf %108, %92 : vector<8x32xf32>
    %112 = arith.mulf %107, %110 : vector<8x32xf32>
    %113 = arith.addf %111, %112 : vector<8x32xf32>
    %114 = math.tanh %113 : vector<8x32xf32>
    %115 = arith.mulf %109, %114 : vector<8x32xf32>
    %c0_105 = arith.constant 0 : index
    %c0_106 = arith.constant 0 : index
    %c0_107 = arith.constant 0 : index
    %116 = vector.load %arg7[%c0_105, %c0_106, %c0_107] : memref<8x8x32xf32, #tpu.memory_space<vmem>>, vector<1x8x32xf32>
    %117 = vector.shape_cast %116 : vector<1x8x32xf32> to vector<8x32xf32>
    %cst_108 = arith.constant 1.000000e+00 : f32
    %118 = vector.broadcast %cst_108 : f32 to vector<8x32xf32>
    %119 = arith.subf %118, %117 : vector<8x32xf32>
    %120 = arith.mulf %117, %115 : vector<8x32xf32>
    %121 = arith.mulf %119, %90 : vector<8x32xf32>
    %122 = arith.addf %120, %121 : vector<8x32xf32>
    %123 = arith.mulf %117, %113 : vector<8x32xf32>
    %124 = arith.mulf %119, %92 : vector<8x32xf32>
    %125 = arith.addf %123, %124 : vector<8x32xf32>
    %126 = vector.extract_strided_slice %120 {offsets = [0, 0], sizes = [4, 32], strides = [1, 1]} : vector<8x32xf32> to vector<4x32xf32>
    %c0_109 = arith.constant 0 : index
    %c0_110 = arith.constant 0 : index
    %c0_111 = arith.constant 0 : index
    %127 = vector.load %arg11[%c0_109, %c0_110, %c0_111] : memref<8x8x64xf32, #tpu.memory_space<vmem>>, vector<1x4x32xf32>
    %128 = vector.shape_cast %127 : vector<1x4x32xf32> to vector<4x32xf32>
    %129 = vector.shape_cast %126 : vector<4x32xf32> to vector<1x4x32xf32>
    tpu.vector_store %arg11[%c0_109, %c0_110, %c0_111], %129 {strides = array<i32>} : memref<8x8x64xf32, #tpu.memory_space<vmem>>, vector<1x4x32xf32>,
    %130 = vector.extract_strided_slice %120 {offsets = [0, 0], sizes = [4, 32], strides = [1, 1]} : vector<8x32xf32> to vector<4x32xf32>
    %c7_112 = arith.constant 7 : index
    %c4_113 = arith.constant 4 : index
    %c0_114 = arith.constant 0 : index
    %131 = vector.load %arg11[%c7_112, %c4_113, %c0_114] : memref<8x8x64xf32, #tpu.memory_space<vmem>>, vector<1x4x32xf32>
    %132 = vector.shape_cast %131 : vector<1x4x32xf32> to vector<4x32xf32>
    %133 = vector.shape_cast %130 : vector<4x32xf32> to vector<1x4x32xf32>
    tpu.vector_store %arg11[%c7_112, %c4_113, %c0_114], %133 {strides = array<i32>} : memref<8x8x64xf32, #tpu.memory_space<vmem>>, vector<1x4x32xf32>,
    %134 = vector.extract_strided_slice %120 {offsets = [4, 0], sizes = [4, 32], strides = [1, 1]} : vector<8x32xf32> to vector<4x32xf32>
    %c7_115 = arith.constant 7 : index
    %c0_116 = arith.constant 0 : index
    %c32 = arith.constant 32 : index
    %135 = vector.load %arg11[%c7_115, %c0_116, %c32] : memref<8x8x64xf32, #tpu.memory_space<vmem>>, vector<1x4x32xf32>
    %136 = vector.shape_cast %135 : vector<1x4x32xf32> to vector<4x32xf32>
    %137 = vector.shape_cast %134 : vector<4x32xf32> to vector<1x4x32xf32>
    tpu.vector_store %arg11[%c7_115, %c0_116, %c32], %137 {strides = array<i32>} : memref<8x8x64xf32, #tpu.memory_space<vmem>>, vector<1x4x32xf32>,
    %138 = vector.extract_strided_slice %120 {offsets = [4, 0], sizes = [4, 32], strides = [1, 1]} : vector<8x32xf32> to vector<4x32xf32>
    %c0_117 = arith.constant 0 : index
    %c4_118 = arith.constant 4 : index
    %c32_119 = arith.constant 32 : index
    %139 = vector.load %arg11[%c0_117, %c4_118, %c32_119] : memref<8x8x64xf32, #tpu.memory_space<vmem>>, vector<1x4x32xf32>
    %140 = vector.shape_cast %139 : vector<1x4x32xf32> to vector<4x32xf32>
    %141 = vector.shape_cast %138 : vector<4x32xf32> to vector<1x4x32xf32>
    tpu.vector_store %arg11[%c0_117, %c4_118, %c32_119], %141 {strides = array<i32>} : memref<8x8x64xf32, #tpu.memory_space<vmem>>, vector<1x4x32xf32>,
    %142 = arith.truncf %122 : vector<8x32xf32> to vector<8x32xbf16>
    %cst_120 = arith.constant dense<0.000000e+00> : vector<8x256xf32>
    %143 = tpu.matmul %142, %0, %cst_120 {dimension_numbers = #tpu.dot_dimension_numbers<[1], [0], [0], [1], [0, 0, 1, 1], [], []>} : vector<8x32xbf16>, vector<32x256xbf16>, vector<8x256xf32> -> vector<8x256xf32>
    %144 = vector.extract_strided_slice %143 {offsets = [0, 0], sizes = [8, 128], strides = [1, 1]} : vector<8x256xf32> to vector<8x128xf32>
    %145 = vector.extract_strided_slice %143 {offsets = [0, 128], sizes = [8, 128], strides = [1, 1]} : vector<8x256xf32> to vector<8x128xf32>
    %146 = arith.select %5, %144, %145 : vector<8x128xi1>, vector<8x128xf32>
    %c1_121 = arith.constant 1 : index
    %c0_122 = arith.constant 0 : index
    %c0_123 = arith.constant 0 : index
    %147 = vector.load %arg10[%c1_121, %c0_122, %c0_123] : memref<8x8x128xf32, #tpu.memory_space<vmem>>, vector<1x8x128xf32>
    %148 = vector.shape_cast %147 : vector<1x8x128xf32> to vector<8x128xf32>
    %149 = arith.addf %146, %148 : vector<8x128xf32>
    %150 = arith.negf %149 : vector<8x128xf32>
    %151 = math.exp %150 : vector<8x128xf32>
    %cst_124 = arith.constant 1.000000e+00 : f32
    %152 = vector.broadcast %cst_124 : f32 to vector<8x128xf32>
    %153 = arith.addf %152, %151 : vector<8x128xf32>
    %154 = arith.divf %152, %153 : vector<8x128xf32>
    %155 = math.tanh %149 : vector<8x128xf32>
    %156 = vector.extract_strided_slice %154 {offsets = [0, 0], sizes = [8, 32], strides = [1, 1]} : vector<8x128xf32> to vector<8x32xf32>
    %157 = vector.extract_strided_slice %154 {offsets = [0, 32], sizes = [8, 32], strides = [1, 1]} : vector<8x128xf32> to vector<8x32xf32>
    %158 = vector.extract_strided_slice %154 {offsets = [0, 96], sizes = [8, 32], strides = [1, 1]} : vector<8x128xf32> to vector<8x32xf32>
    %159 = vector.extract_strided_slice %155 {offsets = [0, 64], sizes = [8, 32], strides = [1, 1]} : vector<8x128xf32> to vector<8x32xf32>
    %160 = arith.mulf %157, %125 : vector<8x32xf32>
    %161 = arith.mulf %156, %159 : vector<8x32xf32>
    %162 = arith.addf %160, %161 : vector<8x32xf32>
    %163 = math.tanh %162 : vector<8x32xf32>
    %164 = arith.mulf %158, %163 : vector<8x32xf32>
    %c1_125 = arith.constant 1 : index
    %c0_126 = arith.constant 0 : index
    %c0_127 = arith.constant 0 : index
    %165 = vector.load %arg7[%c1_125, %c0_126, %c0_127] : memref<8x8x32xf32, #tpu.memory_space<vmem>>, vector<1x8x32xf32>
    %166 = vector.shape_cast %165 : vector<1x8x32xf32> to vector<8x32xf32>
    %cst_128 = arith.constant 1.000000e+00 : f32
    %167 = vector.broadcast %cst_128 : f32 to vector<8x32xf32>
    %168 = arith.subf %167, %166 : vector<8x32xf32>
    %169 = arith.mulf %166, %164 : vector<8x32xf32>
    %170 = arith.mulf %168, %122 : vector<8x32xf32>
    %171 = arith.addf %169, %170 : vector<8x32xf32>
    %172 = arith.mulf %166, %162 : vector<8x32xf32>
    %173 = arith.mulf %168, %125 : vector<8x32xf32>
    %174 = arith.addf %172, %173 : vector<8x32xf32>
    %175 = vector.extract_strided_slice %169 {offsets = [0, 0], sizes = [4, 32], strides = [1, 1]} : vector<8x32xf32> to vector<4x32xf32>
    %c1_129 = arith.constant 1 : index
    %c0_130 = arith.constant 0 : index
    %c0_131 = arith.constant 0 : index
    %176 = vector.load %arg11[%c1_129, %c0_130, %c0_131] : memref<8x8x64xf32, #tpu.memory_space<vmem>>, vector<1x4x32xf32>
    %177 = vector.shape_cast %176 : vector<1x4x32xf32> to vector<4x32xf32>
    %178 = vector.shape_cast %175 : vector<4x32xf32> to vector<1x4x32xf32>
    tpu.vector_store %arg11[%c1_129, %c0_130, %c0_131], %178 {strides = array<i32>} : memref<8x8x64xf32, #tpu.memory_space<vmem>>, vector<1x4x32xf32>,
    %179 = vector.extract_strided_slice %169 {offsets = [0, 0], sizes = [4, 32], strides = [1, 1]} : vector<8x32xf32> to vector<4x32xf32>
    %c6_132 = arith.constant 6 : index
    %c4_133 = arith.constant 4 : index
    %c0_134 = arith.constant 0 : index
    %180 = vector.load %arg11[%c6_132, %c4_133, %c0_134] : memref<8x8x64xf32, #tpu.memory_space<vmem>>, vector<1x4x32xf32>
    %181 = vector.shape_cast %180 : vector<1x4x32xf32> to vector<4x32xf32>
    %182 = vector.shape_cast %179 : vector<4x32xf32> to vector<1x4x32xf32>
    tpu.vector_store %arg11[%c6_132, %c4_133, %c0_134], %182 {strides = array<i32>} : memref<8x8x64xf32, #tpu.memory_space<vmem>>, vector<1x4x32xf32>,
    %183 = vector.extract_strided_slice %169 {offsets = [4, 0], sizes = [4, 32], strides = [1, 1]} : vector<8x32xf32> to vector<4x32xf32>
    %c6_135 = arith.constant 6 : index
    %c0_136 = arith.constant 0 : index
    %c32_137 = arith.constant 32 : index
    %184 = vector.load %arg11[%c6_135, %c0_136, %c32_137] : memref<8x8x64xf32, #tpu.memory_space<vmem>>, vector<1x4x32xf32>
    %185 = vector.shape_cast %184 : vector<1x4x32xf32> to vector<4x32xf32>
    %186 = vector.shape_cast %183 : vector<4x32xf32> to vector<1x4x32xf32>
    tpu.vector_store %arg11[%c6_135, %c0_136, %c32_137], %186 {strides = array<i32>} : memref<8x8x64xf32, #tpu.memory_space<vmem>>, vector<1x4x32xf32>,
    %187 = vector.extract_strided_slice %169 {offsets = [4, 0], sizes = [4, 32], strides = [1, 1]} : vector<8x32xf32> to vector<4x32xf32>
    %c1_138 = arith.constant 1 : index
    %c4_139 = arith.constant 4 : index
    %c32_140 = arith.constant 32 : index
    %188 = vector.load %arg11[%c1_138, %c4_139, %c32_140] : memref<8x8x64xf32, #tpu.memory_space<vmem>>, vector<1x4x32xf32>
    %189 = vector.shape_cast %188 : vector<1x4x32xf32> to vector<4x32xf32>
    %190 = vector.shape_cast %187 : vector<4x32xf32> to vector<1x4x32xf32>
    tpu.vector_store %arg11[%c1_138, %c4_139, %c32_140], %190 {strides = array<i32>} : memref<8x8x64xf32, #tpu.memory_space<vmem>>, vector<1x4x32xf32>,
    %191 = arith.truncf %171 : vector<8x32xf32> to vector<8x32xbf16>
    %cst_141 = arith.constant dense<0.000000e+00> : vector<8x256xf32>
    %192 = tpu.matmul %191, %0, %cst_141 {dimension_numbers = #tpu.dot_dimension_numbers<[1], [0], [0], [1], [0, 0, 1, 1], [], []>} : vector<8x32xbf16>, vector<32x256xbf16>, vector<8x256xf32> -> vector<8x256xf32>
    %193 = vector.extract_strided_slice %192 {offsets = [0, 0], sizes = [8, 128], strides = [1, 1]} : vector<8x256xf32> to vector<8x128xf32>
    %194 = vector.extract_strided_slice %192 {offsets = [0, 128], sizes = [8, 128], strides = [1, 1]} : vector<8x256xf32> to vector<8x128xf32>
    %195 = arith.select %5, %193, %194 : vector<8x128xi1>, vector<8x128xf32>
    %c2_142 = arith.constant 2 : index
    %c0_143 = arith.constant 0 : index
    %c0_144 = arith.constant 0 : index
    %196 = vector.load %arg10[%c2_142, %c0_143, %c0_144] : memref<8x8x128xf32, #tpu.memory_space<vmem>>, vector<1x8x128xf32>
    %197 = vector.shape_cast %196 : vector<1x8x128xf32> to vector<8x128xf32>
    %198 = arith.addf %195, %197 : vector<8x128xf32>
    %199 = arith.negf %198 : vector<8x128xf32>
    %200 = math.exp %199 : vector<8x128xf32>
    %cst_145 = arith.constant 1.000000e+00 : f32
    %201 = vector.broadcast %cst_145 : f32 to vector<8x128xf32>
    %202 = arith.addf %201, %200 : vector<8x128xf32>
    %203 = arith.divf %201, %202 : vector<8x128xf32>
    %204 = math.tanh %198 : vector<8x128xf32>
    %205 = vector.extract_strided_slice %203 {offsets = [0, 0], sizes = [8, 32], strides = [1, 1]} : vector<8x128xf32> to vector<8x32xf32>
    %206 = vector.extract_strided_slice %203 {offsets = [0, 32], sizes = [8, 32], strides = [1, 1]} : vector<8x128xf32> to vector<8x32xf32>
    %207 = vector.extract_strided_slice %203 {offsets = [0, 96], sizes = [8, 32], strides = [1, 1]} : vector<8x128xf32> to vector<8x32xf32>
    %208 = vector.extract_strided_slice %204 {offsets = [0, 64], sizes = [8, 32], strides = [1, 1]} : vector<8x128xf32> to vector<8x32xf32>
    %209 = arith.mulf %206, %174 : vector<8x32xf32>
    %210 = arith.mulf %205, %208 : vector<8x32xf32>
    %211 = arith.addf %209, %210 : vector<8x32xf32>
    %212 = math.tanh %211 : vector<8x32xf32>
    %213 = arith.mulf %207, %212 : vector<8x32xf32>
    %c2_146 = arith.constant 2 : index
    %c0_147 = arith.constant 0 : index
    %c0_148 = arith.constant 0 : index
    %214 = vector.load %arg7[%c2_146, %c0_147, %c0_148] : memref<8x8x32xf32, #tpu.memory_space<vmem>>, vector<1x8x32xf32>
    %215 = vector.shape_cast %214 : vector<1x8x32xf32> to vector<8x32xf32>
    %cst_149 = arith.constant 1.000000e+00 : f32
    %216 = vector.broadcast %cst_149 : f32 to vector<8x32xf32>
    %217 = arith.subf %216, %215 : vector<8x32xf32>
    %218 = arith.mulf %215, %213 : vector<8x32xf32>
    %219 = arith.mulf %217, %171 : vector<8x32xf32>
    %220 = arith.addf %218, %219 : vector<8x32xf32>
    %221 = arith.mulf %215, %211 : vector<8x32xf32>
    %222 = arith.mulf %217, %174 : vector<8x32xf32>
    %223 = arith.addf %221, %222 : vector<8x32xf32>
    %224 = vector.extract_strided_slice %218 {offsets = [0, 0], sizes = [4, 32], strides = [1, 1]} : vector<8x32xf32> to vector<4x32xf32>
    %c2_150 = arith.constant 2 : index
    %c0_151 = arith.constant 0 : index
    %c0_152 = arith.constant 0 : index
    %225 = vector.load %arg11[%c2_150, %c0_151, %c0_152] : memref<8x8x64xf32, #tpu.memory_space<vmem>>, vector<1x4x32xf32>
    %226 = vector.shape_cast %225 : vector<1x4x32xf32> to vector<4x32xf32>
    %227 = vector.shape_cast %224 : vector<4x32xf32> to vector<1x4x32xf32>
    tpu.vector_store %arg11[%c2_150, %c0_151, %c0_152], %227 {strides = array<i32>} : memref<8x8x64xf32, #tpu.memory_space<vmem>>, vector<1x4x32xf32>,
    %228 = vector.extract_strided_slice %218 {offsets = [0, 0], sizes = [4, 32], strides = [1, 1]} : vector<8x32xf32> to vector<4x32xf32>
    %c5_153 = arith.constant 5 : index
    %c4_154 = arith.constant 4 : index
    %c0_155 = arith.constant 0 : index
    %229 = vector.load %arg11[%c5_153, %c4_154, %c0_155] : memref<8x8x64xf32, #tpu.memory_space<vmem>>, vector<1x4x32xf32>
    %230 = vector.shape_cast %229 : vector<1x4x32xf32> to vector<4x32xf32>
    %231 = vector.shape_cast %228 : vector<4x32xf32> to vector<1x4x32xf32>
    tpu.vector_store %arg11[%c5_153, %c4_154, %c0_155], %231 {strides = array<i32>} : memref<8x8x64xf32, #tpu.memory_space<vmem>>, vector<1x4x32xf32>,
    %232 = vector.extract_strided_slice %218 {offsets = [4, 0], sizes = [4, 32], strides = [1, 1]} : vector<8x32xf32> to vector<4x32xf32>
    %c5_156 = arith.constant 5 : index
    %c0_157 = arith.constant 0 : index
    %c32_158 = arith.constant 32 : index
    %233 = vector.load %arg11[%c5_156, %c0_157, %c32_158] : memref<8x8x64xf32, #tpu.memory_space<vmem>>, vector<1x4x32xf32>
    %234 = vector.shape_cast %233 : vector<1x4x32xf32> to vector<4x32xf32>
    %235 = vector.shape_cast %232 : vector<4x32xf32> to vector<1x4x32xf32>
    tpu.vector_store %arg11[%c5_156, %c0_157, %c32_158], %235 {strides = array<i32>} : memref<8x8x64xf32, #tpu.memory_space<vmem>>, vector<1x4x32xf32>,
    %236 = vector.extract_strided_slice %218 {offsets = [4, 0], sizes = [4, 32], strides = [1, 1]} : vector<8x32xf32> to vector<4x32xf32>
    %c2_159 = arith.constant 2 : index
    %c4_160 = arith.constant 4 : index
    %c32_161 = arith.constant 32 : index
    %237 = vector.load %arg11[%c2_159, %c4_160, %c32_161] : memref<8x8x64xf32, #tpu.memory_space<vmem>>, vector<1x4x32xf32>
    %238 = vector.shape_cast %237 : vector<1x4x32xf32> to vector<4x32xf32>
    %239 = vector.shape_cast %236 : vector<4x32xf32> to vector<1x4x32xf32>
    tpu.vector_store %arg11[%c2_159, %c4_160, %c32_161], %239 {strides = array<i32>} : memref<8x8x64xf32, #tpu.memory_space<vmem>>, vector<1x4x32xf32>,
    %240 = arith.truncf %220 : vector<8x32xf32> to vector<8x32xbf16>
    %cst_162 = arith.constant dense<0.000000e+00> : vector<8x256xf32>
    %241 = tpu.matmul %240, %0, %cst_162 {dimension_numbers = #tpu.dot_dimension_numbers<[1], [0], [0], [1], [0, 0, 1, 1], [], []>} : vector<8x32xbf16>, vector<32x256xbf16>, vector<8x256xf32> -> vector<8x256xf32>
    %242 = vector.extract_strided_slice %241 {offsets = [0, 0], sizes = [8, 128], strides = [1, 1]} : vector<8x256xf32> to vector<8x128xf32>
    %243 = vector.extract_strided_slice %241 {offsets = [0, 128], sizes = [8, 128], strides = [1, 1]} : vector<8x256xf32> to vector<8x128xf32>
    %244 = arith.select %5, %242, %243 : vector<8x128xi1>, vector<8x128xf32>
    %c3_163 = arith.constant 3 : index
    %c0_164 = arith.constant 0 : index
    %c0_165 = arith.constant 0 : index
    %245 = vector.load %arg10[%c3_163, %c0_164, %c0_165] : memref<8x8x128xf32, #tpu.memory_space<vmem>>, vector<1x8x128xf32>
    %246 = vector.shape_cast %245 : vector<1x8x128xf32> to vector<8x128xf32>
    %247 = arith.addf %244, %246 : vector<8x128xf32>
    %248 = arith.negf %247 : vector<8x128xf32>
    %249 = math.exp %248 : vector<8x128xf32>
    %cst_166 = arith.constant 1.000000e+00 : f32
    %250 = vector.broadcast %cst_166 : f32 to vector<8x128xf32>
    %251 = arith.addf %250, %249 : vector<8x128xf32>
    %252 = arith.divf %250, %251 : vector<8x128xf32>
    %253 = math.tanh %247 : vector<8x128xf32>
    %254 = vector.extract_strided_slice %252 {offsets = [0, 0], sizes = [8, 32], strides = [1, 1]} : vector<8x128xf32> to vector<8x32xf32>
    %255 = vector.extract_strided_slice %252 {offsets = [0, 32], sizes = [8, 32], strides = [1, 1]} : vector<8x128xf32> to vector<8x32xf32>
    %256 = vector.extract_strided_slice %252 {offsets = [0, 96], sizes = [8, 32], strides = [1, 1]} : vector<8x128xf32> to vector<8x32xf32>
    %257 = vector.extract_strided_slice %253 {offsets = [0, 64], sizes = [8, 32], strides = [1, 1]} : vector<8x128xf32> to vector<8x32xf32>
    %258 = arith.mulf %255, %223 : vector<8x32xf32>
    %259 = arith.mulf %254, %257 : vector<8x32xf32>
    %260 = arith.addf %258, %259 : vector<8x32xf32>
    %261 = math.tanh %260 : vector<8x32xf32>
    %262 = arith.mulf %256, %261 : vector<8x32xf32>
    %c3_167 = arith.constant 3 : index
    %c0_168 = arith.constant 0 : index
    %c0_169 = arith.constant 0 : index
    %263 = vector.load %arg7[%c3_167, %c0_168, %c0_169] : memref<8x8x32xf32, #tpu.memory_space<vmem>>, vector<1x8x32xf32>
    %264 = vector.shape_cast %263 : vector<1x8x32xf32> to vector<8x32xf32>
    %cst_170 = arith.constant 1.000000e+00 : f32
    %265 = vector.broadcast %cst_170 : f32 to vector<8x32xf32>
    %266 = arith.subf %265, %264 : vector<8x32xf32>
    %267 = arith.mulf %264, %262 : vector<8x32xf32>
    %268 = arith.mulf %266, %220 : vector<8x32xf32>
    %269 = arith.addf %267, %268 : vector<8x32xf32>
    %270 = arith.mulf %264, %260 : vector<8x32xf32>
    %271 = arith.mulf %266, %223 : vector<8x32xf32>
    %272 = arith.addf %270, %271 : vector<8x32xf32>
    %273 = vector.extract_strided_slice %267 {offsets = [0, 0], sizes = [4, 32], strides = [1, 1]} : vector<8x32xf32> to vector<4x32xf32>
    %c3_171 = arith.constant 3 : index
    %c0_172 = arith.constant 0 : index
    %c0_173 = arith.constant 0 : index
    %274 = vector.load %arg11[%c3_171, %c0_172, %c0_173] : memref<8x8x64xf32, #tpu.memory_space<vmem>>, vector<1x4x32xf32>
    %275 = vector.shape_cast %274 : vector<1x4x32xf32> to vector<4x32xf32>
    %276 = vector.shape_cast %273 : vector<4x32xf32> to vector<1x4x32xf32>
    tpu.vector_store %arg11[%c3_171, %c0_172, %c0_173], %276 {strides = array<i32>} : memref<8x8x64xf32, #tpu.memory_space<vmem>>, vector<1x4x32xf32>,
    %277 = vector.extract_strided_slice %267 {offsets = [0, 0], sizes = [4, 32], strides = [1, 1]} : vector<8x32xf32> to vector<4x32xf32>
    %c4_174 = arith.constant 4 : index
    %c4_175 = arith.constant 4 : index
    %c0_176 = arith.constant 0 : index
    %278 = vector.load %arg11[%c4_174, %c4_175, %c0_176] : memref<8x8x64xf32, #tpu.memory_space<vmem>>, vector<1x4x32xf32>
    %279 = vector.shape_cast %278 : vector<1x4x32xf32> to vector<4x32xf32>
    %280 = vector.shape_cast %277 : vector<4x32xf32> to vector<1x4x32xf32>
    tpu.vector_store %arg11[%c4_174, %c4_175, %c0_176], %280 {strides = array<i32>} : memref<8x8x64xf32, #tpu.memory_space<vmem>>, vector<1x4x32xf32>,
    %281 = vector.extract_strided_slice %267 {offsets = [4, 0], sizes = [4, 32], strides = [1, 1]} : vector<8x32xf32> to vector<4x32xf32>
    %c4_177 = arith.constant 4 : index
    %c0_178 = arith.constant 0 : index
    %c32_179 = arith.constant 32 : index
    %282 = vector.load %arg11[%c4_177, %c0_178, %c32_179] : memref<8x8x64xf32, #tpu.memory_space<vmem>>, vector<1x4x32xf32>
    %283 = vector.shape_cast %282 : vector<1x4x32xf32> to vector<4x32xf32>
    %284 = vector.shape_cast %281 : vector<4x32xf32> to vector<1x4x32xf32>
    tpu.vector_store %arg11[%c4_177, %c0_178, %c32_179], %284 {strides = array<i32>} : memref<8x8x64xf32, #tpu.memory_space<vmem>>, vector<1x4x32xf32>,
    %285 = vector.extract_strided_slice %267 {offsets = [4, 0], sizes = [4, 32], strides = [1, 1]} : vector<8x32xf32> to vector<4x32xf32>
    %c3_180 = arith.constant 3 : index
    %c4_181 = arith.constant 4 : index
    %c32_182 = arith.constant 32 : index
    %286 = vector.load %arg11[%c3_180, %c4_181, %c32_182] : memref<8x8x64xf32, #tpu.memory_space<vmem>>, vector<1x4x32xf32>
    %287 = vector.shape_cast %286 : vector<1x4x32xf32> to vector<4x32xf32>
    %288 = vector.shape_cast %285 : vector<4x32xf32> to vector<1x4x32xf32>
    tpu.vector_store %arg11[%c3_180, %c4_181, %c32_182], %288 {strides = array<i32>} : memref<8x8x64xf32, #tpu.memory_space<vmem>>, vector<1x4x32xf32>,
    %289 = arith.truncf %269 : vector<8x32xf32> to vector<8x32xbf16>
    %cst_183 = arith.constant dense<0.000000e+00> : vector<8x256xf32>
    %290 = tpu.matmul %289, %0, %cst_183 {dimension_numbers = #tpu.dot_dimension_numbers<[1], [0], [0], [1], [0, 0, 1, 1], [], []>} : vector<8x32xbf16>, vector<32x256xbf16>, vector<8x256xf32> -> vector<8x256xf32>
    %291 = vector.extract_strided_slice %290 {offsets = [0, 0], sizes = [8, 128], strides = [1, 1]} : vector<8x256xf32> to vector<8x128xf32>
    %292 = vector.extract_strided_slice %290 {offsets = [0, 128], sizes = [8, 128], strides = [1, 1]} : vector<8x256xf32> to vector<8x128xf32>
    %293 = arith.select %5, %291, %292 : vector<8x128xi1>, vector<8x128xf32>
    %c4_184 = arith.constant 4 : index
    %c0_185 = arith.constant 0 : index
    %c0_186 = arith.constant 0 : index
    %294 = vector.load %arg10[%c4_184, %c0_185, %c0_186] : memref<8x8x128xf32, #tpu.memory_space<vmem>>, vector<1x8x128xf32>
    %295 = vector.shape_cast %294 : vector<1x8x128xf32> to vector<8x128xf32>
    %296 = arith.addf %293, %295 : vector<8x128xf32>
    %297 = arith.negf %296 : vector<8x128xf32>
    %298 = math.exp %297 : vector<8x128xf32>
    %cst_187 = arith.constant 1.000000e+00 : f32
    %299 = vector.broadcast %cst_187 : f32 to vector<8x128xf32>
    %300 = arith.addf %299, %298 : vector<8x128xf32>
    %301 = arith.divf %299, %300 : vector<8x128xf32>
    %302 = math.tanh %296 : vector<8x128xf32>
    %303 = vector.extract_strided_slice %301 {offsets = [0, 0], sizes = [8, 32], strides = [1, 1]} : vector<8x128xf32> to vector<8x32xf32>
    %304 = vector.extract_strided_slice %301 {offsets = [0, 32], sizes = [8, 32], strides = [1, 1]} : vector<8x128xf32> to vector<8x32xf32>
    %305 = vector.extract_strided_slice %301 {offsets = [0, 96], sizes = [8, 32], strides = [1, 1]} : vector<8x128xf32> to vector<8x32xf32>
    %306 = vector.extract_strided_slice %302 {offsets = [0, 64], sizes = [8, 32], strides = [1, 1]} : vector<8x128xf32> to vector<8x32xf32>
    %307 = arith.mulf %304, %272 : vector<8x32xf32>
    %308 = arith.mulf %303, %306 : vector<8x32xf32>
    %309 = arith.addf %307, %308 : vector<8x32xf32>
    %310 = math.tanh %309 : vector<8x32xf32>
    %311 = arith.mulf %305, %310 : vector<8x32xf32>
    %c4_188 = arith.constant 4 : index
    %c0_189 = arith.constant 0 : index
    %c0_190 = arith.constant 0 : index
    %312 = vector.load %arg7[%c4_188, %c0_189, %c0_190] : memref<8x8x32xf32, #tpu.memory_space<vmem>>, vector<1x8x32xf32>
    %313 = vector.shape_cast %312 : vector<1x8x32xf32> to vector<8x32xf32>
    %cst_191 = arith.constant 1.000000e+00 : f32
    %314 = vector.broadcast %cst_191 : f32 to vector<8x32xf32>
    %315 = arith.subf %314, %313 : vector<8x32xf32>
    %316 = arith.mulf %313, %311 : vector<8x32xf32>
    %317 = arith.mulf %315, %269 : vector<8x32xf32>
    %318 = arith.addf %316, %317 : vector<8x32xf32>
    %319 = arith.mulf %313, %309 : vector<8x32xf32>
    %320 = arith.mulf %315, %272 : vector<8x32xf32>
    %321 = arith.addf %319, %320 : vector<8x32xf32>
    %322 = vector.extract_strided_slice %316 {offsets = [0, 0], sizes = [4, 32], strides = [1, 1]} : vector<8x32xf32> to vector<4x32xf32>
    %c4_192 = arith.constant 4 : index
    %c0_193 = arith.constant 0 : index
    %c0_194 = arith.constant 0 : index
    %323 = vector.load %arg11[%c4_192, %c0_193, %c0_194] : memref<8x8x64xf32, #tpu.memory_space<vmem>>, vector<1x4x32xf32>
    %324 = vector.shape_cast %323 : vector<1x4x32xf32> to vector<4x32xf32>
    %325 = vector.shape_cast %322 : vector<4x32xf32> to vector<1x4x32xf32>
    tpu.vector_store %arg11[%c4_192, %c0_193, %c0_194], %325 {strides = array<i32>} : memref<8x8x64xf32, #tpu.memory_space<vmem>>, vector<1x4x32xf32>,
    %326 = vector.extract_strided_slice %316 {offsets = [0, 0], sizes = [4, 32], strides = [1, 1]} : vector<8x32xf32> to vector<4x32xf32>
    %c3_195 = arith.constant 3 : index
    %c4_196 = arith.constant 4 : index
    %c0_197 = arith.constant 0 : index
    %327 = vector.load %arg11[%c3_195, %c4_196, %c0_197] : memref<8x8x64xf32, #tpu.memory_space<vmem>>, vector<1x4x32xf32>
    %328 = vector.shape_cast %327 : vector<1x4x32xf32> to vector<4x32xf32>
    %329 = vector.shape_cast %326 : vector<4x32xf32> to vector<1x4x32xf32>
    tpu.vector_store %arg11[%c3_195, %c4_196, %c0_197], %329 {strides = array<i32>} : memref<8x8x64xf32, #tpu.memory_space<vmem>>, vector<1x4x32xf32>,
    %330 = vector.extract_strided_slice %316 {offsets = [4, 0], sizes = [4, 32], strides = [1, 1]} : vector<8x32xf32> to vector<4x32xf32>
    %c3_198 = arith.constant 3 : index
    %c0_199 = arith.constant 0 : index
    %c32_200 = arith.constant 32 : index
    %331 = vector.load %arg11[%c3_198, %c0_199, %c32_200] : memref<8x8x64xf32, #tpu.memory_space<vmem>>, vector<1x4x32xf32>
    %332 = vector.shape_cast %331 : vector<1x4x32xf32> to vector<4x32xf32>
    %333 = vector.shape_cast %330 : vector<4x32xf32> to vector<1x4x32xf32>
    tpu.vector_store %arg11[%c3_198, %c0_199, %c32_200], %333 {strides = array<i32>} : memref<8x8x64xf32, #tpu.memory_space<vmem>>, vector<1x4x32xf32>,
    %334 = vector.extract_strided_slice %316 {offsets = [4, 0], sizes = [4, 32], strides = [1, 1]} : vector<8x32xf32> to vector<4x32xf32>
    %c4_201 = arith.constant 4 : index
    %c4_202 = arith.constant 4 : index
    %c32_203 = arith.constant 32 : index
    %335 = vector.load %arg11[%c4_201, %c4_202, %c32_203] : memref<8x8x64xf32, #tpu.memory_space<vmem>>, vector<1x4x32xf32>
    %336 = vector.shape_cast %335 : vector<1x4x32xf32> to vector<4x32xf32>
    %337 = vector.shape_cast %334 : vector<4x32xf32> to vector<1x4x32xf32>
    tpu.vector_store %arg11[%c4_201, %c4_202, %c32_203], %337 {strides = array<i32>} : memref<8x8x64xf32, #tpu.memory_space<vmem>>, vector<1x4x32xf32>,
    %338 = arith.truncf %318 : vector<8x32xf32> to vector<8x32xbf16>
    %cst_204 = arith.constant dense<0.000000e+00> : vector<8x256xf32>
    %339 = tpu.matmul %338, %0, %cst_204 {dimension_numbers = #tpu.dot_dimension_numbers<[1], [0], [0], [1], [0, 0, 1, 1], [], []>} : vector<8x32xbf16>, vector<32x256xbf16>, vector<8x256xf32> -> vector<8x256xf32>
    %340 = vector.extract_strided_slice %339 {offsets = [0, 0], sizes = [8, 128], strides = [1, 1]} : vector<8x256xf32> to vector<8x128xf32>
    %341 = vector.extract_strided_slice %339 {offsets = [0, 128], sizes = [8, 128], strides = [1, 1]} : vector<8x256xf32> to vector<8x128xf32>
    %342 = arith.select %5, %340, %341 : vector<8x128xi1>, vector<8x128xf32>
    %c5_205 = arith.constant 5 : index
    %c0_206 = arith.constant 0 : index
    %c0_207 = arith.constant 0 : index
    %343 = vector.load %arg10[%c5_205, %c0_206, %c0_207] : memref<8x8x128xf32, #tpu.memory_space<vmem>>, vector<1x8x128xf32>
    %344 = vector.shape_cast %343 : vector<1x8x128xf32> to vector<8x128xf32>
    %345 = arith.addf %342, %344 : vector<8x128xf32>
    %346 = arith.negf %345 : vector<8x128xf32>
    %347 = math.exp %346 : vector<8x128xf32>
    %cst_208 = arith.constant 1.000000e+00 : f32
    %348 = vector.broadcast %cst_208 : f32 to vector<8x128xf32>
    %349 = arith.addf %348, %347 : vector<8x128xf32>
    %350 = arith.divf %348, %349 : vector<8x128xf32>
    %351 = math.tanh %345 : vector<8x128xf32>
    %352 = vector.extract_strided_slice %350 {offsets = [0, 0], sizes = [8, 32], strides = [1, 1]} : vector<8x128xf32> to vector<8x32xf32>
    %353 = vector.extract_strided_slice %350 {offsets = [0, 32], sizes = [8, 32], strides = [1, 1]} : vector<8x128xf32> to vector<8x32xf32>
    %354 = vector.extract_strided_slice %350 {offsets = [0, 96], sizes = [8, 32], strides = [1, 1]} : vector<8x128xf32> to vector<8x32xf32>
    %355 = vector.extract_strided_slice %351 {offsets = [0, 64], sizes = [8, 32], strides = [1, 1]} : vector<8x128xf32> to vector<8x32xf32>
    %356 = arith.mulf %353, %321 : vector<8x32xf32>
    %357 = arith.mulf %352, %355 : vector<8x32xf32>
    %358 = arith.addf %356, %357 : vector<8x32xf32>
    %359 = math.tanh %358 : vector<8x32xf32>
    %360 = arith.mulf %354, %359 : vector<8x32xf32>
    %c5_209 = arith.constant 5 : index
    %c0_210 = arith.constant 0 : index
    %c0_211 = arith.constant 0 : index
    %361 = vector.load %arg7[%c5_209, %c0_210, %c0_211] : memref<8x8x32xf32, #tpu.memory_space<vmem>>, vector<1x8x32xf32>
    %362 = vector.shape_cast %361 : vector<1x8x32xf32> to vector<8x32xf32>
    %cst_212 = arith.constant 1.000000e+00 : f32
    %363 = vector.broadcast %cst_212 : f32 to vector<8x32xf32>
    %364 = arith.subf %363, %362 : vector<8x32xf32>
    %365 = arith.mulf %362, %360 : vector<8x32xf32>
    %366 = arith.mulf %364, %318 : vector<8x32xf32>
    %367 = arith.addf %365, %366 : vector<8x32xf32>
    %368 = arith.mulf %362, %358 : vector<8x32xf32>
    %369 = arith.mulf %364, %321 : vector<8x32xf32>
    %370 = arith.addf %368, %369 : vector<8x32xf32>
    %371 = vector.extract_strided_slice %365 {offsets = [0, 0], sizes = [4, 32], strides = [1, 1]} : vector<8x32xf32> to vector<4x32xf32>
    %c5_213 = arith.constant 5 : index
    %c0_214 = arith.constant 0 : index
    %c0_215 = arith.constant 0 : index
    %372 = vector.load %arg11[%c5_213, %c0_214, %c0_215] : memref<8x8x64xf32, #tpu.memory_space<vmem>>, vector<1x4x32xf32>
    %373 = vector.shape_cast %372 : vector<1x4x32xf32> to vector<4x32xf32>
    %374 = vector.shape_cast %371 : vector<4x32xf32> to vector<1x4x32xf32>
    tpu.vector_store %arg11[%c5_213, %c0_214, %c0_215], %374 {strides = array<i32>} : memref<8x8x64xf32, #tpu.memory_space<vmem>>, vector<1x4x32xf32>,
    %375 = vector.extract_strided_slice %365 {offsets = [0, 0], sizes = [4, 32], strides = [1, 1]} : vector<8x32xf32> to vector<4x32xf32>
    %c2_216 = arith.constant 2 : index
    %c4_217 = arith.constant 4 : index
    %c0_218 = arith.constant 0 : index
    %376 = vector.load %arg11[%c2_216, %c4_217, %c0_218] : memref<8x8x64xf32, #tpu.memory_space<vmem>>, vector<1x4x32xf32>
    %377 = vector.shape_cast %376 : vector<1x4x32xf32> to vector<4x32xf32>
    %378 = vector.shape_cast %375 : vector<4x32xf32> to vector<1x4x32xf32>
    tpu.vector_store %arg11[%c2_216, %c4_217, %c0_218], %378 {strides = array<i32>} : memref<8x8x64xf32, #tpu.memory_space<vmem>>, vector<1x4x32xf32>,
    %379 = vector.extract_strided_slice %365 {offsets = [4, 0], sizes = [4, 32], strides = [1, 1]} : vector<8x32xf32> to vector<4x32xf32>
    %c2_219 = arith.constant 2 : index
    %c0_220 = arith.constant 0 : index
    %c32_221 = arith.constant 32 : index
    %380 = vector.load %arg11[%c2_219, %c0_220, %c32_221] : memref<8x8x64xf32, #tpu.memory_space<vmem>>, vector<1x4x32xf32>
    %381 = vector.shape_cast %380 : vector<1x4x32xf32> to vector<4x32xf32>
    %382 = vector.shape_cast %379 : vector<4x32xf32> to vector<1x4x32xf32>
    tpu.vector_store %arg11[%c2_219, %c0_220, %c32_221], %382 {strides = array<i32>} : memref<8x8x64xf32, #tpu.memory_space<vmem>>, vector<1x4x32xf32>,
    %383 = vector.extract_strided_slice %365 {offsets = [4, 0], sizes = [4, 32], strides = [1, 1]} : vector<8x32xf32> to vector<4x32xf32>
    %c5_222 = arith.constant 5 : index
    %c4_223 = arith.constant 4 : index
    %c32_224 = arith.constant 32 : index
    %384 = vector.load %arg11[%c5_222, %c4_223, %c32_224] : memref<8x8x64xf32, #tpu.memory_space<vmem>>, vector<1x4x32xf32>
    %385 = vector.shape_cast %384 : vector<1x4x32xf32> to vector<4x32xf32>
    %386 = vector.shape_cast %383 : vector<4x32xf32> to vector<1x4x32xf32>
    tpu.vector_store %arg11[%c5_222, %c4_223, %c32_224], %386 {strides = array<i32>} : memref<8x8x64xf32, #tpu.memory_space<vmem>>, vector<1x4x32xf32>,
    %387 = arith.truncf %367 : vector<8x32xf32> to vector<8x32xbf16>
    %cst_225 = arith.constant dense<0.000000e+00> : vector<8x256xf32>
    %388 = tpu.matmul %387, %0, %cst_225 {dimension_numbers = #tpu.dot_dimension_numbers<[1], [0], [0], [1], [0, 0, 1, 1], [], []>} : vector<8x32xbf16>, vector<32x256xbf16>, vector<8x256xf32> -> vector<8x256xf32>
    %389 = vector.extract_strided_slice %388 {offsets = [0, 0], sizes = [8, 128], strides = [1, 1]} : vector<8x256xf32> to vector<8x128xf32>
    %390 = vector.extract_strided_slice %388 {offsets = [0, 128], sizes = [8, 128], strides = [1, 1]} : vector<8x256xf32> to vector<8x128xf32>
    %391 = arith.select %5, %389, %390 : vector<8x128xi1>, vector<8x128xf32>
    %c6_226 = arith.constant 6 : index
    %c0_227 = arith.constant 0 : index
    %c0_228 = arith.constant 0 : index
    %392 = vector.load %arg10[%c6_226, %c0_227, %c0_228] : memref<8x8x128xf32, #tpu.memory_space<vmem>>, vector<1x8x128xf32>
    %393 = vector.shape_cast %392 : vector<1x8x128xf32> to vector<8x128xf32>
    %394 = arith.addf %391, %393 : vector<8x128xf32>
    %395 = arith.negf %394 : vector<8x128xf32>
    %396 = math.exp %395 : vector<8x128xf32>
    %cst_229 = arith.constant 1.000000e+00 : f32
    %397 = vector.broadcast %cst_229 : f32 to vector<8x128xf32>
    %398 = arith.addf %397, %396 : vector<8x128xf32>
    %399 = arith.divf %397, %398 : vector<8x128xf32>
    %400 = math.tanh %394 : vector<8x128xf32>
    %401 = vector.extract_strided_slice %399 {offsets = [0, 0], sizes = [8, 32], strides = [1, 1]} : vector<8x128xf32> to vector<8x32xf32>
    %402 = vector.extract_strided_slice %399 {offsets = [0, 32], sizes = [8, 32], strides = [1, 1]} : vector<8x128xf32> to vector<8x32xf32>
    %403 = vector.extract_strided_slice %399 {offsets = [0, 96], sizes = [8, 32], strides = [1, 1]} : vector<8x128xf32> to vector<8x32xf32>
    %404 = vector.extract_strided_slice %400 {offsets = [0, 64], sizes = [8, 32], strides = [1, 1]} : vector<8x128xf32> to vector<8x32xf32>
    %405 = arith.mulf %402, %370 : vector<8x32xf32>
    %406 = arith.mulf %401, %404 : vector<8x32xf32>
    %407 = arith.addf %405, %406 : vector<8x32xf32>
    %408 = math.tanh %407 : vector<8x32xf32>
    %409 = arith.mulf %403, %408 : vector<8x32xf32>
    %c6_230 = arith.constant 6 : index
    %c0_231 = arith.constant 0 : index
    %c0_232 = arith.constant 0 : index
    %410 = vector.load %arg7[%c6_230, %c0_231, %c0_232] : memref<8x8x32xf32, #tpu.memory_space<vmem>>, vector<1x8x32xf32>
    %411 = vector.shape_cast %410 : vector<1x8x32xf32> to vector<8x32xf32>
    %cst_233 = arith.constant 1.000000e+00 : f32
    %412 = vector.broadcast %cst_233 : f32 to vector<8x32xf32>
    %413 = arith.subf %412, %411 : vector<8x32xf32>
    %414 = arith.mulf %411, %409 : vector<8x32xf32>
    %415 = arith.mulf %413, %367 : vector<8x32xf32>
    %416 = arith.addf %414, %415 : vector<8x32xf32>
    %417 = arith.mulf %411, %407 : vector<8x32xf32>
    %418 = arith.mulf %413, %370 : vector<8x32xf32>
    %419 = arith.addf %417, %418 : vector<8x32xf32>
    %420 = vector.extract_strided_slice %414 {offsets = [0, 0], sizes = [4, 32], strides = [1, 1]} : vector<8x32xf32> to vector<4x32xf32>
    %c6_234 = arith.constant 6 : index
    %c0_235 = arith.constant 0 : index
    %c0_236 = arith.constant 0 : index
    %421 = vector.load %arg11[%c6_234, %c0_235, %c0_236] : memref<8x8x64xf32, #tpu.memory_space<vmem>>, vector<1x4x32xf32>
    %422 = vector.shape_cast %421 : vector<1x4x32xf32> to vector<4x32xf32>
    %423 = vector.shape_cast %420 : vector<4x32xf32> to vector<1x4x32xf32>
    tpu.vector_store %arg11[%c6_234, %c0_235, %c0_236], %423 {strides = array<i32>} : memref<8x8x64xf32, #tpu.memory_space<vmem>>, vector<1x4x32xf32>,
    %424 = vector.extract_strided_slice %414 {offsets = [0, 0], sizes = [4, 32], strides = [1, 1]} : vector<8x32xf32> to vector<4x32xf32>
    %c1_237 = arith.constant 1 : index
    %c4_238 = arith.constant 4 : index
    %c0_239 = arith.constant 0 : index
    %425 = vector.load %arg11[%c1_237, %c4_238, %c0_239] : memref<8x8x64xf32, #tpu.memory_space<vmem>>, vector<1x4x32xf32>
    %426 = vector.shape_cast %425 : vector<1x4x32xf32> to vector<4x32xf32>
    %427 = vector.shape_cast %424 : vector<4x32xf32> to vector<1x4x32xf32>
    tpu.vector_store %arg11[%c1_237, %c4_238, %c0_239], %427 {strides = array<i32>} : memref<8x8x64xf32, #tpu.memory_space<vmem>>, vector<1x4x32xf32>,
    %428 = vector.extract_strided_slice %414 {offsets = [4, 0], sizes = [4, 32], strides = [1, 1]} : vector<8x32xf32> to vector<4x32xf32>
    %c1_240 = arith.constant 1 : index
    %c0_241 = arith.constant 0 : index
    %c32_242 = arith.constant 32 : index
    %429 = vector.load %arg11[%c1_240, %c0_241, %c32_242] : memref<8x8x64xf32, #tpu.memory_space<vmem>>, vector<1x4x32xf32>
    %430 = vector.shape_cast %429 : vector<1x4x32xf32> to vector<4x32xf32>
    %431 = vector.shape_cast %428 : vector<4x32xf32> to vector<1x4x32xf32>
    tpu.vector_store %arg11[%c1_240, %c0_241, %c32_242], %431 {strides = array<i32>} : memref<8x8x64xf32, #tpu.memory_space<vmem>>, vector<1x4x32xf32>,
    %432 = vector.extract_strided_slice %414 {offsets = [4, 0], sizes = [4, 32], strides = [1, 1]} : vector<8x32xf32> to vector<4x32xf32>
    %c6_243 = arith.constant 6 : index
    %c4_244 = arith.constant 4 : index
    %c32_245 = arith.constant 32 : index
    %433 = vector.load %arg11[%c6_243, %c4_244, %c32_245] : memref<8x8x64xf32, #tpu.memory_space<vmem>>, vector<1x4x32xf32>
    %434 = vector.shape_cast %433 : vector<1x4x32xf32> to vector<4x32xf32>
    %435 = vector.shape_cast %432 : vector<4x32xf32> to vector<1x4x32xf32>
    tpu.vector_store %arg11[%c6_243, %c4_244, %c32_245], %435 {strides = array<i32>} : memref<8x8x64xf32, #tpu.memory_space<vmem>>, vector<1x4x32xf32>,
    %436 = arith.truncf %416 : vector<8x32xf32> to vector<8x32xbf16>
    %cst_246 = arith.constant dense<0.000000e+00> : vector<8x256xf32>
    %437 = tpu.matmul %436, %0, %cst_246 {dimension_numbers = #tpu.dot_dimension_numbers<[1], [0], [0], [1], [0, 0, 1, 1], [], []>} : vector<8x32xbf16>, vector<32x256xbf16>, vector<8x256xf32> -> vector<8x256xf32>
    %438 = vector.extract_strided_slice %437 {offsets = [0, 0], sizes = [8, 128], strides = [1, 1]} : vector<8x256xf32> to vector<8x128xf32>
    %439 = vector.extract_strided_slice %437 {offsets = [0, 128], sizes = [8, 128], strides = [1, 1]} : vector<8x256xf32> to vector<8x128xf32>
    %440 = arith.select %5, %438, %439 : vector<8x128xi1>, vector<8x128xf32>
    %c7_247 = arith.constant 7 : index
    %c0_248 = arith.constant 0 : index
    %c0_249 = arith.constant 0 : index
    %441 = vector.load %arg10[%c7_247, %c0_248, %c0_249] : memref<8x8x128xf32, #tpu.memory_space<vmem>>, vector<1x8x128xf32>
    %442 = vector.shape_cast %441 : vector<1x8x128xf32> to vector<8x128xf32>
    %443 = arith.addf %440, %442 : vector<8x128xf32>
    %444 = arith.negf %443 : vector<8x128xf32>
    %445 = math.exp %444 : vector<8x128xf32>
    %cst_250 = arith.constant 1.000000e+00 : f32
    %446 = vector.broadcast %cst_250 : f32 to vector<8x128xf32>
    %447 = arith.addf %446, %445 : vector<8x128xf32>
    %448 = arith.divf %446, %447 : vector<8x128xf32>
    %449 = math.tanh %443 : vector<8x128xf32>
    %450 = vector.extract_strided_slice %448 {offsets = [0, 0], sizes = [8, 32], strides = [1, 1]} : vector<8x128xf32> to vector<8x32xf32>
    %451 = vector.extract_strided_slice %448 {offsets = [0, 32], sizes = [8, 32], strides = [1, 1]} : vector<8x128xf32> to vector<8x32xf32>
    %452 = vector.extract_strided_slice %448 {offsets = [0, 96], sizes = [8, 32], strides = [1, 1]} : vector<8x128xf32> to vector<8x32xf32>
    %453 = vector.extract_strided_slice %449 {offsets = [0, 64], sizes = [8, 32], strides = [1, 1]} : vector<8x128xf32> to vector<8x32xf32>
    %454 = arith.mulf %451, %419 : vector<8x32xf32>
    %455 = arith.mulf %450, %453 : vector<8x32xf32>
    %456 = arith.addf %454, %455 : vector<8x32xf32>
    %457 = math.tanh %456 : vector<8x32xf32>
    %458 = arith.mulf %452, %457 : vector<8x32xf32>
    %c7_251 = arith.constant 7 : index
    %c0_252 = arith.constant 0 : index
    %c0_253 = arith.constant 0 : index
    %459 = vector.load %arg7[%c7_251, %c0_252, %c0_253] : memref<8x8x32xf32, #tpu.memory_space<vmem>>, vector<1x8x32xf32>
    %460 = vector.shape_cast %459 : vector<1x8x32xf32> to vector<8x32xf32>
    %cst_254 = arith.constant 1.000000e+00 : f32
    %461 = vector.broadcast %cst_254 : f32 to vector<8x32xf32>
    %462 = arith.subf %461, %460 : vector<8x32xf32>
    %463 = arith.mulf %460, %458 : vector<8x32xf32>
    %464 = arith.mulf %462, %416 : vector<8x32xf32>
    %465 = arith.addf %463, %464 : vector<8x32xf32>
    %466 = vector.extract_strided_slice %463 {offsets = [0, 0], sizes = [4, 32], strides = [1, 1]} : vector<8x32xf32> to vector<4x32xf32>
    %c7_255 = arith.constant 7 : index
    %c0_256 = arith.constant 0 : index
    %c0_257 = arith.constant 0 : index
    %467 = vector.load %arg11[%c7_255, %c0_256, %c0_257] : memref<8x8x64xf32, #tpu.memory_space<vmem>>, vector<1x4x32xf32>
    %468 = vector.shape_cast %467 : vector<1x4x32xf32> to vector<4x32xf32>
    %469 = vector.shape_cast %466 : vector<4x32xf32> to vector<1x4x32xf32>
    tpu.vector_store %arg11[%c7_255, %c0_256, %c0_257], %469 {strides = array<i32>} : memref<8x8x64xf32, #tpu.memory_space<vmem>>, vector<1x4x32xf32>,
    %470 = vector.extract_strided_slice %463 {offsets = [0, 0], sizes = [4, 32], strides = [1, 1]} : vector<8x32xf32> to vector<4x32xf32>
    %c0_258 = arith.constant 0 : index
    %c4_259 = arith.constant 4 : index
    %c0_260 = arith.constant 0 : index
    %471 = vector.load %arg11[%c0_258, %c4_259, %c0_260] : memref<8x8x64xf32, #tpu.memory_space<vmem>>, vector<1x4x32xf32>
    %472 = vector.shape_cast %471 : vector<1x4x32xf32> to vector<4x32xf32>
    %473 = vector.shape_cast %470 : vector<4x32xf32> to vector<1x4x32xf32>
    tpu.vector_store %arg11[%c0_258, %c4_259, %c0_260], %473 {strides = array<i32>} : memref<8x8x64xf32, #tpu.memory_space<vmem>>, vector<1x4x32xf32>,
    %474 = vector.extract_strided_slice %463 {offsets = [4, 0], sizes = [4, 32], strides = [1, 1]} : vector<8x32xf32> to vector<4x32xf32>
    %c0_261 = arith.constant 0 : index
    %c0_262 = arith.constant 0 : index
    %c32_263 = arith.constant 32 : index
    %475 = vector.load %arg11[%c0_261, %c0_262, %c32_263] : memref<8x8x64xf32, #tpu.memory_space<vmem>>, vector<1x4x32xf32>
    %476 = vector.shape_cast %475 : vector<1x4x32xf32> to vector<4x32xf32>
    %477 = vector.shape_cast %474 : vector<4x32xf32> to vector<1x4x32xf32>
    tpu.vector_store %arg11[%c0_261, %c0_262, %c32_263], %477 {strides = array<i32>} : memref<8x8x64xf32, #tpu.memory_space<vmem>>, vector<1x4x32xf32>,
    %478 = vector.extract_strided_slice %463 {offsets = [4, 0], sizes = [4, 32], strides = [1, 1]} : vector<8x32xf32> to vector<4x32xf32>
    %c7_264 = arith.constant 7 : index
    %c4_265 = arith.constant 4 : index
    %c32_266 = arith.constant 32 : index
    %479 = vector.load %arg11[%c7_264, %c4_265, %c32_266] : memref<8x8x64xf32, #tpu.memory_space<vmem>>, vector<1x4x32xf32>
    %480 = vector.shape_cast %479 : vector<1x4x32xf32> to vector<4x32xf32>
    %481 = vector.shape_cast %478 : vector<4x32xf32> to vector<1x4x32xf32>
    tpu.vector_store %arg11[%c7_264, %c4_265, %c32_266], %481 {strides = array<i32>} : memref<8x8x64xf32, #tpu.memory_space<vmem>>, vector<1x4x32xf32>,
    %482 = vector.extract_strided_slice %465 {offsets = [0, 0], sizes = [4, 32], strides = [1, 1]} : vector<8x32xf32> to vector<4x32xf32>
    %c0_267 = arith.constant 0 : index
    %c0_268 = arith.constant 0 : index
    %483 = vector.load %arg9[%c0_267, %c0_268] : memref<4x128xf32, #tpu.memory_space<vmem>>, vector<4x32xf32>
    tpu.vector_store %arg9[%c0_267, %c0_268], %482 {strides = array<i32>} : memref<4x128xf32, #tpu.memory_space<vmem>>, vector<4x32xf32>,
    %484 = vector.extract_strided_slice %465 {offsets = [4, 0], sizes = [4, 32], strides = [1, 1]} : vector<8x32xf32> to vector<4x32xf32>
    %c0_269 = arith.constant 0 : index
    %c32_270 = arith.constant 32 : index
    %485 = vector.load %arg9[%c0_269, %c32_270] : memref<4x128xf32, #tpu.memory_space<vmem>>, vector<4x32xf32>
    tpu.vector_store %arg9[%c0_269, %c32_270], %484 {strides = array<i32>} : memref<4x128xf32, #tpu.memory_space<vmem>>, vector<4x32xf32>,
    %c1_271 = arith.constant 1 : index
    %c0_272 = arith.constant 0 : index
    %c0_273 = arith.constant 0 : index
    %486 = vector.load %arg5[%c1_271, %c0_272, %c0_273] : memref<2x8x32xf32, #tpu.memory_space<vmem>>, vector<1x8x32xf32>
    %487 = vector.shape_cast %486 : vector<1x8x32xf32> to vector<8x32xf32>
    %c1_274 = arith.constant 1 : index
    %c0_275 = arith.constant 0 : index
    %c0_276 = arith.constant 0 : index
    %488 = vector.load %arg6[%c1_274, %c0_275, %c0_276] : memref<2x8x32xf32, #tpu.memory_space<vmem>>, vector<1x8x32xf32>
    %489 = vector.shape_cast %488 : vector<1x8x32xf32> to vector<8x32xf32>
    %c0_277 = arith.constant 0 : index
    %c0_278 = arith.constant 0 : index
    %c0_279 = arith.constant 0 : index
    %490 = vector.load %arg11[%c0_277, %c0_278, %c0_279] : memref<8x8x64xf32, #tpu.memory_space<vmem>>, vector<1x8x64xf32>
    %491 = vector.shape_cast %490 : vector<1x8x64xf32> to vector<8x64xf32>
    %492 = arith.truncf %491 : vector<8x64xf32> to vector<8x64xbf16>
    %cst_280 = arith.constant dense<0.000000e+00> : vector<8x256xf32>
    %493 = tpu.matmul %492, %2, %cst_280 {dimension_numbers = #tpu.dot_dimension_numbers<[1], [0], [0], [1], [0, 0, 1, 1], [], []>} : vector<8x64xbf16>, vector<64x256xbf16>, vector<8x256xf32> -> vector<8x256xf32>
    %494 = arith.truncf %487 : vector<8x32xf32> to vector<8x32xbf16>
    %cst_281 = arith.constant dense<0.000000e+00> : vector<8x256xf32>
    %495 = tpu.matmul %494, %1, %cst_281 {dimension_numbers = #tpu.dot_dimension_numbers<[1], [0], [0], [1], [0, 0, 1, 1], [], []>} : vector<8x32xbf16>, vector<32x256xbf16>, vector<8x256xf32> -> vector<8x256xf32>
    %496 = arith.addf %493, %495 : vector<8x256xf32>
    %497 = arith.addf %496, %8 : vector<8x256xf32>
    %498 = vector.extract_strided_slice %497 {offsets = [0, 0], sizes = [8, 128], strides = [1, 1]} : vector<8x256xf32> to vector<8x128xf32>
    %499 = vector.extract_strided_slice %497 {offsets = [0, 128], sizes = [8, 128], strides = [1, 1]} : vector<8x256xf32> to vector<8x128xf32>
    %500 = arith.select %5, %498, %499 : vector<8x128xi1>, vector<8x128xf32>
    %501 = arith.negf %500 : vector<8x128xf32>
    %502 = math.exp %501 : vector<8x128xf32>
    %cst_282 = arith.constant 1.000000e+00 : f32
    %503 = vector.broadcast %cst_282 : f32 to vector<8x128xf32>
    %504 = arith.addf %503, %502 : vector<8x128xf32>
    %505 = arith.divf %503, %504 : vector<8x128xf32>
    %506 = math.tanh %500 : vector<8x128xf32>
    %507 = vector.extract_strided_slice %505 {offsets = [0, 0], sizes = [8, 32], strides = [1, 1]} : vector<8x128xf32> to vector<8x32xf32>
    %508 = vector.extract_strided_slice %505 {offsets = [0, 32], sizes = [8, 32], strides = [1, 1]} : vector<8x128xf32> to vector<8x32xf32>
    %509 = vector.extract_strided_slice %505 {offsets = [0, 96], sizes = [8, 32], strides = [1, 1]} : vector<8x128xf32> to vector<8x32xf32>
    %510 = vector.extract_strided_slice %506 {offsets = [0, 64], sizes = [8, 32], strides = [1, 1]} : vector<8x128xf32> to vector<8x32xf32>
    %511 = arith.mulf %508, %489 : vector<8x32xf32>
    %512 = arith.mulf %507, %510 : vector<8x32xf32>
    %513 = arith.addf %511, %512 : vector<8x32xf32>
    %514 = math.tanh %513 : vector<8x32xf32>
    %515 = arith.mulf %509, %514 : vector<8x32xf32>
    %c0_283 = arith.constant 0 : index
    %c0_284 = arith.constant 0 : index
    %c0_285 = arith.constant 0 : index
    %516 = vector.load %arg7[%c0_283, %c0_284, %c0_285] : memref<8x8x32xf32, #tpu.memory_space<vmem>>, vector<1x8x32xf32>
    %517 = vector.shape_cast %516 : vector<1x8x32xf32> to vector<8x32xf32>
    %cst_286 = arith.constant 1.000000e+00 : f32
    %518 = vector.broadcast %cst_286 : f32 to vector<8x32xf32>
    %519 = arith.subf %518, %517 : vector<8x32xf32>
    %520 = arith.mulf %517, %515 : vector<8x32xf32>
    %521 = arith.mulf %519, %487 : vector<8x32xf32>
    %522 = arith.addf %520, %521 : vector<8x32xf32>
    %523 = arith.mulf %517, %513 : vector<8x32xf32>
    %524 = arith.mulf %519, %489 : vector<8x32xf32>
    %525 = arith.addf %523, %524 : vector<8x32xf32>
    %526 = vector.extract_strided_slice %520 {offsets = [0, 0], sizes = [4, 32], strides = [1, 1]} : vector<8x32xf32> to vector<4x32xf32>
    %c0_287 = arith.constant 0 : index
    %c0_288 = arith.constant 0 : index
    %c0_289 = arith.constant 0 : index
    %527 = vector.load %arg8[%c0_287, %c0_288, %c0_289] : memref<8x4x64xf32, #tpu.memory_space<vmem>>, vector<1x4x32xf32>
    %528 = vector.shape_cast %527 : vector<1x4x32xf32> to vector<4x32xf32>
    %529 = vector.shape_cast %526 : vector<4x32xf32> to vector<1x4x32xf32>
    tpu.vector_store %arg8[%c0_287, %c0_288, %c0_289], %529 {strides = array<i32>} : memref<8x4x64xf32, #tpu.memory_space<vmem>>, vector<1x4x32xf32>,
    %530 = vector.extract_strided_slice %520 {offsets = [4, 0], sizes = [4, 32], strides = [1, 1]} : vector<8x32xf32> to vector<4x32xf32>
    %c7_290 = arith.constant 7 : index
    %c0_291 = arith.constant 0 : index
    %c32_292 = arith.constant 32 : index
    %531 = vector.load %arg8[%c7_290, %c0_291, %c32_292] : memref<8x4x64xf32, #tpu.memory_space<vmem>>, vector<1x4x32xf32>
    %532 = vector.shape_cast %531 : vector<1x4x32xf32> to vector<4x32xf32>
    %533 = vector.shape_cast %530 : vector<4x32xf32> to vector<1x4x32xf32>
    tpu.vector_store %arg8[%c7_290, %c0_291, %c32_292], %533 {strides = array<i32>} : memref<8x4x64xf32, #tpu.memory_space<vmem>>, vector<1x4x32xf32>,
    %c1_293 = arith.constant 1 : index
    %c0_294 = arith.constant 0 : index
    %c0_295 = arith.constant 0 : index
    %534 = vector.load %arg11[%c1_293, %c0_294, %c0_295] : memref<8x8x64xf32, #tpu.memory_space<vmem>>, vector<1x8x64xf32>
    %535 = vector.shape_cast %534 : vector<1x8x64xf32> to vector<8x64xf32>
    %536 = arith.truncf %535 : vector<8x64xf32> to vector<8x64xbf16>
    %cst_296 = arith.constant dense<0.000000e+00> : vector<8x256xf32>
    %537 = tpu.matmul %536, %2, %cst_296 {dimension_numbers = #tpu.dot_dimension_numbers<[1], [0], [0], [1], [0, 0, 1, 1], [], []>} : vector<8x64xbf16>, vector<64x256xbf16>, vector<8x256xf32> -> vector<8x256xf32>
    %538 = arith.truncf %522 : vector<8x32xf32> to vector<8x32xbf16>
    %cst_297 = arith.constant dense<0.000000e+00> : vector<8x256xf32>
    %539 = tpu.matmul %538, %1, %cst_297 {dimension_numbers = #tpu.dot_dimension_numbers<[1], [0], [0], [1], [0, 0, 1, 1], [], []>} : vector<8x32xbf16>, vector<32x256xbf16>, vector<8x256xf32> -> vector<8x256xf32>
    %540 = arith.addf %537, %539 : vector<8x256xf32>
    %541 = arith.addf %540, %8 : vector<8x256xf32>
    %542 = vector.extract_strided_slice %541 {offsets = [0, 0], sizes = [8, 128], strides = [1, 1]} : vector<8x256xf32> to vector<8x128xf32>
    %543 = vector.extract_strided_slice %541 {offsets = [0, 128], sizes = [8, 128], strides = [1, 1]} : vector<8x256xf32> to vector<8x128xf32>
    %544 = arith.select %5, %542, %543 : vector<8x128xi1>, vector<8x128xf32>
    %545 = arith.negf %544 : vector<8x128xf32>
    %546 = math.exp %545 : vector<8x128xf32>
    %cst_298 = arith.constant 1.000000e+00 : f32
    %547 = vector.broadcast %cst_298 : f32 to vector<8x128xf32>
    %548 = arith.addf %547, %546 : vector<8x128xf32>
    %549 = arith.divf %547, %548 : vector<8x128xf32>
    %550 = math.tanh %544 : vector<8x128xf32>
    %551 = vector.extract_strided_slice %549 {offsets = [0, 0], sizes = [8, 32], strides = [1, 1]} : vector<8x128xf32> to vector<8x32xf32>
    %552 = vector.extract_strided_slice %549 {offsets = [0, 32], sizes = [8, 32], strides = [1, 1]} : vector<8x128xf32> to vector<8x32xf32>
    %553 = vector.extract_strided_slice %549 {offsets = [0, 96], sizes = [8, 32], strides = [1, 1]} : vector<8x128xf32> to vector<8x32xf32>
    %554 = vector.extract_strided_slice %550 {offsets = [0, 64], sizes = [8, 32], strides = [1, 1]} : vector<8x128xf32> to vector<8x32xf32>
    %555 = arith.mulf %552, %525 : vector<8x32xf32>
    %556 = arith.mulf %551, %554 : vector<8x32xf32>
    %557 = arith.addf %555, %556 : vector<8x32xf32>
    %558 = math.tanh %557 : vector<8x32xf32>
    %559 = arith.mulf %553, %558 : vector<8x32xf32>
    %c1_299 = arith.constant 1 : index
    %c0_300 = arith.constant 0 : index
    %c0_301 = arith.constant 0 : index
    %560 = vector.load %arg7[%c1_299, %c0_300, %c0_301] : memref<8x8x32xf32, #tpu.memory_space<vmem>>, vector<1x8x32xf32>
    %561 = vector.shape_cast %560 : vector<1x8x32xf32> to vector<8x32xf32>
    %cst_302 = arith.constant 1.000000e+00 : f32
    %562 = vector.broadcast %cst_302 : f32 to vector<8x32xf32>
    %563 = arith.subf %562, %561 : vector<8x32xf32>
    %564 = arith.mulf %561, %559 : vector<8x32xf32>
    %565 = arith.mulf %563, %522 : vector<8x32xf32>
    %566 = arith.addf %564, %565 : vector<8x32xf32>
    %567 = arith.mulf %561, %557 : vector<8x32xf32>
    %568 = arith.mulf %563, %525 : vector<8x32xf32>
    %569 = arith.addf %567, %568 : vector<8x32xf32>
    %570 = vector.extract_strided_slice %564 {offsets = [0, 0], sizes = [4, 32], strides = [1, 1]} : vector<8x32xf32> to vector<4x32xf32>
    %c1_303 = arith.constant 1 : index
    %c0_304 = arith.constant 0 : index
    %c0_305 = arith.constant 0 : index
    %571 = vector.load %arg8[%c1_303, %c0_304, %c0_305] : memref<8x4x64xf32, #tpu.memory_space<vmem>>, vector<1x4x32xf32>
    %572 = vector.shape_cast %571 : vector<1x4x32xf32> to vector<4x32xf32>
    %573 = vector.shape_cast %570 : vector<4x32xf32> to vector<1x4x32xf32>
    tpu.vector_store %arg8[%c1_303, %c0_304, %c0_305], %573 {strides = array<i32>} : memref<8x4x64xf32, #tpu.memory_space<vmem>>, vector<1x4x32xf32>,
    %574 = vector.extract_strided_slice %564 {offsets = [4, 0], sizes = [4, 32], strides = [1, 1]} : vector<8x32xf32> to vector<4x32xf32>
    %c6_306 = arith.constant 6 : index
    %c0_307 = arith.constant 0 : index
    %c32_308 = arith.constant 32 : index
    %575 = vector.load %arg8[%c6_306, %c0_307, %c32_308] : memref<8x4x64xf32, #tpu.memory_space<vmem>>, vector<1x4x32xf32>
    %576 = vector.shape_cast %575 : vector<1x4x32xf32> to vector<4x32xf32>
    %577 = vector.shape_cast %574 : vector<4x32xf32> to vector<1x4x32xf32>
    tpu.vector_store %arg8[%c6_306, %c0_307, %c32_308], %577 {strides = array<i32>} : memref<8x4x64xf32, #tpu.memory_space<vmem>>, vector<1x4x32xf32>,
    %c2_309 = arith.constant 2 : index
    %c0_310 = arith.constant 0 : index
    %c0_311 = arith.constant 0 : index
    %578 = vector.load %arg11[%c2_309, %c0_310, %c0_311] : memref<8x8x64xf32, #tpu.memory_space<vmem>>, vector<1x8x64xf32>
    %579 = vector.shape_cast %578 : vector<1x8x64xf32> to vector<8x64xf32>
    %580 = arith.truncf %579 : vector<8x64xf32> to vector<8x64xbf16>
    %cst_312 = arith.constant dense<0.000000e+00> : vector<8x256xf32>
    %581 = tpu.matmul %580, %2, %cst_312 {dimension_numbers = #tpu.dot_dimension_numbers<[1], [0], [0], [1], [0, 0, 1, 1], [], []>} : vector<8x64xbf16>, vector<64x256xbf16>, vector<8x256xf32> -> vector<8x256xf32>
    %582 = arith.truncf %566 : vector<8x32xf32> to vector<8x32xbf16>
    %cst_313 = arith.constant dense<0.000000e+00> : vector<8x256xf32>
    %583 = tpu.matmul %582, %1, %cst_313 {dimension_numbers = #tpu.dot_dimension_numbers<[1], [0], [0], [1], [0, 0, 1, 1], [], []>} : vector<8x32xbf16>, vector<32x256xbf16>, vector<8x256xf32> -> vector<8x256xf32>
    %584 = arith.addf %581, %583 : vector<8x256xf32>
    %585 = arith.addf %584, %8 : vector<8x256xf32>
    %586 = vector.extract_strided_slice %585 {offsets = [0, 0], sizes = [8, 128], strides = [1, 1]} : vector<8x256xf32> to vector<8x128xf32>
    %587 = vector.extract_strided_slice %585 {offsets = [0, 128], sizes = [8, 128], strides = [1, 1]} : vector<8x256xf32> to vector<8x128xf32>
    %588 = arith.select %5, %586, %587 : vector<8x128xi1>, vector<8x128xf32>
    %589 = arith.negf %588 : vector<8x128xf32>
    %590 = math.exp %589 : vector<8x128xf32>
    %cst_314 = arith.constant 1.000000e+00 : f32
    %591 = vector.broadcast %cst_314 : f32 to vector<8x128xf32>
    %592 = arith.addf %591, %590 : vector<8x128xf32>
    %593 = arith.divf %591, %592 : vector<8x128xf32>
    %594 = math.tanh %588 : vector<8x128xf32>
    %595 = vector.extract_strided_slice %593 {offsets = [0, 0], sizes = [8, 32], strides = [1, 1]} : vector<8x128xf32> to vector<8x32xf32>
    %596 = vector.extract_strided_slice %593 {offsets = [0, 32], sizes = [8, 32], strides = [1, 1]} : vector<8x128xf32> to vector<8x32xf32>
    %597 = vector.extract_strided_slice %593 {offsets = [0, 96], sizes = [8, 32], strides = [1, 1]} : vector<8x128xf32> to vector<8x32xf32>
    %598 = vector.extract_strided_slice %594 {offsets = [0, 64], sizes = [8, 32], strides = [1, 1]} : vector<8x128xf32> to vector<8x32xf32>
    %599 = arith.mulf %596, %569 : vector<8x32xf32>
    %600 = arith.mulf %595, %598 : vector<8x32xf32>
    %601 = arith.addf %599, %600 : vector<8x32xf32>
    %602 = math.tanh %601 : vector<8x32xf32>
    %603 = arith.mulf %597, %602 : vector<8x32xf32>
    %c2_315 = arith.constant 2 : index
    %c0_316 = arith.constant 0 : index
    %c0_317 = arith.constant 0 : index
    %604 = vector.load %arg7[%c2_315, %c0_316, %c0_317] : memref<8x8x32xf32, #tpu.memory_space<vmem>>, vector<1x8x32xf32>
    %605 = vector.shape_cast %604 : vector<1x8x32xf32> to vector<8x32xf32>
    %cst_318 = arith.constant 1.000000e+00 : f32
    %606 = vector.broadcast %cst_318 : f32 to vector<8x32xf32>
    %607 = arith.subf %606, %605 : vector<8x32xf32>
    %608 = arith.mulf %605, %603 : vector<8x32xf32>
    %609 = arith.mulf %607, %566 : vector<8x32xf32>
    %610 = arith.addf %608, %609 : vector<8x32xf32>
    %611 = arith.mulf %605, %601 : vector<8x32xf32>
    %612 = arith.mulf %607, %569 : vector<8x32xf32>
    %613 = arith.addf %611, %612 : vector<8x32xf32>
    %614 = vector.extract_strided_slice %608 {offsets = [0, 0], sizes = [4, 32], strides = [1, 1]} : vector<8x32xf32> to vector<4x32xf32>
    %c2_319 = arith.constant 2 : index
    %c0_320 = arith.constant 0 : index
    %c0_321 = arith.constant 0 : index
    %615 = vector.load %arg8[%c2_319, %c0_320, %c0_321] : memref<8x4x64xf32, #tpu.memory_space<vmem>>, vector<1x4x32xf32>
    %616 = vector.shape_cast %615 : vector<1x4x32xf32> to vector<4x32xf32>
    %617 = vector.shape_cast %614 : vector<4x32xf32> to vector<1x4x32xf32>
    tpu.vector_store %arg8[%c2_319, %c0_320, %c0_321], %617 {strides = array<i32>} : memref<8x4x64xf32, #tpu.memory_space<vmem>>, vector<1x4x32xf32>,
    %618 = vector.extract_strided_slice %608 {offsets = [4, 0], sizes = [4, 32], strides = [1, 1]} : vector<8x32xf32> to vector<4x32xf32>
    %c5_322 = arith.constant 5 : index
    %c0_323 = arith.constant 0 : index
    %c32_324 = arith.constant 32 : index
    %619 = vector.load %arg8[%c5_322, %c0_323, %c32_324] : memref<8x4x64xf32, #tpu.memory_space<vmem>>, vector<1x4x32xf32>
    %620 = vector.shape_cast %619 : vector<1x4x32xf32> to vector<4x32xf32>
    %621 = vector.shape_cast %618 : vector<4x32xf32> to vector<1x4x32xf32>
    tpu.vector_store %arg8[%c5_322, %c0_323, %c32_324], %621 {strides = array<i32>} : memref<8x4x64xf32, #tpu.memory_space<vmem>>, vector<1x4x32xf32>,
    %c3_325 = arith.constant 3 : index
    %c0_326 = arith.constant 0 : index
    %c0_327 = arith.constant 0 : index
    %622 = vector.load %arg11[%c3_325, %c0_326, %c0_327] : memref<8x8x64xf32, #tpu.memory_space<vmem>>, vector<1x8x64xf32>
    %623 = vector.shape_cast %622 : vector<1x8x64xf32> to vector<8x64xf32>
    %624 = arith.truncf %623 : vector<8x64xf32> to vector<8x64xbf16>
    %cst_328 = arith.constant dense<0.000000e+00> : vector<8x256xf32>
    %625 = tpu.matmul %624, %2, %cst_328 {dimension_numbers = #tpu.dot_dimension_numbers<[1], [0], [0], [1], [0, 0, 1, 1], [], []>} : vector<8x64xbf16>, vector<64x256xbf16>, vector<8x256xf32> -> vector<8x256xf32>
    %626 = arith.truncf %610 : vector<8x32xf32> to vector<8x32xbf16>
    %cst_329 = arith.constant dense<0.000000e+00> : vector<8x256xf32>
    %627 = tpu.matmul %626, %1, %cst_329 {dimension_numbers = #tpu.dot_dimension_numbers<[1], [0], [0], [1], [0, 0, 1, 1], [], []>} : vector<8x32xbf16>, vector<32x256xbf16>, vector<8x256xf32> -> vector<8x256xf32>
    %628 = arith.addf %625, %627 : vector<8x256xf32>
    %629 = arith.addf %628, %8 : vector<8x256xf32>
    %630 = vector.extract_strided_slice %629 {offsets = [0, 0], sizes = [8, 128], strides = [1, 1]} : vector<8x256xf32> to vector<8x128xf32>
    %631 = vector.extract_strided_slice %629 {offsets = [0, 128], sizes = [8, 128], strides = [1, 1]} : vector<8x256xf32> to vector<8x128xf32>
    %632 = arith.select %5, %630, %631 : vector<8x128xi1>, vector<8x128xf32>
    %633 = arith.negf %632 : vector<8x128xf32>
    %634 = math.exp %633 : vector<8x128xf32>
    %cst_330 = arith.constant 1.000000e+00 : f32
    %635 = vector.broadcast %cst_330 : f32 to vector<8x128xf32>
    %636 = arith.addf %635, %634 : vector<8x128xf32>
    %637 = arith.divf %635, %636 : vector<8x128xf32>
    %638 = math.tanh %632 : vector<8x128xf32>
    %639 = vector.extract_strided_slice %637 {offsets = [0, 0], sizes = [8, 32], strides = [1, 1]} : vector<8x128xf32> to vector<8x32xf32>
    %640 = vector.extract_strided_slice %637 {offsets = [0, 32], sizes = [8, 32], strides = [1, 1]} : vector<8x128xf32> to vector<8x32xf32>
    %641 = vector.extract_strided_slice %637 {offsets = [0, 96], sizes = [8, 32], strides = [1, 1]} : vector<8x128xf32> to vector<8x32xf32>
    %642 = vector.extract_strided_slice %638 {offsets = [0, 64], sizes = [8, 32], strides = [1, 1]} : vector<8x128xf32> to vector<8x32xf32>
    %643 = arith.mulf %640, %613 : vector<8x32xf32>
    %644 = arith.mulf %639, %642 : vector<8x32xf32>
    %645 = arith.addf %643, %644 : vector<8x32xf32>
    %646 = math.tanh %645 : vector<8x32xf32>
    %647 = arith.mulf %641, %646 : vector<8x32xf32>
    %c3_331 = arith.constant 3 : index
    %c0_332 = arith.constant 0 : index
    %c0_333 = arith.constant 0 : index
    %648 = vector.load %arg7[%c3_331, %c0_332, %c0_333] : memref<8x8x32xf32, #tpu.memory_space<vmem>>, vector<1x8x32xf32>
    %649 = vector.shape_cast %648 : vector<1x8x32xf32> to vector<8x32xf32>
    %cst_334 = arith.constant 1.000000e+00 : f32
    %650 = vector.broadcast %cst_334 : f32 to vector<8x32xf32>
    %651 = arith.subf %650, %649 : vector<8x32xf32>
    %652 = arith.mulf %649, %647 : vector<8x32xf32>
    %653 = arith.mulf %651, %610 : vector<8x32xf32>
    %654 = arith.addf %652, %653 : vector<8x32xf32>
    %655 = arith.mulf %649, %645 : vector<8x32xf32>
    %656 = arith.mulf %651, %613 : vector<8x32xf32>
    %657 = arith.addf %655, %656 : vector<8x32xf32>
    %658 = vector.extract_strided_slice %652 {offsets = [0, 0], sizes = [4, 32], strides = [1, 1]} : vector<8x32xf32> to vector<4x32xf32>
    %c3_335 = arith.constant 3 : index
    %c0_336 = arith.constant 0 : index
    %c0_337 = arith.constant 0 : index
    %659 = vector.load %arg8[%c3_335, %c0_336, %c0_337] : memref<8x4x64xf32, #tpu.memory_space<vmem>>, vector<1x4x32xf32>
    %660 = vector.shape_cast %659 : vector<1x4x32xf32> to vector<4x32xf32>
    %661 = vector.shape_cast %658 : vector<4x32xf32> to vector<1x4x32xf32>
    tpu.vector_store %arg8[%c3_335, %c0_336, %c0_337], %661 {strides = array<i32>} : memref<8x4x64xf32, #tpu.memory_space<vmem>>, vector<1x4x32xf32>,
    %662 = vector.extract_strided_slice %652 {offsets = [4, 0], sizes = [4, 32], strides = [1, 1]} : vector<8x32xf32> to vector<4x32xf32>
    %c4_338 = arith.constant 4 : index
    %c0_339 = arith.constant 0 : index
    %c32_340 = arith.constant 32 : index
    %663 = vector.load %arg8[%c4_338, %c0_339, %c32_340] : memref<8x4x64xf32, #tpu.memory_space<vmem>>, vector<1x4x32xf32>
    %664 = vector.shape_cast %663 : vector<1x4x32xf32> to vector<4x32xf32>
    %665 = vector.shape_cast %662 : vector<4x32xf32> to vector<1x4x32xf32>
    tpu.vector_store %arg8[%c4_338, %c0_339, %c32_340], %665 {strides = array<i32>} : memref<8x4x64xf32, #tpu.memory_space<vmem>>, vector<1x4x32xf32>,
    %c4_341 = arith.constant 4 : index
    %c0_342 = arith.constant 0 : index
    %c0_343 = arith.constant 0 : index
    %666 = vector.load %arg11[%c4_341, %c0_342, %c0_343] : memref<8x8x64xf32, #tpu.memory_space<vmem>>, vector<1x8x64xf32>
    %667 = vector.shape_cast %666 : vector<1x8x64xf32> to vector<8x64xf32>
    %668 = arith.truncf %667 : vector<8x64xf32> to vector<8x64xbf16>
    %cst_344 = arith.constant dense<0.000000e+00> : vector<8x256xf32>
    %669 = tpu.matmul %668, %2, %cst_344 {dimension_numbers = #tpu.dot_dimension_numbers<[1], [0], [0], [1], [0, 0, 1, 1], [], []>} : vector<8x64xbf16>, vector<64x256xbf16>, vector<8x256xf32> -> vector<8x256xf32>
    %670 = arith.truncf %654 : vector<8x32xf32> to vector<8x32xbf16>
    %cst_345 = arith.constant dense<0.000000e+00> : vector<8x256xf32>
    %671 = tpu.matmul %670, %1, %cst_345 {dimension_numbers = #tpu.dot_dimension_numbers<[1], [0], [0], [1], [0, 0, 1, 1], [], []>} : vector<8x32xbf16>, vector<32x256xbf16>, vector<8x256xf32> -> vector<8x256xf32>
    %672 = arith.addf %669, %671 : vector<8x256xf32>
    %673 = arith.addf %672, %8 : vector<8x256xf32>
    %674 = vector.extract_strided_slice %673 {offsets = [0, 0], sizes = [8, 128], strides = [1, 1]} : vector<8x256xf32> to vector<8x128xf32>
    %675 = vector.extract_strided_slice %673 {offsets = [0, 128], sizes = [8, 128], strides = [1, 1]} : vector<8x256xf32> to vector<8x128xf32>
    %676 = arith.select %5, %674, %675 : vector<8x128xi1>, vector<8x128xf32>
    %677 = arith.negf %676 : vector<8x128xf32>
    %678 = math.exp %677 : vector<8x128xf32>
    %cst_346 = arith.constant 1.000000e+00 : f32
    %679 = vector.broadcast %cst_346 : f32 to vector<8x128xf32>
    %680 = arith.addf %679, %678 : vector<8x128xf32>
    %681 = arith.divf %679, %680 : vector<8x128xf32>
    %682 = math.tanh %676 : vector<8x128xf32>
    %683 = vector.extract_strided_slice %681 {offsets = [0, 0], sizes = [8, 32], strides = [1, 1]} : vector<8x128xf32> to vector<8x32xf32>
    %684 = vector.extract_strided_slice %681 {offsets = [0, 32], sizes = [8, 32], strides = [1, 1]} : vector<8x128xf32> to vector<8x32xf32>
    %685 = vector.extract_strided_slice %681 {offsets = [0, 96], sizes = [8, 32], strides = [1, 1]} : vector<8x128xf32> to vector<8x32xf32>
    %686 = vector.extract_strided_slice %682 {offsets = [0, 64], sizes = [8, 32], strides = [1, 1]} : vector<8x128xf32> to vector<8x32xf32>
    %687 = arith.mulf %684, %657 : vector<8x32xf32>
    %688 = arith.mulf %683, %686 : vector<8x32xf32>
    %689 = arith.addf %687, %688 : vector<8x32xf32>
    %690 = math.tanh %689 : vector<8x32xf32>
    %691 = arith.mulf %685, %690 : vector<8x32xf32>
    %c4_347 = arith.constant 4 : index
    %c0_348 = arith.constant 0 : index
    %c0_349 = arith.constant 0 : index
    %692 = vector.load %arg7[%c4_347, %c0_348, %c0_349] : memref<8x8x32xf32, #tpu.memory_space<vmem>>, vector<1x8x32xf32>
    %693 = vector.shape_cast %692 : vector<1x8x32xf32> to vector<8x32xf32>
    %cst_350 = arith.constant 1.000000e+00 : f32
    %694 = vector.broadcast %cst_350 : f32 to vector<8x32xf32>
    %695 = arith.subf %694, %693 : vector<8x32xf32>
    %696 = arith.mulf %693, %691 : vector<8x32xf32>
    %697 = arith.mulf %695, %654 : vector<8x32xf32>
    %698 = arith.addf %696, %697 : vector<8x32xf32>
    %699 = arith.mulf %693, %689 : vector<8x32xf32>
    %700 = arith.mulf %695, %657 : vector<8x32xf32>
    %701 = arith.addf %699, %700 : vector<8x32xf32>
    %702 = vector.extract_strided_slice %696 {offsets = [0, 0], sizes = [4, 32], strides = [1, 1]} : vector<8x32xf32> to vector<4x32xf32>
    %c4_351 = arith.constant 4 : index
    %c0_352 = arith.constant 0 : index
    %c0_353 = arith.constant 0 : index
    %703 = vector.load %arg8[%c4_351, %c0_352, %c0_353] : memref<8x4x64xf32, #tpu.memory_space<vmem>>, vector<1x4x32xf32>
    %704 = vector.shape_cast %703 : vector<1x4x32xf32> to vector<4x32xf32>
    %705 = vector.shape_cast %702 : vector<4x32xf32> to vector<1x4x32xf32>
    tpu.vector_store %arg8[%c4_351, %c0_352, %c0_353], %705 {strides = array<i32>} : memref<8x4x64xf32, #tpu.memory_space<vmem>>, vector<1x4x32xf32>,
    %706 = vector.extract_strided_slice %696 {offsets = [4, 0], sizes = [4, 32], strides = [1, 1]} : vector<8x32xf32> to vector<4x32xf32>
    %c3_354 = arith.constant 3 : index
    %c0_355 = arith.constant 0 : index
    %c32_356 = arith.constant 32 : index
    %707 = vector.load %arg8[%c3_354, %c0_355, %c32_356] : memref<8x4x64xf32, #tpu.memory_space<vmem>>, vector<1x4x32xf32>
    %708 = vector.shape_cast %707 : vector<1x4x32xf32> to vector<4x32xf32>
    %709 = vector.shape_cast %706 : vector<4x32xf32> to vector<1x4x32xf32>
    tpu.vector_store %arg8[%c3_354, %c0_355, %c32_356], %709 {strides = array<i32>} : memref<8x4x64xf32, #tpu.memory_space<vmem>>, vector<1x4x32xf32>,
    %c5_357 = arith.constant 5 : index
    %c0_358 = arith.constant 0 : index
    %c0_359 = arith.constant 0 : index
    %710 = vector.load %arg11[%c5_357, %c0_358, %c0_359] : memref<8x8x64xf32, #tpu.memory_space<vmem>>, vector<1x8x64xf32>
    %711 = vector.shape_cast %710 : vector<1x8x64xf32> to vector<8x64xf32>
    %712 = arith.truncf %711 : vector<8x64xf32> to vector<8x64xbf16>
    %cst_360 = arith.constant dense<0.000000e+00> : vector<8x256xf32>
    %713 = tpu.matmul %712, %2, %cst_360 {dimension_numbers = #tpu.dot_dimension_numbers<[1], [0], [0], [1], [0, 0, 1, 1], [], []>} : vector<8x64xbf16>, vector<64x256xbf16>, vector<8x256xf32> -> vector<8x256xf32>
    %714 = arith.truncf %698 : vector<8x32xf32> to vector<8x32xbf16>
    %cst_361 = arith.constant dense<0.000000e+00> : vector<8x256xf32>
    %715 = tpu.matmul %714, %1, %cst_361 {dimension_numbers = #tpu.dot_dimension_numbers<[1], [0], [0], [1], [0, 0, 1, 1], [], []>} : vector<8x32xbf16>, vector<32x256xbf16>, vector<8x256xf32> -> vector<8x256xf32>
    %716 = arith.addf %713, %715 : vector<8x256xf32>
    %717 = arith.addf %716, %8 : vector<8x256xf32>
    %718 = vector.extract_strided_slice %717 {offsets = [0, 0], sizes = [8, 128], strides = [1, 1]} : vector<8x256xf32> to vector<8x128xf32>
    %719 = vector.extract_strided_slice %717 {offsets = [0, 128], sizes = [8, 128], strides = [1, 1]} : vector<8x256xf32> to vector<8x128xf32>
    %720 = arith.select %5, %718, %719 : vector<8x128xi1>, vector<8x128xf32>
    %721 = arith.negf %720 : vector<8x128xf32>
    %722 = math.exp %721 : vector<8x128xf32>
    %cst_362 = arith.constant 1.000000e+00 : f32
    %723 = vector.broadcast %cst_362 : f32 to vector<8x128xf32>
    %724 = arith.addf %723, %722 : vector<8x128xf32>
    %725 = arith.divf %723, %724 : vector<8x128xf32>
    %726 = math.tanh %720 : vector<8x128xf32>
    %727 = vector.extract_strided_slice %725 {offsets = [0, 0], sizes = [8, 32], strides = [1, 1]} : vector<8x128xf32> to vector<8x32xf32>
    %728 = vector.extract_strided_slice %725 {offsets = [0, 32], sizes = [8, 32], strides = [1, 1]} : vector<8x128xf32> to vector<8x32xf32>
    %729 = vector.extract_strided_slice %725 {offsets = [0, 96], sizes = [8, 32], strides = [1, 1]} : vector<8x128xf32> to vector<8x32xf32>
    %730 = vector.extract_strided_slice %726 {offsets = [0, 64], sizes = [8, 32], strides = [1, 1]} : vector<8x128xf32> to vector<8x32xf32>
    %731 = arith.mulf %728, %701 : vector<8x32xf32>
    %732 = arith.mulf %727, %730 : vector<8x32xf32>
    %733 = arith.addf %731, %732 : vector<8x32xf32>
    %734 = math.tanh %733 : vector<8x32xf32>
    %735 = arith.mulf %729, %734 : vector<8x32xf32>
    %c5_363 = arith.constant 5 : index
    %c0_364 = arith.constant 0 : index
    %c0_365 = arith.constant 0 : index
    %736 = vector.load %arg7[%c5_363, %c0_364, %c0_365] : memref<8x8x32xf32, #tpu.memory_space<vmem>>, vector<1x8x32xf32>
    %737 = vector.shape_cast %736 : vector<1x8x32xf32> to vector<8x32xf32>
    %cst_366 = arith.constant 1.000000e+00 : f32
    %738 = vector.broadcast %cst_366 : f32 to vector<8x32xf32>
    %739 = arith.subf %738, %737 : vector<8x32xf32>
    %740 = arith.mulf %737, %735 : vector<8x32xf32>
    %741 = arith.mulf %739, %698 : vector<8x32xf32>
    %742 = arith.addf %740, %741 : vector<8x32xf32>
    %743 = arith.mulf %737, %733 : vector<8x32xf32>
    %744 = arith.mulf %739, %701 : vector<8x32xf32>
    %745 = arith.addf %743, %744 : vector<8x32xf32>
    %746 = vector.extract_strided_slice %740 {offsets = [0, 0], sizes = [4, 32], strides = [1, 1]} : vector<8x32xf32> to vector<4x32xf32>
    %c5_367 = arith.constant 5 : index
    %c0_368 = arith.constant 0 : index
    %c0_369 = arith.constant 0 : index
    %747 = vector.load %arg8[%c5_367, %c0_368, %c0_369] : memref<8x4x64xf32, #tpu.memory_space<vmem>>, vector<1x4x32xf32>
    %748 = vector.shape_cast %747 : vector<1x4x32xf32> to vector<4x32xf32>
    %749 = vector.shape_cast %746 : vector<4x32xf32> to vector<1x4x32xf32>
    tpu.vector_store %arg8[%c5_367, %c0_368, %c0_369], %749 {strides = array<i32>} : memref<8x4x64xf32, #tpu.memory_space<vmem>>, vector<1x4x32xf32>,
    %750 = vector.extract_strided_slice %740 {offsets = [4, 0], sizes = [4, 32], strides = [1, 1]} : vector<8x32xf32> to vector<4x32xf32>
    %c2_370 = arith.constant 2 : index
    %c0_371 = arith.constant 0 : index
    %c32_372 = arith.constant 32 : index
    %751 = vector.load %arg8[%c2_370, %c0_371, %c32_372] : memref<8x4x64xf32, #tpu.memory_space<vmem>>, vector<1x4x32xf32>
    %752 = vector.shape_cast %751 : vector<1x4x32xf32> to vector<4x32xf32>
    %753 = vector.shape_cast %750 : vector<4x32xf32> to vector<1x4x32xf32>
    tpu.vector_store %arg8[%c2_370, %c0_371, %c32_372], %753 {strides = array<i32>} : memref<8x4x64xf32, #tpu.memory_space<vmem>>, vector<1x4x32xf32>,
    %c6_373 = arith.constant 6 : index
    %c0_374 = arith.constant 0 : index
    %c0_375 = arith.constant 0 : index
    %754 = vector.load %arg11[%c6_373, %c0_374, %c0_375] : memref<8x8x64xf32, #tpu.memory_space<vmem>>, vector<1x8x64xf32>
    %755 = vector.shape_cast %754 : vector<1x8x64xf32> to vector<8x64xf32>
    %756 = arith.truncf %755 : vector<8x64xf32> to vector<8x64xbf16>
    %cst_376 = arith.constant dense<0.000000e+00> : vector<8x256xf32>
    %757 = tpu.matmul %756, %2, %cst_376 {dimension_numbers = #tpu.dot_dimension_numbers<[1], [0], [0], [1], [0, 0, 1, 1], [], []>} : vector<8x64xbf16>, vector<64x256xbf16>, vector<8x256xf32> -> vector<8x256xf32>
    %758 = arith.truncf %742 : vector<8x32xf32> to vector<8x32xbf16>
    %cst_377 = arith.constant dense<0.000000e+00> : vector<8x256xf32>
    %759 = tpu.matmul %758, %1, %cst_377 {dimension_numbers = #tpu.dot_dimension_numbers<[1], [0], [0], [1], [0, 0, 1, 1], [], []>} : vector<8x32xbf16>, vector<32x256xbf16>, vector<8x256xf32> -> vector<8x256xf32>
    %760 = arith.addf %757, %759 : vector<8x256xf32>
    %761 = arith.addf %760, %8 : vector<8x256xf32>
    %762 = vector.extract_strided_slice %761 {offsets = [0, 0], sizes = [8, 128], strides = [1, 1]} : vector<8x256xf32> to vector<8x128xf32>
    %763 = vector.extract_strided_slice %761 {offsets = [0, 128], sizes = [8, 128], strides = [1, 1]} : vector<8x256xf32> to vector<8x128xf32>
    %764 = arith.select %5, %762, %763 : vector<8x128xi1>, vector<8x128xf32>
    %765 = arith.negf %764 : vector<8x128xf32>
    %766 = math.exp %765 : vector<8x128xf32>
    %cst_378 = arith.constant 1.000000e+00 : f32
    %767 = vector.broadcast %cst_378 : f32 to vector<8x128xf32>
    %768 = arith.addf %767, %766 : vector<8x128xf32>
    %769 = arith.divf %767, %768 : vector<8x128xf32>
    %770 = math.tanh %764 : vector<8x128xf32>
    %771 = vector.extract_strided_slice %769 {offsets = [0, 0], sizes = [8, 32], strides = [1, 1]} : vector<8x128xf32> to vector<8x32xf32>
    %772 = vector.extract_strided_slice %769 {offsets = [0, 32], sizes = [8, 32], strides = [1, 1]} : vector<8x128xf32> to vector<8x32xf32>
    %773 = vector.extract_strided_slice %769 {offsets = [0, 96], sizes = [8, 32], strides = [1, 1]} : vector<8x128xf32> to vector<8x32xf32>
    %774 = vector.extract_strided_slice %770 {offsets = [0, 64], sizes = [8, 32], strides = [1, 1]} : vector<8x128xf32> to vector<8x32xf32>
    %775 = arith.mulf %772, %745 : vector<8x32xf32>
    %776 = arith.mulf %771, %774 : vector<8x32xf32>
    %777 = arith.addf %775, %776 : vector<8x32xf32>
    %778 = math.tanh %777 : vector<8x32xf32>
    %779 = arith.mulf %773, %778 : vector<8x32xf32>
    %c6_379 = arith.constant 6 : index
    %c0_380 = arith.constant 0 : index
    %c0_381 = arith.constant 0 : index
    %780 = vector.load %arg7[%c6_379, %c0_380, %c0_381] : memref<8x8x32xf32, #tpu.memory_space<vmem>>, vector<1x8x32xf32>
    %781 = vector.shape_cast %780 : vector<1x8x32xf32> to vector<8x32xf32>
    %cst_382 = arith.constant 1.000000e+00 : f32
    %782 = vector.broadcast %cst_382 : f32 to vector<8x32xf32>
    %783 = arith.subf %782, %781 : vector<8x32xf32>
    %784 = arith.mulf %781, %779 : vector<8x32xf32>
    %785 = arith.mulf %783, %742 : vector<8x32xf32>
    %786 = arith.addf %784, %785 : vector<8x32xf32>
    %787 = arith.mulf %781, %777 : vector<8x32xf32>
    %788 = arith.mulf %783, %745 : vector<8x32xf32>
    %789 = arith.addf %787, %788 : vector<8x32xf32>
    %790 = vector.extract_strided_slice %784 {offsets = [0, 0], sizes = [4, 32], strides = [1, 1]} : vector<8x32xf32> to vector<4x32xf32>
    %c6_383 = arith.constant 6 : index
    %c0_384 = arith.constant 0 : index
    %c0_385 = arith.constant 0 : index
    %791 = vector.load %arg8[%c6_383, %c0_384, %c0_385] : memref<8x4x64xf32, #tpu.memory_space<vmem>>, vector<1x4x32xf32>
    %792 = vector.shape_cast %791 : vector<1x4x32xf32> to vector<4x32xf32>
    %793 = vector.shape_cast %790 : vector<4x32xf32> to vector<1x4x32xf32>
    tpu.vector_store %arg8[%c6_383, %c0_384, %c0_385], %793 {strides = array<i32>} : memref<8x4x64xf32, #tpu.memory_space<vmem>>, vector<1x4x32xf32>,
    %794 = vector.extract_strided_slice %784 {offsets = [4, 0], sizes = [4, 32], strides = [1, 1]} : vector<8x32xf32> to vector<4x32xf32>
    %c1_386 = arith.constant 1 : index
    %c0_387 = arith.constant 0 : index
    %c32_388 = arith.constant 32 : index
    %795 = vector.load %arg8[%c1_386, %c0_387, %c32_388] : memref<8x4x64xf32, #tpu.memory_space<vmem>>, vector<1x4x32xf32>
    %796 = vector.shape_cast %795 : vector<1x4x32xf32> to vector<4x32xf32>
    %797 = vector.shape_cast %794 : vector<4x32xf32> to vector<1x4x32xf32>
    tpu.vector_store %arg8[%c1_386, %c0_387, %c32_388], %797 {strides = array<i32>} : memref<8x4x64xf32, #tpu.memory_space<vmem>>, vector<1x4x32xf32>,
    %c7_389 = arith.constant 7 : index
    %c0_390 = arith.constant 0 : index
    %c0_391 = arith.constant 0 : index
    %798 = vector.load %arg11[%c7_389, %c0_390, %c0_391] : memref<8x8x64xf32, #tpu.memory_space<vmem>>, vector<1x8x64xf32>
    %799 = vector.shape_cast %798 : vector<1x8x64xf32> to vector<8x64xf32>
    %800 = arith.truncf %799 : vector<8x64xf32> to vector<8x64xbf16>
    %cst_392 = arith.constant dense<0.000000e+00> : vector<8x256xf32>
    %801 = tpu.matmul %800, %2, %cst_392 {dimension_numbers = #tpu.dot_dimension_numbers<[1], [0], [0], [1], [0, 0, 1, 1], [], []>} : vector<8x64xbf16>, vector<64x256xbf16>, vector<8x256xf32> -> vector<8x256xf32>
    %802 = arith.truncf %786 : vector<8x32xf32> to vector<8x32xbf16>
    %cst_393 = arith.constant dense<0.000000e+00> : vector<8x256xf32>
    %803 = tpu.matmul %802, %1, %cst_393 {dimension_numbers = #tpu.dot_dimension_numbers<[1], [0], [0], [1], [0, 0, 1, 1], [], []>} : vector<8x32xbf16>, vector<32x256xbf16>, vector<8x256xf32> -> vector<8x256xf32>
    %804 = arith.addf %801, %803 : vector<8x256xf32>
    %805 = arith.addf %804, %8 : vector<8x256xf32>
    %806 = vector.extract_strided_slice %805 {offsets = [0, 0], sizes = [8, 128], strides = [1, 1]} : vector<8x256xf32> to vector<8x128xf32>
    %807 = vector.extract_strided_slice %805 {offsets = [0, 128], sizes = [8, 128], strides = [1, 1]} : vector<8x256xf32> to vector<8x128xf32>
    %808 = arith.select %5, %806, %807 : vector<8x128xi1>, vector<8x128xf32>
    %809 = arith.negf %808 : vector<8x128xf32>
    %810 = math.exp %809 : vector<8x128xf32>
    %cst_394 = arith.constant 1.000000e+00 : f32
    %811 = vector.broadcast %cst_394 : f32 to vector<8x128xf32>
    %812 = arith.addf %811, %810 : vector<8x128xf32>
    %813 = arith.divf %811, %812 : vector<8x128xf32>
    %814 = math.tanh %808 : vector<8x128xf32>
    %815 = vector.extract_strided_slice %813 {offsets = [0, 0], sizes = [8, 32], strides = [1, 1]} : vector<8x128xf32> to vector<8x32xf32>
    %816 = vector.extract_strided_slice %813 {offsets = [0, 32], sizes = [8, 32], strides = [1, 1]} : vector<8x128xf32> to vector<8x32xf32>
    %817 = vector.extract_strided_slice %813 {offsets = [0, 96], sizes = [8, 32], strides = [1, 1]} : vector<8x128xf32> to vector<8x32xf32>
    %818 = vector.extract_strided_slice %814 {offsets = [0, 64], sizes = [8, 32], strides = [1, 1]} : vector<8x128xf32> to vector<8x32xf32>
    %819 = arith.mulf %816, %789 : vector<8x32xf32>
    %820 = arith.mulf %815, %818 : vector<8x32xf32>
    %821 = arith.addf %819, %820 : vector<8x32xf32>
    %822 = math.tanh %821 : vector<8x32xf32>
    %823 = arith.mulf %817, %822 : vector<8x32xf32>
    %c7_395 = arith.constant 7 : index
    %c0_396 = arith.constant 0 : index
    %c0_397 = arith.constant 0 : index
    %824 = vector.load %arg7[%c7_395, %c0_396, %c0_397] : memref<8x8x32xf32, #tpu.memory_space<vmem>>, vector<1x8x32xf32>
    %825 = vector.shape_cast %824 : vector<1x8x32xf32> to vector<8x32xf32>
    %cst_398 = arith.constant 1.000000e+00 : f32
    %826 = vector.broadcast %cst_398 : f32 to vector<8x32xf32>
    %827 = arith.subf %826, %825 : vector<8x32xf32>
    %828 = arith.mulf %825, %823 : vector<8x32xf32>
    %829 = arith.mulf %827, %786 : vector<8x32xf32>
    %830 = arith.addf %828, %829 : vector<8x32xf32>
    %831 = vector.extract_strided_slice %828 {offsets = [0, 0], sizes = [4, 32], strides = [1, 1]} : vector<8x32xf32> to vector<4x32xf32>
    %c7_399 = arith.constant 7 : index
    %c0_400 = arith.constant 0 : index
    %c0_401 = arith.constant 0 : index
    %832 = vector.load %arg8[%c7_399, %c0_400, %c0_401] : memref<8x4x64xf32, #tpu.memory_space<vmem>>, vector<1x4x32xf32>
    %833 = vector.shape_cast %832 : vector<1x4x32xf32> to vector<4x32xf32>
    %834 = vector.shape_cast %831 : vector<4x32xf32> to vector<1x4x32xf32>
    tpu.vector_store %arg8[%c7_399, %c0_400, %c0_401], %834 {strides = array<i32>} : memref<8x4x64xf32, #tpu.memory_space<vmem>>, vector<1x4x32xf32>,
    %835 = vector.extract_strided_slice %828 {offsets = [4, 0], sizes = [4, 32], strides = [1, 1]} : vector<8x32xf32> to vector<4x32xf32>
    %c0_402 = arith.constant 0 : index
    %c0_403 = arith.constant 0 : index
    %c32_404 = arith.constant 32 : index
    %836 = vector.load %arg8[%c0_402, %c0_403, %c32_404] : memref<8x4x64xf32, #tpu.memory_space<vmem>>, vector<1x4x32xf32>
    %837 = vector.shape_cast %836 : vector<1x4x32xf32> to vector<4x32xf32>
    %838 = vector.shape_cast %835 : vector<4x32xf32> to vector<1x4x32xf32>
    tpu.vector_store %arg8[%c0_402, %c0_403, %c32_404], %838 {strides = array<i32>} : memref<8x4x64xf32, #tpu.memory_space<vmem>>, vector<1x4x32xf32>,
    %839 = vector.extract_strided_slice %830 {offsets = [0, 0], sizes = [4, 32], strides = [1, 1]} : vector<8x32xf32> to vector<4x32xf32>
    %c0_405 = arith.constant 0 : index
    %c64 = arith.constant 64 : index
    %840 = vector.load %arg9[%c0_405, %c64] : memref<4x128xf32, #tpu.memory_space<vmem>>, vector<4x32xf32>
    tpu.vector_store %arg9[%c0_405, %c64], %839 {strides = array<i32>} : memref<4x128xf32, #tpu.memory_space<vmem>>, vector<4x32xf32>,
    %841 = vector.extract_strided_slice %830 {offsets = [4, 0], sizes = [4, 32], strides = [1, 1]} : vector<8x32xf32> to vector<4x32xf32>
    %c0_406 = arith.constant 0 : index
    %c96 = arith.constant 96 : index
    %842 = vector.load %arg9[%c0_406, %c96] : memref<4x128xf32, #tpu.memory_space<vmem>>, vector<4x32xf32>
    tpu.vector_store %arg9[%c0_406, %c96], %841 {strides = array<i32>} : memref<4x128xf32, #tpu.memory_space<vmem>>, vector<4x32xf32>,
    return
  }
}

</mosaic_0001>

<bundles_post_ra>
// kernel: lstm_forward_pallas.1
= control target key start
LH: loop header
LB: loop body
LE: loop exit
PB: predicated region body
PF: predicated region fallthrough
CT: control target
= control target key end

     0   :  { %v2482_v2 = vmov 0   ;;  %s3373_s0 = inlined_call_operand.vmem [shape: f32[8,4,256], index: 0, kind: input, shape index: {}]   ;;  %s3374_s1 = inlined_call_operand.vmem [shape: bf16[64,256], index: 1, kind: input, shape index: {}]   ;;  %s3375_s2 = inlined_call_operand.vmem [shape: bf16[32,256], index: 2, kind: input, shape index: {}]   ;;  %s3376_s3 = inlined_call_operand.vmem [shape: bf16[32,256], index: 3, kind: input, shape index: {}]   ;;  %s3377_s4 = inlined_call_operand.vmem [shape: f32[1,256], index: 4, kind: input, shape index: {}]   ;;  %s3378_s5 = inlined_call_operand.vmem [shape: f32[2,8,32], index: 5, kind: input, shape index: {}]   ;;  %s3379_s6 = inlined_call_operand.vmem [shape: f32[2,8,32], index: 6, kind: input, shape index: {}]   ;;  %s3380_s7 = inlined_call_operand.vmem [shape: f32[8,8,32], index: 7, kind: input, shape index: {}]   ;;  %s3381_s8 = inlined_call_operand.vmem [shape: f32[8,4,64], index: 8, kind: output, shape index: {0}]   ;;  %s3382_s9 = inlined_call_operand.hbm [shape: f32[4,128], index: 9, kind: output, shape index: {1}]  }
   0x1   :  { %v2540_v0 = vld [vmem:[%s3375_s2 + $0x4] ss:$8 sps:$4 sm:$0xff]   ;;  %v2545_v1 = vld [vmem:[%s3375_s2] ss:$8 sps:$4 sm:$0xff]   ;;  %169 = vmatprep.mubr.bf16.mxu1 %v2482_v2  ;;  %375 = vmatprep.mubr.bf16.mxu0 %v2482_v2  ;;  %v2553_v3 = vld [vmem:[%s3375_s2 + $0x14] ss:$8 sps:$4 sm:$0xff]  }
   0x2   :  { %137 = vmatprep.subr.bf16.mxu1 %v2540_v0  ;;  %v2558_v4 = vld [vmem:[%s3375_s2 + $0x10] ss:$8 sps:$4 sm:$0xff]   ;;  %v2563_v5 = vld [vmem:[%s3378_s5] sm:$0xff]  ;;  %343 = vmatprep.subr.bf16.mxu0 %v2540_v0 }
   0x3   :  { %138 = vmatpush1.bf16.msra.mxu1 %v2545_v1  ;;  %344 = vmatpush1.bf16.msra.mxu0 %v2545_v1  ;;  %v112_v6 = vpack.c.bf16 %v2563_v5, %v2563_v5 }
   0x4   :  { %139 = vmatprep.subr.bf16.mxu1 %v2553_v3  ;;  %345 = vmatprep.subr.bf16.mxu0 %v2553_v3 }
   0x5   :  { %15 = vsyncpa [#allocation5], 0  ;;  %vm133_vm0 = vcmask 261120   ;;  %v64_v7 = vld [vmem:[%s3373_s0] sm:$0xf]  ;;  %v49_v9 = vlaneseq  ;;  %s2483_s22 = smov 64  }
   0x6   :  { %v2194_v8 = vld [vmem:[%s3373_s0 + $0x3c] sm:$0xf]  ;;  %65 = vst [vmem:[#allocation2] sm:$0xf] %v64_v7  ;;  %v111_v19 = vld [vmem:[%s3379_s6] sm:$0xff]  ;;  %s2484_s25 = smov 32  }
   0x7   :  { %140 = vmatpush1.bf16.msra.mxu1 %v2558_v4  ;;  %346 = vmatpush1.bf16.msra.mxu0 %v2558_v4  ;;  %68 = vst [vmem:[#allocation2 + $0x4] sm:$0xf] %v2194_v8  ;;  %v2588_v10 = vshrl.u32 %v49_v9, 7  ;;  %s2485_s26 = smov 96   ;;  %v2604_v31 = vld [vmem:[%s3380_s7] sm:$0xff]  ;;  %vm225_vm2 = vcmask 257024  }
   0x8   :  { %240 = vmatprep.subr.bf16.mxu1 %v2540_v0  ;;  %549 = vmatprep.subr.bf16.mxu0 %v2540_v0  ;;  %v2607_v32 = vsub.f32 1.0, %v2604_v31  ;;  %v2195_v44 = vld [vmem:[%s3373_s0 + $0x8] sm:$0xf]  ;;  %v2196_v45 = vld [vmem:[%s3373_s0 + $0x34] sm:$0xf]  ;;  %vm233_vm3 = vcmask 523524  }
   0x9   :  { %vm51_vm1 = vcmp.lt.s32.totalorder %v2588_v10, 4  ;;  %72 = vst [vmem:[#allocation2 + $0x8] sm:$0xf] %v2195_v44  ;;  %75 = vst [vmem:[#allocation2 + $0xc] sm:$0xf] %v2196_v45  ;;  %v2219_v44 = vld [vmem:[%s3380_s7 + $0x10] sm:$0xff] }
   0xa   :  { %2212 = vmatmul.mubr.msk.bf16.vlgmr.msra.gmra.mrb[0].mxu1 %vm133_vm0, %v112_v6  ;;  %v223_v35 = vmul.f32 %v2607_v32, %v111_v19  ;;  %v216_v39 = vmul.f32 %v2607_v32, %v2563_v5  ;;  %v2644_v6 = vld [vmem:[%s3380_s7 + $0x8] sm:$0xff]  ;;  %vm1059_vm4 = vcmask 523264   ;;  %s2486_s20 = smov [#allocation4]   ;;  %vm2169_vm5 = vcmask 781824  }
   0xb   :  { %241 = vmatpush1.bf16.msra.mxu1 %v2545_v1  ;;  %272 = vmatprep.mubr.bf16.mxu1 %v2482_v2  ;;  %v2647_v9 = vsub.f32 1.0, %v2644_v6  ;;  %s2184_s21 = sshll.u32 %s2486_s20, 4  ;;  %vm2174_vm6 = vcmask 1048324   ;;  %s2185_s21 = int_to_ptr.vmem [resolvable:$true] %s2184_s21 }
   0xc   :  { %242 = vmatprep.subr.bf16.mxu1 %v2553_v3  ;;  %p2463_p1 = scmp.lt.s32.totalorder %s2185_s21, %s2185_s21 }
   0xe   :  { %v179_v12 = vld [vmem:[#allocation2] sm:$0xff] }
   0xf   :  { %243 = vmatpush1.bf16.msra.mxu1 %v2558_v4 }
  0x10   :  { %446 = vmatprep.subr.bf16.mxu1 %v2540_v0  ;;  %v282_v47 = vld [vmem:[#allocation2 + $0x8] sm:$0xff] }
  0xdd   :  { %v171_v11 = vpop.f32.mrb[0].mxu1 }
  0xde   :  { %v173_v13 = vpop.f32.mrb[1].mxu1 }
  0xdf   :  { %v178_v14 = vsel %vm51_vm1, %v171_v11, %v173_v13  ;;  %v175_v15 = vpop.f32.mrb[2].mxu1 }
  0xe0   :  { %v180_v16 = vadd.f32 %v179_v12, %v178_v14  ;;  %v176_v17 = vpop.f32.mrb[3].mxu1 }
  0xe2   :  { %2322 = vtanh.f32 %v180_v16  ;;  %v2213_v20 = vmul.f32 -1.442695, %v180_v16 }
  0xe4   :  { %2324 = vpow2.f32 %v2213_v20  ;;  %v2197_v20 = vld [vmem:[%s3373_s0 + $0x10] sm:$0xf] }
  0xe5   :  { %79 = vst [vmem:[#allocation2 + $0x10] sm:$0xf] %v2197_v20 }
  0xec   :  { %v2323_v18 = vpop.eup %2322 }
  0xed   :  { %194 = vrot.lane.b32.xlu0 %v2323_v18, %s2483_s22 }
  0xee   :  { %v2325_v21 = vpop.eup %2324 }
  0xef   :  { %v184_v22 = vadd.f32 1.0, %v2325_v21  ;;  %v2198_v21 = vld [vmem:[%s3373_s0 + $0x2c] sm:$0xf] }
  0xf0   :  { %82 = vst [vmem:[#allocation2 + $0x14] sm:$0xf] %v2198_v21 }
  0xf1   :  { %189 = vrot.lane.b32.xlu0 %v111_v19, %s2484_s25  ;;  %2326 = vrcp.f32 %v184_v22 }
  0xfb   :  { %v2327_v23 = vpop.eup %2326 }
 0x15f   :  { %v195_v24 = vpop.permute.xlu0 %194 }
 0x160   :  { %v197_v25 = vmul.f32 %v2327_v23, %v195_v24 }
 0x162   :  { %199 = vrot.lane.b32.xlu1 %v197_v25, %s2484_s25 }
 0x163   :  { %v190_v26 = vpop.permute.xlu0 %189 }
 0x164   :  { %v192_v27 = vmul.f32 %v2327_v23, %v190_v26 }
 0x1d4   :  { %v200_v28 = vpop.permute.xlu1 %199 }
 0x1d5   :  { %v202_v29 = vadd.f32 %v200_v28, %v192_v27 }
 0x1d7   :  { %2328 = vtanh.f32 %v202_v29 }
 0x1e1   :  { %v2329_v30 = vpop.eup %2328 }
 0x1e2   :  { %205 = vrot.lane.b32.xlu1 %v2329_v30, %s2483_s22 }
 0x1e6   :  { %219 = vrot.lane.b32.xlu1 %v202_v29, %s2485_s26 }
 0x254   :  { %v206_v33 = vpop.permute.xlu1 %205 }
 0x255   :  { %v208_v34 = vmul.f32 %v2327_v23, %v206_v33  ;;  %v385_v23 = vld [vmem:[#allocation2 + $0x10] sm:$0xff] }
 0x257   :  { %212 = vrot.lane.b32.xlu0 %v208_v34, %s2484_s25 }
 0x258   :  { %v220_v36 = vpop.permute.xlu1 %219 }
 0x259   :  { %v222_v37 = vmul.f32 %v220_v36, %v2604_v31 }
 0x25b   :  { %v224_v38 = vadd.f32 %v223_v35, %v222_v37 }
 0x25d   :  { %292 = vrot.lane.b32.xlu1 %v224_v38, %s2484_s25  ;;  %v327_v12 = vmul.f32 %v2647_v9, %v224_v38 }
 0x2c9   :  { %v213_v40 = vpop.permute.xlu0 %212 }
 0x2ca   :  { %v2616_v41 = vmul.f32 %v213_v40, %v2604_v31 }
 0x2cc   :  { %v217_v42 = vadd.f32 %v216_v39, %v2616_v41  ;;  %226 = vst.msk [vmem:[#allocation3] sm:$0xf] %vm225_vm2, %v2616_v41  ;;  %228 = vst.msk [vmem:[#allocation3 + $0x3c] sm:$0xf] %vm225_vm2, %v2616_v41 }
 0x2ce   :  { %v236_v43 = vpack.c.bf16 %v217_v42, %v217_v42  ;;  %v320_v16 = vmul.f32 %v2647_v9, %v217_v42 }
 0x2cf   :  { %v293_v60 = vpop.permute.xlu1 %292 }
 0x2d0   :  { %2214 = vmatmul.mubr.msk.bf16.vlgmr.msra.gmra.mrb[4].mxu1 %vm133_vm0, %v236_v43 }
 0x2d1   :  { %447 = vmatpush1.bf16.msra.mxu1 %v2545_v1  ;;  %478 = vmatprep.mubr.bf16.mxu1 %v2482_v2 }
 0x2d2   :  { %448 = vmatprep.subr.bf16.mxu1 %v2553_v3 }
 0x2d5   :  { %449 = vmatpush1.bf16.msra.mxu1 %v2558_v4 }
 0x2d6   :  { %650 = vmatprep.subr.bf16.mxu1 %v2540_v0 }
 0x3a3   :  { %v274_v46 = vpop.f32.mrb[4].mxu1 }
 0x3a4   :  { %v276_v48 = vpop.f32.mrb[5].mxu1 }
 0x3a5   :  { %v281_v49 = vsel %vm51_vm1, %v274_v46, %v276_v48  ;;  %v278_v50 = vpop.f32.mrb[6].mxu1 }
 0x3a6   :  { %v283_v51 = vadd.f32 %v282_v47, %v281_v49  ;;  %v279_v52 = vpop.f32.mrb[7].mxu1  ;;  %v2683_v47 = vsub.f32 1.0, %v2219_v44 }
 0x3a8   :  { %2330 = vtanh.f32 %v283_v51  ;;  %v2215_v54 = vmul.f32 -1.442695, %v283_v51 }
 0x3aa   :  { %2332 = vpow2.f32 %v2215_v54 }
 0x3b2   :  { %v2331_v53 = vpop.eup %2330 }
 0x3b3   :  { %297 = vrot.lane.b32.xlu0 %v2331_v53, %s2483_s22 }
 0x3b4   :  { %v2333_v55 = vpop.eup %2332 }
 0x3b5   :  { %v287_v56 = vadd.f32 1.0, %v2333_v55 }
 0x3b7   :  { %2334 = vrcp.f32 %v287_v56 }
 0x3c1   :  { %v2335_v57 = vpop.eup %2334 }
 0x3c2   :  { %v295_v61 = vmul.f32 %v2335_v57, %v293_v60 }
 0x425   :  { %v298_v58 = vpop.permute.xlu0 %297 }
 0x426   :  { %v300_v59 = vmul.f32 %v2335_v57, %v298_v58  ;;  %v2200_v58 = vld [vmem:[%s3373_s0 + $0x24] sm:$0xf] }
 0x427   :  { %89 = vst [vmem:[#allocation2 + $0x1c] sm:$0xf] %v2200_v58 }
 0x428   :  { %302 = vrot.lane.b32.xlu0 %v300_v59, %s2484_s25 }
 0x49a   :  { %v303_v62 = vpop.permute.xlu0 %302 }
 0x49b   :  { %v305_v63 = vadd.f32 %v303_v62, %v295_v61 }
 0x49d   :  { %2336 = vtanh.f32 %v305_v63 }
 0x4a7   :  { %v2337_v5 = vpop.eup %2336 }
 0x4a8   :  { %308 = vrot.lane.b32.xlu1 %v2337_v5, %s2483_s22 }
 0x4ac   :  { %323 = vrot.lane.b32.xlu1 %v305_v63, %s2485_s26 }
 0x51a   :  { %v309_v7 = vpop.permute.xlu1 %308 }
 0x51b   :  { %v311_v8 = vmul.f32 %v2335_v57, %v309_v7  ;;  %v2199_v57 = vld [vmem:[%s3373_s0 + $0x18] sm:$0xf] }
 0x51c   :  { %86 = vst [vmem:[#allocation2 + $0x18] sm:$0xf] %v2199_v57 }
 0x51d   :  { %316 = vrot.lane.b32.xlu0 %v311_v8, %s2484_s25 }
 0x51e   :  { %v324_v11 = vpop.permute.xlu1 %323 }
 0x51f   :  { %v326_v13 = vmul.f32 %v2644_v6, %v324_v11 }
 0x521   :  { %v328_v14 = vadd.f32 %v327_v12, %v326_v13 }
 0x523   :  { %395 = vrot.lane.b32.xlu1 %v328_v14, %s2484_s25  ;;  %v430_v50 = vmul.f32 %v2683_v47, %v328_v14  ;;  %v488_v60 = vld [vmem:[#allocation2 + $0x18] sm:$0xff] }
 0x58f   :  { %v317_v15 = vpop.permute.xlu0 %316 }
 0x590   :  { %v2655_v17 = vmul.f32 %v2644_v6, %v317_v15 }
 0x592   :  { %v321_v18 = vadd.f32 %v320_v16, %v2655_v17  ;;  %330 = vst.msk [vmem:[#allocation3 + $0x8] sm:$0xf] %vm225_vm2, %v2655_v17  ;;  %332 = vst.msk [vmem:[#allocation3 + $0x34] sm:$0xf] %vm225_vm2, %v2655_v17 }
 0x594   :  { %v339_v19 = vpack.c.bf16 %v321_v18, %v321_v18  ;;  %v423_v53 = vmul.f32 %v2683_v47, %v321_v18 }
 0x595   :  { %v396_v38 = vpop.permute.xlu1 %395 }
 0x596   :  { %2217 = vmatmul.mubr.msk.bf16.vlgmr.msra.gmra.mrb[0].mxu0 %vm133_vm0, %v339_v19 }
 0x597   :  { %550 = vmatpush1.bf16.msra.mxu0 %v2545_v1  ;;  %581 = vmatprep.mubr.bf16.mxu0 %v2482_v2 }
 0x598   :  { %551 = vmatprep.subr.bf16.mxu0 %v2553_v3 }
 0x59b   :  { %552 = vmatpush1.bf16.msra.mxu0 %v2558_v4 }
 0x59c   :  { %751 = vmatprep.subr.bf16.mxu0 %v2540_v0 }
 0x669   :  { %v377_v22 = vpop.f32.mrb[0].mxu0 }
 0x66a   :  { %v379_v24 = vpop.f32.mrb[1].mxu0 }
 0x66b   :  { %v384_v25 = vsel %vm51_vm1, %v377_v22, %v379_v24  ;;  %v381_v26 = vpop.f32.mrb[2].mxu0  ;;  %v2222_v22 = vld [vmem:[%s3380_s7 + $0x18] sm:$0xff] }
 0x66c   :  { %v386_v27 = vadd.f32 %v385_v23, %v384_v25  ;;  %v382_v28 = vpop.f32.mrb[3].mxu0  ;;  %v520_v25 = vsub.f32 1.0, %v2222_v22 }
 0x66e   :  { %2338 = vtanh.f32 %v386_v27  ;;  %v2218_v30 = vmul.f32 -1.442695, %v386_v27 }
 0x670   :  { %2340 = vpow2.f32 %v2218_v30 }
 0x678   :  { %v2339_v29 = vpop.eup %2338 }
 0x679   :  { %400 = vrot.lane.b32.xlu0 %v2339_v29, %s2483_s22 }
 0x67a   :  { %v2341_v33 = vpop.eup %2340 }
 0x67b   :  { %v390_v34 = vadd.f32 1.0, %v2341_v33 }
 0x67d   :  { %2342 = vrcp.f32 %v390_v34 }
 0x687   :  { %v2343_v35 = vpop.eup %2342 }
 0x688   :  { %v398_v39 = vmul.f32 %v2343_v35, %v396_v38  ;;  %v2202_v38 = vld [vmem:[%s3373_s0 + $0x1c] sm:$0xf] }
 0x689   :  { %94 = vst [vmem:[#allocation2 + $0x24] sm:$0xf] %v2202_v38 }
 0x6eb   :  { %v401_v36 = vpop.permute.xlu0 %400 }
 0x6ec   :  { %v403_v37 = vmul.f32 %v2343_v35, %v401_v36 }
 0x6ee   :  { %405 = vrot.lane.b32.xlu0 %v403_v37, %s2484_s25  ;;  %v2201_v37 = vld [vmem:[%s3373_s0 + $0x20] sm:$0xf] }
 0x6ef   :  { %92 = vst [vmem:[#allocation2 + $0x20] sm:$0xf] %v2201_v37 }
 0x760   :  { %v406_v40 = vpop.permute.xlu0 %405 }
 0x761   :  { %v408_v42 = vadd.f32 %v406_v40, %v398_v39  ;;  %v591_v40 = vld [vmem:[#allocation2 + $0x20] sm:$0xff] }
 0x763   :  { %2344 = vtanh.f32 %v408_v42 }
 0x76d   :  { %v2345_v43 = vpop.eup %2344 }
 0x76e   :  { %411 = vrot.lane.b32.xlu1 %v2345_v43, %s2483_s22 }
 0x772   :  { %426 = vrot.lane.b32.xlu1 %v408_v42, %s2485_s26 }
 0x7e0   :  { %v412_v45 = vpop.permute.xlu1 %411 }
 0x7e1   :  { %v414_v46 = vmul.f32 %v2343_v35, %v412_v45 }
 0x7e3   :  { %419 = vrot.lane.b32.xlu0 %v414_v46, %s2484_s25 }
 0x7e4   :  { %v427_v48 = vpop.permute.xlu1 %426 }
 0x7e5   :  { %v429_v49 = vmul.f32 %v2219_v44, %v427_v48 }
 0x7e7   :  { %v431_v51 = vadd.f32 %v430_v50, %v429_v49 }
 0x7e9   :  { %498 = vrot.lane.b32.xlu1 %v431_v51, %s2484_s25  ;;  %v533_v27 = vmul.f32 %v520_v25, %v431_v51 }
 0x855   :  { %v420_v52 = vpop.permute.xlu0 %419 }
 0x856   :  { %v2689_v54 = vmul.f32 %v2219_v44, %v420_v52 }
 0x858   :  { %v424_v55 = vadd.f32 %v423_v53, %v2689_v54  ;;  %433 = vst.msk [vmem:[#allocation3 + $0x10] sm:$0xf] %vm225_vm2, %v2689_v54  ;;  %435 = vst.msk [vmem:[#allocation3 + $0x2c] sm:$0xf] %vm225_vm2, %v2689_v54 }
 0x85a   :  { %v442_v56 = vpack.c.bf16 %v424_v55, %v424_v55  ;;  %v526_v33 = vmul.f32 %v520_v25, %v424_v55 }
 0x85b   :  { %v499_v16 = vpop.permute.xlu1 %498 }
 0x85c   :  { %2220 = vmatmul.mubr.msk.bf16.vlgmr.msra.gmra.mrb[8].mxu1 %vm133_vm0, %v442_v56 }
 0x85d   :  { %651 = vmatpush1.bf16.msra.mxu1 %v2545_v1  ;;  %682 = vmatprep.mubr.bf16.mxu1 %v2482_v2 }
 0x85e   :  { %652 = vmatprep.subr.bf16.mxu1 %v2553_v3 }
 0x861   :  { %653 = vmatpush1.bf16.msra.mxu1 %v2558_v4 }
 0x862   :  { %852 = vmatprep.subr.bf16.mxu1 %v2540_v0 }
 0x92f   :  { %v480_v59 = vpop.f32.mrb[8].mxu1 }
 0x930   :  { %v482_v61 = vpop.f32.mrb[9].mxu1 }
 0x931   :  { %v487_v62 = vsel %vm51_vm1, %v480_v59, %v482_v61  ;;  %v484_v63 = vpop.f32.mrb[10].mxu1  ;;  %v2225_v61 = vld [vmem:[%s3380_s7 + $0x20] sm:$0xff] }
 0x932   :  { %v489_v5 = vadd.f32 %v488_v60, %v487_v62  ;;  %v485_v7 = vpop.f32.mrb[11].mxu1 }
 0x934   :  { %2346 = vtanh.f32 %v489_v5  ;;  %v2221_v8 = vmul.f32 -1.442695, %v489_v5  ;;  %v623_v5 = vsub.f32 1.0, %v2225_v61 }
 0x936   :  { %2348 = vpow2.f32 %v2221_v8 }
 0x93e   :  { %v2347_v0 = vpop.eup %2346 }
 0x93f   :  { %503 = vrot.lane.b32.xlu0 %v2347_v0, %s2483_s22 }
 0x940   :  { %v2349_v11 = vpop.eup %2348 }
 0x941   :  { %v493_v12 = vadd.f32 1.0, %v2349_v11 }
 0x943   :  { %2350 = vrcp.f32 %v493_v12 }
 0x94d   :  { %v2351_v13 = vpop.eup %2350 }
 0x94e   :  { %v501_v18 = vmul.f32 %v2351_v13, %v499_v16 }
 0x9b1   :  { %v504_v14 = vpop.permute.xlu0 %503 }
 0x9b2   :  { %v506_v15 = vmul.f32 %v2351_v13, %v504_v14 }
 0x9b4   :  { %508 = vrot.lane.b32.xlu0 %v506_v15, %s2484_s25 }
 0xa26   :  { %v509_v19 = vpop.permute.xlu0 %508 }
 0xa27   :  { %v511_v20 = vadd.f32 %v509_v19, %v501_v18  ;;  %v2203_v18 = vld [vmem:[%s3373_s0 + $0x28] sm:$0xf]  ;;  %v2204_v19 = vld [vmem:[%s3373_s0 + $0x14] sm:$0xf] }
 0xa28   :  { %97 = vst [vmem:[#allocation2 + $0x28] sm:$0xf] %v2203_v18  ;;  %99 = vst [vmem:[#allocation2 + $0x2c] sm:$0xf] %v2204_v19 }
 0xa29   :  { %2352 = vtanh.f32 %v511_v20 }
 0xa33   :  { %v2353_v21 = vpop.eup %2352 }
 0xa34   :  { %514 = vrot.lane.b32.xlu1 %v2353_v21, %s2483_s22  ;;  %v692_v21 = vld [vmem:[#allocation2 + $0x28] sm:$0xff] }
 0xa38   :  { %529 = vrot.lane.b32.xlu1 %v511_v20, %s2485_s26 }
 0xaa6   :  { %v515_v23 = vpop.permute.xlu1 %514 }
 0xaa7   :  { %v517_v24 = vmul.f32 %v2351_v13, %v515_v23 }
 0xaa9   :  { %522 = vrot.lane.b32.xlu0 %v517_v24, %s2484_s25 }
 0xaaa   :  { %v530_v26 = vpop.permute.xlu1 %529 }
 0xaab   :  { %v532_v28 = vmul.f32 %v2222_v22, %v530_v26 }
 0xaad   :  { %v534_v29 = vadd.f32 %v533_v27, %v532_v28 }
 0xaaf   :  { %601 = vrot.lane.b32.xlu1 %v534_v29, %s2484_s25  ;;  %v636_v8 = vmul.f32 %v623_v5, %v534_v29 }
 0xb1b   :  { %v523_v30 = vpop.permute.xlu0 %522 }
 0xb1c   :  { %v2719_v34 = vmul.f32 %v2222_v22, %v523_v30 }
 0xb1e   :  { %v527_v35 = vadd.f32 %v526_v33, %v2719_v34  ;;  %536 = vst.msk [vmem:[#allocation3 + $0x18] sm:$0xf] %vm225_vm2, %v2719_v34  ;;  %538 = vst.msk [vmem:[#allocation3 + $0x24] sm:$0xf] %vm225_vm2, %v2719_v34 }
 0xb20   :  { %v545_v36 = vpack.c.bf16 %v527_v35, %v527_v35  ;;  %v629_v13 = vmul.f32 %v623_v5, %v527_v35 }
 0xb21   :  { %v602_v56 = vpop.permute.xlu1 %601 }
 0xb22   :  { %2223 = vmatmul.mubr.msk.bf16.vlgmr.msra.gmra.mrb[4].mxu0 %vm133_vm0, %v545_v36 }
 0xb23   :  { %752 = vmatpush1.bf16.msra.mxu0 %v2545_v1  ;;  %783 = vmatprep.mubr.bf16.mxu0 %v2482_v2 }
 0xb24   :  { %753 = vmatprep.subr.bf16.mxu0 %v2553_v3 }
 0xb27   :  { %754 = vmatpush1.bf16.msra.mxu0 %v2558_v4 }
 0xbf5   :  { %v583_v39 = vpop.f32.mrb[4].mxu0 }
 0xbf6   :  { %v585_v42 = vpop.f32.mrb[5].mxu0 }
 0xbf7   :  { %v590_v43 = vsel %vm51_vm1, %v583_v39, %v585_v42  ;;  %v587_v44 = vpop.f32.mrb[6].mxu0  ;;  %v2228_v39 = vld [vmem:[%s3380_s7 + $0x28] sm:$0xff] }
 0xbf8   :  { %v592_v45 = vadd.f32 %v591_v40, %v590_v43  ;;  %v588_v46 = vpop.f32.mrb[7].mxu0  ;;  %v724_v43 = vsub.f32 1.0, %v2228_v39 }
 0xbfa   :  { %2354 = vtanh.f32 %v592_v45  ;;  %v2224_v49 = vmul.f32 -1.442695, %v592_v45 }
 0xbfc   :  { %2356 = vpow2.f32 %v2224_v49 }
 0xc04   :  { %v2355_v48 = vpop.eup %2354 }
 0xc05   :  { %606 = vrot.lane.b32.xlu0 %v2355_v48, %s2483_s22 }
 0xc06   :  { %v2357_v50 = vpop.eup %2356 }
 0xc07   :  { %v596_v51 = vadd.f32 1.0, %v2357_v50 }
 0xc09   :  { %2358 = vrcp.f32 %v596_v51 }
 0xc13   :  { %v2359_v52 = vpop.eup %2358 }
 0xc14   :  { %v604_v57 = vmul.f32 %v2359_v52, %v602_v56  ;;  %v2206_v56 = vld [vmem:[%s3373_s0 + $0xc] sm:$0xf] }
 0xc15   :  { %104 = vst [vmem:[#allocation2 + $0x34] sm:$0xf] %v2206_v56 }
 0xc77   :  { %v607_v53 = vpop.permute.xlu0 %606 }
 0xc78   :  { %v609_v55 = vmul.f32 %v2359_v52, %v607_v53 }
 0xc7a   :  { %611 = vrot.lane.b32.xlu0 %v609_v55, %s2484_s25  ;;  %v2205_v55 = vld [vmem:[%s3373_s0 + $0x30] sm:$0xf] }
 0xc7b   :  { %102 = vst [vmem:[#allocation2 + $0x30] sm:$0xf] %v2205_v55 }
 0xcec   :  { %v612_v58 = vpop.permute.xlu0 %611 }
 0xced   :  { %v614_v59 = vadd.f32 %v612_v58, %v604_v57  ;;  %v793_v58 = vld [vmem:[#allocation2 + $0x30] sm:$0xff] }
 0xcef   :  { %2360 = vtanh.f32 %v614_v59 }
 0xcf9   :  { %v2361_v60 = vpop.eup %2360 }
 0xcfa   :  { %617 = vrot.lane.b32.xlu1 %v2361_v60, %s2483_s22 }
 0xcfe   :  { %632 = vrot.lane.b32.xlu1 %v614_v59, %s2485_s26 }
 0xd6c   :  { %v618_v62 = vpop.permute.xlu1 %617 }
 0xd6d   :  { %v620_v63 = vmul.f32 %v2359_v52, %v618_v62 }
 0xd6f   :  { %625 = vrot.lane.b32.xlu0 %v620_v63, %s2484_s25 }
 0xd70   :  { %v633_v7 = vpop.permute.xlu1 %632 }
 0xd71   :  { %v635_v0 = vmul.f32 %v2225_v61, %v633_v7 }
 0xd73   :  { %v637_v11 = vadd.f32 %v636_v8, %v635_v0 }
 0xd75   :  { %702 = vrot.lane.b32.xlu1 %v637_v11, %s2484_s25  ;;  %v737_v45 = vmul.f32 %v724_v43, %v637_v11 }
 0xde1   :  { %v626_v12 = vpop.permute.xlu0 %625 }
 0xde2   :  { %v2748_v14 = vmul.f32 %v2225_v61, %v626_v12 }
 0xde4   :  { %v630_v15 = vadd.f32 %v629_v13, %v2748_v14 }
 0xde6   :  { %v646_v16 = vpack.c.bf16 %v630_v15, %v630_v15  ;;  %v730_v50 = vmul.f32 %v724_v43, %v630_v15 }
 0xde7   :  { %v703_v33 = vpop.permute.xlu1 %702 }
 0xde8   :  { %2226 = vmatmul.mubr.msk.bf16.vlgmr.msra.gmra.mrb[12].mxu1 %vm133_vm0, %v646_v16 }
 0xde9   :  { %853 = vmatpush1.bf16.msra.mxu1 %v2545_v1  ;;  %884 = vmatprep.mubr.bf16.mxu1 %v2482_v2 }
 0xdea   :  { %854 = vmatprep.subr.bf16.mxu1 %v2553_v3 }
 0xded   :  { %855 = vmatpush1.bf16.msra.mxu1 %v2558_v4 }
 0xebb   :  { %v684_v20 = vpop.f32.mrb[12].mxu1 }
 0xebc   :  { %v686_v22 = vpop.f32.mrb[13].mxu1 }
 0xebd   :  { %v691_v1 = vsel %vm51_vm1, %v684_v20, %v686_v22  ;;  %v688_v23 = vpop.f32.mrb[14].mxu1 }
 0xebe   :  { %v693_v3 = vadd.f32 %v692_v21, %v691_v1  ;;  %v689_v24 = vpop.f32.mrb[15].mxu1  ;;  %v2231_v21 = vld [vmem:[%s3380_s7 + $0x30] sm:$0xff] }
 0xebf   :  { %v825_v23 = vsub.f32 1.0, %v2231_v21 }
 0xec0   :  { %2362 = vtanh.f32 %v693_v3  ;;  %v2227_v25 = vmul.f32 -1.442695, %v693_v3 }
 0xec2   :  { %2364 = vpow2.f32 %v2227_v25 }
 0xeca   :  { %v2363_v4 = vpop.eup %2362 }
 0xecb   :  { %707 = vrot.lane.b32.xlu0 %v2363_v4, %s2483_s22 }
 0xecc   :  { %v2365_v26 = vpop.eup %2364 }
 0xecd   :  { %v697_v27 = vadd.f32 1.0, %v2365_v26 }
 0xecf   :  { %2366 = vrcp.f32 %v697_v27 }
 0xed9   :  { %v2367_v28 = vpop.eup %2366 }
 0xeda   :  { %v705_v35 = vmul.f32 %v2367_v28, %v703_v33  ;;  %v2207_v33 = vld [vmem:[%s3373_s0 + $0x38] sm:$0xf] }
 0xedb   :  { %107 = vst [vmem:[#allocation2 + $0x38] sm:$0xf] %v2207_v33 }
 0xf3d   :  { %v708_v29 = vpop.permute.xlu0 %707 }
 0xf3e   :  { %v710_v30 = vmul.f32 %v2367_v28, %v708_v29 }
 0xf40   :  { %712 = vrot.lane.b32.xlu0 %v710_v30, %s2484_s25 }
 0xfb2   :  { %v713_v36 = vpop.permute.xlu0 %712 }
 0xfb3   :  { %v715_v37 = vadd.f32 %v713_v36, %v705_v35  ;;  %v108_v35 = vld [vmem:[%s3373_s0 + $0x4] sm:$0xf] }
 0xfb4   :  { %109 = vst [vmem:[#allocation2 + $0x3c] sm:$0xf] %v108_v35 }
 0xfb5   :  { %2368 = vtanh.f32 %v715_v37 }
 0xfbf   :  { %v2369_v38 = vpop.eup %2368 }
 0xfc0   :  { %718 = vrot.lane.b32.xlu1 %v2369_v38, %s2483_s22 }
 0xfc4   :  { %733 = vrot.lane.b32.xlu1 %v715_v37, %s2485_s26  ;;  %v894_v37 = vld [vmem:[#allocation2 + $0x38] sm:$0xff] }
0x1032   :  { %v719_v40 = vpop.permute.xlu1 %718 }
0x1033   :  { %v721_v42 = vmul.f32 %v2367_v28, %v719_v40 }
0x1035   :  { %726 = vrot.lane.b32.xlu0 %v721_v42, %s2484_s25 }
0x1036   :  { %v734_v44 = vpop.permute.xlu1 %733 }
0x1037   :  { %v736_v46 = vmul.f32 %v2228_v39, %v734_v44 }
0x1039   :  { %v738_v48 = vadd.f32 %v737_v45, %v736_v46 }
0x103b   :  { %803 = vrot.lane.b32.xlu1 %v738_v48, %s2484_s25  ;;  %v838_v4 = vmul.f32 %v825_v23, %v738_v48 }
0x10a7   :  { %v727_v49 = vpop.permute.xlu0 %726 }
0x10a8   :  { %v2773_v51 = vmul.f32 %v2228_v39, %v727_v49 }
0x10aa   :  { %v731_v52 = vadd.f32 %v730_v50, %v2773_v51 }
0x10ac   :  { %v747_v53 = vpack.c.bf16 %v731_v52, %v731_v52  ;;  %v831_v27 = vmul.f32 %v825_v23, %v731_v52 }
0x10ad   :  { %v804_v15 = vpop.permute.xlu1 %803 }
0x10ae   :  { %2229 = vmatmul.mubr.msk.bf16.vlgmr.msra.gmra.mrb[8].mxu0 %vm133_vm0, %v747_v53 }
0x10af   :  { %1010 = vmatprep.mubr.bf16.mxu0 %v2482_v2 }
0x1181   :  { %v785_v57 = vpop.f32.mrb[8].mxu0 }
0x1182   :  { %v787_v59 = vpop.f32.mrb[9].mxu0 }
0x1183   :  { %v792_v60 = vsel %vm51_vm1, %v785_v57, %v787_v59  ;;  %v789_v61 = vpop.f32.mrb[10].mxu0  ;;  %v2820_v59 = vld [vmem:[%s3374_s1 + $0x4] ss:$8 sps:$4 sm:$0xff]  }
0x1184   :  { %v794_v62 = vadd.f32 %v793_v58, %v792_v60  ;;  %v790_v63 = vpop.f32.mrb[11].mxu0  ;;  %v2825_v60 = vld [vmem:[%s3374_s1] ss:$8 sps:$4 sm:$0xff]   ;;  %v2830_v61 = vld [vmem:[%s3374_s1 + $0x14] ss:$8 sps:$4 sm:$0xff]   ;;  %1063 = vmatprep.subr.bf16.mxu1 %v2820_v59 }
0x1186   :  { %2370 = vtanh.f32 %v794_v62  ;;  %v2230_v7 = vmul.f32 -1.442695, %v794_v62  ;;  %v2835_v62 = vld [vmem:[%s3376_s3 + $0x4] ss:$8 sps:$4 sm:$0xff]  }
0x1187   :  { %978 = vmatprep.subr.bf16.mxu0 %v2835_v62 }
0x1188   :  { %2372 = vpow2.f32 %v2230_v7 }
0x1190   :  { %v2371_v5 = vpop.eup %2370 }
0x1191   :  { %808 = vrot.lane.b32.xlu0 %v2371_v5, %s2483_s22 }
0x1192   :  { %v2373_v0 = vpop.eup %2372 }
0x1193   :  { %v798_v8 = vadd.f32 1.0, %v2373_v0  ;;  %v37_v0 = vld [vmem:[%s3376_s3] sm:$0xff] }
0x1195   :  { %2374 = vrcp.f32 %v798_v8  ;;  %v38_v8 = vld [vmem:[%s3376_s3 + $0x8] sm:$0xff] }
0x119f   :  { %v2375_v11 = vpop.eup %2374 }
0x11a0   :  { %v806_v16 = vmul.f32 %v2375_v11, %v804_v15  ;;  %v2872_v15 = vld [vmem:[%s3374_s1 + $0x20] ss:$8 sps:$4 sm:$0xff]  }
0x1203   :  { %v809_v12 = vpop.permute.xlu0 %808 }
0x1204   :  { %v811_v13 = vmul.f32 %v2375_v11, %v809_v12  ;;  %v2862_v12 = vld [vmem:[%s3374_s1 + $0x24] ss:$8 sps:$4 sm:$0xff]  }
0x1206   :  { %813 = vrot.lane.b32.xlu0 %v811_v13, %s2484_s25  ;;  %v2867_v13 = vld [vmem:[%s3376_s3 + $0x14] ss:$8 sps:$4 sm:$0xff]  }
0x1278   :  { %v814_v18 = vpop.permute.xlu0 %813 }
0x1279   :  { %v816_v19 = vadd.f32 %v814_v18, %v806_v16  ;;  %v2877_v16 = vld [vmem:[%s3376_s3 + $0x10] ss:$8 sps:$4 sm:$0xff]   ;;  %v2882_v18 = vld [vmem:[%s3374_s1 + $0x34] ss:$8 sps:$4 sm:$0xff]  }
0x127b   :  { %2376 = vtanh.f32 %v816_v19 }
0x1285   :  { %v2377_v20 = vpop.eup %2376 }
0x1286   :  { %819 = vrot.lane.b32.xlu1 %v2377_v20, %s2483_s22 }
0x128a   :  { %834 = vrot.lane.b32.xlu1 %v816_v19, %s2485_s26  ;;  %v2887_v19 = vld [vmem:[%s3378_s5 + $0x8] sm:$0xff] }
0x128b   :  { %v954_v20 = vpack.c.bf16 %v2887_v19, %v2887_v19 }
0x12f8   :  { %v820_v22 = vpop.permute.xlu1 %819 }
0x12f9   :  { %v822_v1 = vmul.f32 %v2375_v11, %v820_v22  ;;  %v2856_v11 = vcombine.low %v37_v0, %v38_v8  ;;  %v2234_v22 = vld [vmem:[%s3380_s7 + $0x38] sm:$0xff] }
0x12fb   :  { %827 = vrot.lane.b32.xlu0 %v822_v1, %s2484_s25  ;;  %979 = vmatpush1.bf16.msra.mxu0 %v2856_v11  ;;  %v926_v1 = vsub.f32 1.0, %v2234_v22 }
0x12fc   :  { %v835_v3 = vpop.permute.xlu1 %834  ;;  %980 = vmatprep.subr.bf16.mxu0 %v2867_v13 }
0x12fd   :  { %v837_v24 = vmul.f32 %v2231_v21, %v835_v3 }
0x12ff   :  { %v839_v25 = vadd.f32 %v838_v4, %v837_v24  ;;  %981 = vmatpush1.bf16.msra.mxu0 %v2877_v16 }
0x1300   :  { %1164 = vmatprep.subr.bf16.mxu0 %v2835_v62 }
0x1301   :  { %904 = vrot.lane.b32.xlu1 %v839_v25, %s2484_s25  ;;  %v2236_v25 = vld [vmem:[%s3379_s6 + $0x8] sm:$0xff] }
0x1302   :  { %2241 = vmatmul.mubr.msk.bf16.vlgmr.msra.gmra.mrb[12].mxu0 %vm133_vm0, %v954_v20 }
0x1303   :  { %1165 = vmatpush1.bf16.msra.mxu0 %v2856_v11  ;;  %1196 = vmatprep.mubr.bf16.mxu0 %v2482_v2 }
0x1304   :  { %1166 = vmatprep.subr.bf16.mxu0 %v2867_v13 }
0x1307   :  { %1167 = vmatpush1.bf16.msra.mxu0 %v2877_v16 }
0x1308   :  { %1208 = vmatprep.subr.bf16.mxu0 %v2820_v59 }
0x136d   :  { %v828_v26 = vpop.permute.xlu0 %827 }
0x136e   :  { %v2795_v28 = vmul.f32 %v2231_v21, %v828_v26  ;;  %v2897_v21 = vld [vmem:[%s3374_s1 + $0x30] ss:$8 sps:$4 sm:$0xff]  }
0x1370   :  { %v2798_v29 = vadd.f32 %v831_v27, %v2795_v28 }
0x1372   :  { %v848_v30 = vpack.c.bf16 %v2798_v29, %v2798_v29  ;;  %v932_v3 = vmul.f32 %v926_v1, %v2798_v29 }
0x1373   :  { %v905_v53 = vpop.permute.xlu1 %904 }
0x1374   :  { %2232 = vmatmul.mubr.msk.bf16.vlgmr.msra.gmra.mrb[16].mxu1 %vm133_vm0, %v848_v30 }
0x1375   :  { %1095 = vmatprep.mubr.bf16.mxu1 %v2482_v2  ;;  %1064 = vmatpush1.bf16.msra.mxu1 %v2825_v60 }
0x1376   :  { %1065 = vmatprep.subr.bf16.mxu1 %v2830_v61 }
0x13d5   :  { %v1012_v30 = vpop.f32.mrb[12].mxu0 }
0x13d6   :  { %v1014_v33 = vpop.f32.mrb[13].mxu0 }
0x13d7   :  { %v1016_v35 = vpop.f32.mrb[14].mxu0 }
0x1447   :  { %v886_v36 = vpop.f32.mrb[16].mxu1 }
0x1448   :  { %v888_v38 = vpop.f32.mrb[17].mxu1 }
0x1449   :  { %v893_v39 = vsel %vm51_vm1, %v886_v36, %v888_v38  ;;  %v890_v40 = vpop.f32.mrb[18].mxu1  ;;  %v1017_v36 = vpop.f32.mrb[15].mxu0  ;;  %v52_v38 = vld [vmem:[%s3377_s4] sm:$0x3] }
0x144a   :  { %v895_v42 = vadd.f32 %v894_v37, %v893_v39  ;;  %v891_v43 = vpop.f32.mrb[19].mxu1  ;;  %v56_v37 = vsub.s32 0, %v2588_v10  ;;  %v60_v39 = vsub.s32 1, %v2588_v10 }
0x144c   :  { %2378 = vtanh.f32 %v895_v42  ;;  %v2233_v45 = vmul.f32 -1.442695, %v895_v42  ;;  %v2938_v40 = vrot.slane %v52_v38, %v56_v37  ;;  %v2940_v43 = vrot.slane %v52_v38, %v60_v39 }
0x144e   :  { %2380 = vpow2.f32 %v2233_v45 }
0x1456   :  { %v2379_v44 = vpop.eup %2378 }
0x1457   :  { %909 = vrot.lane.b32.xlu0 %v2379_v44, %s2483_s22 }
0x1458   :  { %v2381_v46 = vpop.eup %2380 }
0x1459   :  { %v899_v48 = vadd.f32 1.0, %v2381_v46 }
0x145b   :  { %2382 = vrcp.f32 %v899_v48 }
0x1465   :  { %v2383_v49 = vpop.eup %2382 }
0x1466   :  { %v907_v55 = vmul.f32 %v2383_v49, %v905_v53 }
0x14c9   :  { %v910_v50 = vpop.permute.xlu0 %909 }
0x14ca   :  { %v912_v52 = vmul.f32 %v2383_v49, %v910_v50 }
0x14cc   :  { %914 = vrot.lane.b32.xlu0 %v912_v52, %s2484_s25 }
0x153e   :  { %v915_v56 = vpop.permute.xlu0 %914 }
0x153f   :  { %v917_v57 = vadd.f32 %v915_v56, %v907_v55 }
0x1541   :  { %2384 = vtanh.f32 %v917_v57 }
0x154b   :  { %v2385_v58 = vpop.eup %2384 }
0x154c   :  { %920 = vrot.lane.b32.xlu1 %v2385_v58, %s2483_s22 }
0x1550   :  { %230 = vrot.lane.b32.xlu1 %v2616_v41, %s2484_s25  ;;  %v2843_v41 = vld [vmem:[%s3374_s1 + $0x10] ss:$8 sps:$4 sm:$0xff]  }
0x1551   :  { %1066 = vmatpush1.bf16.msra.mxu1 %v2843_v41 }
0x1552   :  { %1067 = vmatprep.subr.bf16.mxu1 %v2862_v12 }
0x1555   :  { %1068 = vmatpush1.bf16.msra.mxu1 %v2872_v15 }
0x1556   :  { %1069 = vmatprep.subr.bf16.mxu1 %v2882_v18 }
0x1559   :  { %1070 = vmatpush1.bf16.msra.mxu1 %v2897_v21 }
0x155a   :  { %1310 = vmatprep.subr.bf16.mxu1 %v2835_v62 }
0x15be   :  { %v921_v63 = vpop.permute.xlu1 %920 }
0x15bf   :  { %v923_v5 = vmul.f32 %v2383_v49, %v921_v63 }
0x15c1   :  { %928 = vrot.lane.b32.xlu0 %v923_v5, %s2484_s25 }
0x15c2   :  { %v231_v7 = vpop.permute.xlu1 %230 }
0x15c3   :  { %234 = vst.msk [vmem:[#allocation3 + $0x34] sm:$0xf0] %vm233_vm3, %v231_v7  ;;  %235 = vst.msk [vmem:[#allocation3] sm:$0xf0] %vm233_vm3, %v231_v7 }
0x1633   :  { %v929_v23 = vpop.permute.xlu0 %928 }
0x1634   :  { %v931_v24 = vmul.f32 %v2234_v22, %v929_v23 }
0x1636   :  { %v2913_v4 = vadd.f32 %v932_v3, %v931_v24  ;;  %934 = vst.msk [vmem:[#allocation3 + $0x38] sm:$0xf] %vm225_vm2, %v931_v24  ;;  %935 = vst.msk [vmem:[#allocation3 + $0x4] sm:$0xf] %vm225_vm2, %v931_v24  ;;  %937 = vrot.lane.b32.xlu0 %v931_v24, %s2484_s25 }
0x1638   :  { %942 = vst.msk [vmem:[#allocation4] sm:$0xf] %vm225_vm2, %v2913_v4 }
0x163a   :  { %1115 = vrot.lane.b32.xlu0 %v2236_v25, %s2484_s25 }
0x16a8   :  { %v938_v26 = vpop.permute.xlu0 %937 }
0x16a9   :  { %940 = vst.msk [vmem:[#allocation3 - $0x4] sm:$0xf0] %vm233_vm3, %v938_v26  ;;  %941 = vst.msk [vmem:[#allocation3 + $0x38] sm:$0xf0] %vm233_vm3, %v938_v26  ;;  %v1149_v26 = vmul.f32 %v2236_v25, %v2607_v32 }
0x16ac   :  { %v1116_v0 = vpop.permute.xlu0 %1115 }
0x16b0   :  { %v952_v27 = vld [vmem:[#allocation3] sm:$0xff] }
0x16b1   :  { %v953_v29 = vpack.c.bf16 %v952_v27, %v952_v27 }
0x16b3   :  { %2250 = vmatmul.mubr.msk.bf16.vlgmr.msra.gmra.mrb[20].mxu1 %vm1059_vm4, %v953_v29 }
0x16b4   :  { %1311 = vmatpush1.bf16.msra.mxu1 %v2856_v11  ;;  %1342 = vmatprep.mubr.bf16.mxu1 %v2482_v2 }
0x16b5   :  { %1312 = vmatprep.subr.bf16.mxu1 %v2867_v13 }
0x16b8   :  { %1313 = vmatpush1.bf16.msra.mxu1 %v2877_v16 }
0x16b9   :  { %1354 = vmatprep.subr.bf16.mxu1 %v2820_v59 }
0x1786   :  { %v1097_v42 = vpop.f32.mrb[20].mxu1 }
0x1787   :  { %v1098_v44 = vadd.f32 %v1097_v42, %v1012_v30  ;;  %v1099_v45 = vpop.f32.mrb[21].mxu1  ;;  %v1142_v30 = vmul.f32 %v2887_v19, %v2607_v32 }
0x1788   :  { %v1100_v46 = vadd.f32 %v1099_v45, %v1014_v33  ;;  %v1101_v48 = vpop.f32.mrb[22].mxu1 }
0x1789   :  { %v1104_v49 = vadd.f32 %v1098_v44, %v2938_v40  ;;  %v1102_v50 = vpop.f32.mrb[23].mxu1 }
0x178a   :  { %v1105_v52 = vadd.f32 %v1100_v46, %v2940_v43 }
0x178c   :  { %v1106_v53 = vsel %vm51_vm1, %v1104_v49, %v1105_v52 }
0x178d   :  { %2386 = vtanh.f32 %v1106_v53  ;;  %v2251_v56 = vmul.f32 -1.442695, %v1106_v53 }
0x178f   :  { %2388 = vpow2.f32 %v2251_v56 }
0x1797   :  { %v2387_v55 = vpop.eup %2386 }
0x1798   :  { %1120 = vrot.lane.b32.xlu1 %v2387_v55, %s2483_s22 }
0x1799   :  { %v2389_v57 = vpop.eup %2388 }
0x179a   :  { %v1110_v58 = vadd.f32 1.0, %v2389_v57 }
0x179c   :  { %2390 = vrcp.f32 %v1110_v58 }
0x17a6   :  { %v2391_v63 = vpop.eup %2390 }
0x17a7   :  { %v1118_v8 = vmul.f32 %v2391_v63, %v1116_v0 }
0x180a   :  { %v1121_v5 = vpop.permute.xlu1 %1120 }
0x180b   :  { %v1123_v7 = vmul.f32 %v2391_v63, %v1121_v5 }
0x180d   :  { %1125 = vrot.lane.b32.xlu1 %v1123_v7, %s2484_s25 }
0x187f   :  { %v1126_v20 = vpop.permute.xlu1 %1125 }
0x1880   :  { %v1128_v22 = vadd.f32 %v1126_v20, %v1118_v8 }
0x1882   :  { %2392 = vtanh.f32 %v1128_v22 }
0x188c   :  { %v2393_v1 = vpop.eup %2392 }
0x188d   :  { %1131 = vrot.lane.b32.xlu0 %v2393_v1, %s2483_s22 }
0x1891   :  { %334 = vrot.lane.b32.xlu0 %v2655_v17, %s2484_s25 }
0x1895   :  { %1145 = vrot.lane.b32.xlu0 %v1128_v22, %s2485_s26 }
0x18ff   :  { %v1132_v23 = vpop.permute.xlu0 %1131 }
0x1900   :  { %v1134_v3 = vmul.f32 %v2391_v63, %v1132_v23 }
0x1902   :  { %1138 = vrot.lane.b32.xlu1 %v1134_v3, %s2484_s25 }
0x1903   :  { %v335_v24 = vpop.permute.xlu0 %334 }
0x1904   :  { %337 = vst.msk [vmem:[#allocation3 + $0x2c] sm:$0xf0] %vm233_vm3, %v335_v24  ;;  %338 = vst.msk [vmem:[#allocation3 + $0x8] sm:$0xf0] %vm233_vm3, %v335_v24 }
0x1905   :  { %840 = vst.msk [vmem:[#allocation3 + $0x30] sm:$0xf] %vm225_vm2, %v2795_v28  ;;  %841 = vst.msk [vmem:[#allocation3 + $0xc] sm:$0xf] %vm225_vm2, %v2795_v28 }
0x1906   :  { %843 = vrot.lane.b32.xlu1 %v2795_v28, %s2484_s25 }
0x1907   :  { %v1146_v17 = vpop.permute.xlu0 %1145 }
0x1908   :  { %v1148_v27 = vmul.f32 %v1146_v17, %v2604_v31 }
0x190a   :  { %v2963_v29 = vadd.f32 %v1149_v26, %v1148_v27 }
0x190c   :  { %1260 = vrot.lane.b32.xlu0 %v2963_v29, %s2484_s25  ;;  %v1294_v17 = vmul.f32 %v2963_v29, %v2647_v9 }
0x1974   :  { %v1139_v33 = vpop.permute.xlu1 %1138 }
0x1975   :  { %v2970_v35 = vmul.f32 %v1139_v33, %v2604_v31 }
0x1977   :  { %v2973_v25 = vadd.f32 %v1142_v30, %v2970_v35  ;;  %1151 = vst.msk [vmem:[%s3381_s8] sm:$0xf] %vm225_vm2, %v2970_v35 }
0x1978   :  { %v844_v28 = vpop.permute.xlu1 %843 }
0x1979   :  { %v1160_v36 = vpack.c.bf16 %v2973_v25, %v2973_v25  ;;  %846 = vst.msk [vmem:[#allocation3 + $0x4] sm:$0xf0] %vm233_vm3, %v844_v28  ;;  %847 = vst.msk [vmem:[#allocation3 + $0x30] sm:$0xf0] %vm233_vm3, %v844_v28  ;;  %v1287_v33 = vmul.f32 %v2973_v25, %v2647_v9 }
0x197b   :  { %2253 = vmatmul.mubr.msk.bf16.vlgmr.msra.gmra.mrb[16].mxu0 %vm133_vm0, %v1160_v36 }
0x197c   :  { %1209 = vmatpush1.bf16.msra.mxu0 %v2825_v60  ;;  %1240 = vmatprep.mubr.bf16.mxu0 %v2482_v2 }
0x197d   :  { %1210 = vmatprep.subr.bf16.mxu0 %v2830_v61 }
0x197e   :  { %v1261_v0 = vpop.permute.xlu0 %1260 }
0x1980   :  { %1211 = vmatpush1.bf16.msra.mxu0 %v2843_v41  ;;  %v1158_v31 = vld [vmem:[#allocation3 + $0x8] sm:$0xff] }
0x1981   :  { %1212 = vmatprep.subr.bf16.mxu0 %v2862_v12  ;;  %v1159_v32 = vpack.c.bf16 %v1158_v31, %v1158_v31 }
0x1984   :  { %1213 = vmatpush1.bf16.msra.mxu0 %v2872_v15 }
0x1985   :  { %1214 = vmatprep.subr.bf16.mxu0 %v2882_v18 }
0x1988   :  { %1215 = vmatpush1.bf16.msra.mxu0 %v2897_v21 }
0x1989   :  { %1456 = vmatprep.subr.bf16.mxu0 %v2835_v62 }
0x198b   :  { %2254 = vmatmul.mubr.msk.bf16.vlgmr.msra.gmra.mrb[20].mxu0 %vm1059_vm4, %v1159_v32 }
0x198c   :  { %1457 = vmatpush1.bf16.msra.mxu0 %v2856_v11  ;;  %1488 = vmatprep.mubr.bf16.mxu0 %v2482_v2 }
0x198d   :  { %1458 = vmatprep.subr.bf16.mxu0 %v2867_v13 }
0x1990   :  { %1459 = vmatpush1.bf16.msra.mxu0 %v2877_v16 }
0x1991   :  { %1500 = vmatprep.subr.bf16.mxu0 %v2820_v59 }
0x1a4e   :  { %v1198_v19 = vpop.f32.mrb[16].mxu0 }
0x1a4f   :  { %v1200_v37 = vpop.f32.mrb[17].mxu0 }
0x1a50   :  { %v1202_v38 = vpop.f32.mrb[18].mxu0 }
0x1a51   :  { %v1203_v39 = vpop.f32.mrb[19].mxu0 }
0x1a5e   :  { %v1242_v42 = vpop.f32.mrb[20].mxu0 }
0x1a5f   :  { %v1243_v44 = vadd.f32 %v1242_v42, %v1198_v19  ;;  %v1244_v45 = vpop.f32.mrb[21].mxu0 }
0x1a60   :  { %v1245_v46 = vadd.f32 %v1244_v45, %v1200_v37  ;;  %v1246_v48 = vpop.f32.mrb[22].mxu0 }
0x1a61   :  { %v1249_v49 = vadd.f32 %v1243_v44, %v2938_v40  ;;  %v1247_v50 = vpop.f32.mrb[23].mxu0 }
0x1a62   :  { %v1250_v52 = vadd.f32 %v1245_v46, %v2940_v43 }
0x1a64   :  { %v1251_v53 = vsel %vm51_vm1, %v1249_v49, %v1250_v52 }
0x1a65   :  { %2394 = vtanh.f32 %v1251_v53  ;;  %v2255_v56 = vmul.f32 -1.442695, %v1251_v53 }
0x1a67   :  { %2396 = vpow2.f32 %v2255_v56 }
0x1a6f   :  { %v2395_v55 = vpop.eup %2394 }
0x1a70   :  { %1265 = vrot.lane.b32.xlu1 %v2395_v55, %s2483_s22 }
0x1a71   :  { %v2397_v57 = vpop.eup %2396 }
0x1a72   :  { %v1255_v58 = vadd.f32 1.0, %v2397_v57 }
0x1a74   :  { %2398 = vrcp.f32 %v1255_v58 }
0x1a7e   :  { %v2399_v63 = vpop.eup %2398 }
0x1a7f   :  { %v1263_v8 = vmul.f32 %v2399_v63, %v1261_v0 }
0x1ae2   :  { %v1266_v5 = vpop.permute.xlu1 %1265 }
0x1ae3   :  { %v1268_v7 = vmul.f32 %v2399_v63, %v1266_v5 }
0x1ae5   :  { %1270 = vrot.lane.b32.xlu1 %v1268_v7, %s2484_s25 }
0x1b57   :  { %v1271_v20 = vpop.permute.xlu1 %1270 }
0x1b58   :  { %v1273_v22 = vadd.f32 %v1271_v20, %v1263_v8 }
0x1b5a   :  { %2400 = vtanh.f32 %v1273_v22 }
0x1b64   :  { %v2401_v1 = vpop.eup %2400 }
0x1b65   :  { %1276 = vrot.lane.b32.xlu0 %v2401_v1, %s2483_s22 }
0x1b69   :  { %437 = vrot.lane.b32.xlu0 %v2689_v54, %s2484_s25 }
0x1b6d   :  { %1290 = vrot.lane.b32.xlu0 %v1273_v22, %s2485_s26 }
0x1bd7   :  { %v1277_v23 = vpop.permute.xlu0 %1276 }
0x1bd8   :  { %v1279_v3 = vmul.f32 %v2399_v63, %v1277_v23  ;;  %v2450_v23 = vld [vmem:[%s3380_s7 + $0x10] sm:$0xff] }
0x1bda   :  { %1283 = vrot.lane.b32.xlu1 %v1279_v3, %s2484_s25 }
0x1bdb   :  { %v438_v24 = vpop.permute.xlu0 %437 }
0x1bdc   :  { %440 = vst.msk [vmem:[#allocation3 + $0x24] sm:$0xf0] %vm233_vm3, %v438_v24  ;;  %441 = vst.msk [vmem:[#allocation3 + $0x10] sm:$0xf0] %vm233_vm3, %v438_v24 }
0x1bdd   :  { %739 = vst.msk [vmem:[#allocation3 + $0x28] sm:$0xf] %vm225_vm2, %v2773_v51  ;;  %740 = vst.msk [vmem:[#allocation3 + $0x14] sm:$0xf] %vm225_vm2, %v2773_v51 }
0x1bde   :  { %742 = vrot.lane.b32.xlu1 %v2773_v51, %s2484_s25 }
0x1bdf   :  { %v1291_v54 = vpop.permute.xlu0 %1290 }
0x1be0   :  { %v1293_v26 = vmul.f32 %v2644_v6, %v1291_v54 }
0x1be2   :  { %v3022_v27 = vadd.f32 %v1294_v17, %v1293_v26 }
0x1be4   :  { %1406 = vrot.lane.b32.xlu0 %v3022_v27, %s2484_s25  ;;  %v1440_v24 = vmul.f32 %v3022_v27, %v2683_v47 }
0x1c4c   :  { %v1284_v30 = vpop.permute.xlu1 %1283 }
0x1c4d   :  { %v3029_v28 = vmul.f32 %v2644_v6, %v1284_v30 }
0x1c4f   :  { %v3032_v51 = vadd.f32 %v1287_v33, %v3029_v28  ;;  %2257 = vst.msk [vmem:[%s3381_s8 + $0x4] sm:$0xf] %vm225_vm2, %v3029_v28 }
0x1c50   :  { %v743_v29 = vpop.permute.xlu1 %742 }
0x1c51   :  { %v1306_v36 = vpack.c.bf16 %v3032_v51, %v3032_v51  ;;  %745 = vst.msk [vmem:[#allocation3 + $0xc] sm:$0xf0] %vm233_vm3, %v743_v29  ;;  %746 = vst.msk [vmem:[#allocation3 + $0x28] sm:$0xf0] %vm233_vm3, %v743_v29  ;;  %v1433_v17 = vmul.f32 %v3032_v51, %v2683_v47 }
0x1c53   :  { %2259 = vmatmul.mubr.msk.bf16.vlgmr.msra.gmra.mrb[24].mxu1 %vm133_vm0, %v1306_v36 }
0x1c54   :  { %1355 = vmatpush1.bf16.msra.mxu1 %v2825_v60  ;;  %1386 = vmatprep.mubr.bf16.mxu1 %v2482_v2 }
0x1c55   :  { %1356 = vmatprep.subr.bf16.mxu1 %v2830_v61 }
0x1c56   :  { %v1407_v63 = vpop.permute.xlu0 %1406 }
0x1c58   :  { %1357 = vmatpush1.bf16.msra.mxu1 %v2843_v41  ;;  %v1304_v6 = vld [vmem:[#allocation3 + $0x10] sm:$0xff] }
0x1c59   :  { %1358 = vmatprep.subr.bf16.mxu1 %v2862_v12  ;;  %v1305_v9 = vpack.c.bf16 %v1304_v6, %v1304_v6 }
0x1c5c   :  { %1359 = vmatpush1.bf16.msra.mxu1 %v2872_v15 }
0x1c5d   :  { %1360 = vmatprep.subr.bf16.mxu1 %v2882_v18 }
0x1c60   :  { %1361 = vmatpush1.bf16.msra.mxu1 %v2897_v21 }
0x1c61   :  { %1602 = vmatprep.subr.bf16.mxu1 %v2835_v62 }
0x1c63   :  { %2260 = vmatmul.mubr.msk.bf16.vlgmr.msra.gmra.mrb[28].mxu1 %vm1059_vm4, %v1305_v9 }
0x1c64   :  { %1603 = vmatpush1.bf16.msra.mxu1 %v2856_v11  ;;  %1634 = vmatprep.mubr.bf16.mxu1 %v2482_v2 }
0x1c65   :  { %1604 = vmatprep.subr.bf16.mxu1 %v2867_v13 }
0x1c68   :  { %1605 = vmatpush1.bf16.msra.mxu1 %v2877_v16 }
0x1c69   :  { %1646 = vmatprep.subr.bf16.mxu1 %v2820_v59 }
0x1d26   :  { %v1344_v25 = vpop.f32.mrb[24].mxu1 }
0x1d27   :  { %v1346_v31 = vpop.f32.mrb[25].mxu1 }
0x1d28   :  { %v1348_v32 = vpop.f32.mrb[26].mxu1 }
0x1d29   :  { %v1349_v19 = vpop.f32.mrb[27].mxu1 }
0x1d36   :  { %v1388_v37 = vpop.f32.mrb[28].mxu1 }
0x1d37   :  { %v1389_v38 = vadd.f32 %v1388_v37, %v1344_v25  ;;  %v1390_v39 = vpop.f32.mrb[29].mxu1 }
0x1d38   :  { %v1391_v42 = vadd.f32 %v1390_v39, %v1346_v31  ;;  %v1392_v44 = vpop.f32.mrb[30].mxu1 }
0x1d39   :  { %v1395_v45 = vadd.f32 %v1389_v38, %v2938_v40  ;;  %v1393_v46 = vpop.f32.mrb[31].mxu1 }
0x1d3a   :  { %v1396_v48 = vadd.f32 %v1391_v42, %v2940_v43 }
0x1d3c   :  { %v1397_v49 = vsel %vm51_vm1, %v1395_v45, %v1396_v48 }
0x1d3d   :  { %2402 = vtanh.f32 %v1397_v49  ;;  %v2261_v52 = vmul.f32 -1.442695, %v1397_v49 }
0x1d3f   :  { %2404 = vpow2.f32 %v2261_v52 }
0x1d47   :  { %v2403_v50 = vpop.eup %2402 }
0x1d48   :  { %1411 = vrot.lane.b32.xlu1 %v2403_v50, %s2483_s22 }
0x1d49   :  { %v2405_v53 = vpop.eup %2404 }
0x1d4a   :  { %v1401_v55 = vadd.f32 1.0, %v2405_v53 }
0x1d4c   :  { %2406 = vrcp.f32 %v1401_v55 }
0x1d56   :  { %v2407_v56 = vpop.eup %2406 }
0x1d57   :  { %v1409_v5 = vmul.f32 %v2407_v56, %v1407_v63 }
0x1dba   :  { %v1412_v57 = vpop.permute.xlu1 %1411 }
0x1dbb   :  { %v1414_v58 = vmul.f32 %v2407_v56, %v1412_v57 }
0x1dbd   :  { %1416 = vrot.lane.b32.xlu1 %v1414_v58, %s2484_s25 }
0x1e2f   :  { %v1417_v7 = vpop.permute.xlu1 %1416 }
0x1e30   :  { %v1419_v0 = vadd.f32 %v1417_v7, %v1409_v5  ;;  %v2268_v5 = vld [vmem:[%s3380_s7 + $0x18] sm:$0xff] }
0x1e32   :  { %2408 = vtanh.f32 %v1419_v0 }
0x1e3c   :  { %v2409_v8 = vpop.eup %2408 }
0x1e3d   :  { %1422 = vrot.lane.b32.xlu0 %v2409_v8, %s2483_s22  ;;  %v1573_v8 = vsub.f32 1.0, %v2268_v5 }
0x1e41   :  { %540 = vrot.lane.b32.xlu0 %v2719_v34, %s2484_s25 }
0x1e45   :  { %1436 = vrot.lane.b32.xlu0 %v1419_v0, %s2485_s26 }
0x1eaf   :  { %v1423_v20 = vpop.permute.xlu0 %1422 }
0x1eb0   :  { %v1425_v22 = vmul.f32 %v2407_v56, %v1423_v20 }
0x1eb2   :  { %1429 = vrot.lane.b32.xlu1 %v1425_v22, %s2484_s25 }
0x1eb3   :  { %v541_v1 = vpop.permute.xlu0 %540 }
0x1eb4   :  { %543 = vst.msk [vmem:[#allocation3 + $0x1c] sm:$0xf0] %vm233_vm3, %v541_v1  ;;  %544 = vst.msk [vmem:[#allocation3 + $0x18] sm:$0xf0] %vm233_vm3, %v541_v1 }
0x1eb5   :  { %638 = vst.msk [vmem:[#allocation3 + $0x20] sm:$0xf] %vm225_vm2, %v2748_v14  ;;  %639 = vst.msk [vmem:[#allocation3 + $0x1c] sm:$0xf] %vm225_vm2, %v2748_v14 }
0x1eb6   :  { %641 = vrot.lane.b32.xlu1 %v2748_v14, %s2484_s25 }
0x1eb7   :  { %v1437_v34 = vpop.permute.xlu0 %1436 }
0x1eb8   :  { %v1439_v3 = vmul.f32 %v2450_v23, %v1437_v34 }
0x1eba   :  { %v3083_v54 = vadd.f32 %v1440_v24, %v1439_v3 }
0x1ebc   :  { %1552 = vrot.lane.b32.xlu0 %v3083_v54, %s2484_s25  ;;  %v1586_v1 = vmul.f32 %v1573_v8, %v3083_v54 }
0x1f24   :  { %v1430_v26 = vpop.permute.xlu1 %1429 }
0x1f25   :  { %v3089_v30 = vmul.f32 %v2450_v23, %v1430_v26 }
0x1f27   :  { %v3092_v14 = vadd.f32 %v1433_v17, %v3089_v30  ;;  %2263 = vst.msk [vmem:[%s3381_s8 + $0x8] sm:$0xf] %vm225_vm2, %v3089_v30 }
0x1f28   :  { %v642_v27 = vpop.permute.xlu1 %641 }
0x1f29   :  { %v1452_v33 = vpack.c.bf16 %v3092_v14, %v3092_v14  ;;  %644 = vst.msk [vmem:[#allocation3 + $0x14] sm:$0xf0] %vm233_vm3, %v642_v27  ;;  %645 = vst.msk [vmem:[#allocation3 + $0x20] sm:$0xf0] %vm233_vm3, %v642_v27  ;;  %v1579_v3 = vmul.f32 %v1573_v8, %v3092_v14 }
0x1f2b   :  { %2265 = vmatmul.mubr.msk.bf16.vlgmr.msra.gmra.mrb[24].mxu0 %vm133_vm0, %v1452_v33 }
0x1f2c   :  { %1501 = vmatpush1.bf16.msra.mxu0 %v2825_v60  ;;  %1532 = vmatprep.mubr.bf16.mxu0 %v2482_v2 }
0x1f2d   :  { %1502 = vmatprep.subr.bf16.mxu0 %v2830_v61 }
0x1f2e   :  { %v1553_v55 = vpop.permute.xlu0 %1552 }
0x1f30   :  { %1503 = vmatpush1.bf16.msra.mxu0 %v2843_v41  ;;  %v1450_v47 = vld [vmem:[#allocation3 + $0x18] sm:$0xff]  ;;  %v1596_v17 = vld [vmem:[#allocation3 + $0x20] sm:$0xff] }
0x1f31   :  { %1504 = vmatprep.subr.bf16.mxu0 %v2862_v12  ;;  %v1451_v51 = vpack.c.bf16 %v1450_v47, %v1450_v47  ;;  %v1597_v14 = vpack.c.bf16 %v1596_v17, %v1596_v17 }
0x1f34   :  { %1505 = vmatpush1.bf16.msra.mxu0 %v2872_v15 }
0x1f35   :  { %1506 = vmatprep.subr.bf16.mxu0 %v2882_v18 }
0x1f38   :  { %1507 = vmatpush1.bf16.msra.mxu0 %v2897_v21 }
0x1f39   :  { %1746 = vmatprep.subr.bf16.mxu0 %v2835_v62 }
0x1f3b   :  { %2266 = vmatmul.mubr.msk.bf16.vlgmr.msra.gmra.mrb[28].mxu0 %vm1059_vm4, %v1451_v51 }
0x1f3c   :  { %1747 = vmatpush1.bf16.msra.mxu0 %v2856_v11  ;;  %1778 = vmatprep.mubr.bf16.mxu0 %v2482_v2 }
0x1f3d   :  { %1748 = vmatprep.subr.bf16.mxu0 %v2867_v13 }
0x1f40   :  { %1749 = vmatpush1.bf16.msra.mxu0 %v2877_v16 }
0x1f41   :  { %1790 = vmatprep.subr.bf16.mxu0 %v2820_v59 }
0x1ffe   :  { %v1490_v29 = vpop.f32.mrb[24].mxu0 }
0x1fff   :  { %v1492_v36 = vpop.f32.mrb[25].mxu0 }
0x2000   :  { %v1494_v6 = vpop.f32.mrb[26].mxu0 }
0x2001   :  { %v1495_v9 = vpop.f32.mrb[27].mxu0 }
0x200e   :  { %v1534_v25 = vpop.f32.mrb[28].mxu0 }
0x200f   :  { %v1535_v31 = vadd.f32 %v1534_v25, %v1490_v29  ;;  %v1536_v32 = vpop.f32.mrb[29].mxu0 }
0x2010   :  { %v1537_v19 = vadd.f32 %v1536_v32, %v1492_v36  ;;  %v1538_v37 = vpop.f32.mrb[30].mxu0 }
0x2011   :  { %v1541_v38 = vadd.f32 %v1535_v31, %v2938_v40  ;;  %v1539_v39 = vpop.f32.mrb[31].mxu0 }
0x2012   :  { %v1542_v42 = vadd.f32 %v1537_v19, %v2940_v43 }
0x2014   :  { %v1543_v44 = vsel %vm51_vm1, %v1541_v38, %v1542_v42 }
0x2015   :  { %2410 = vtanh.f32 %v1543_v44  ;;  %v2267_v46 = vmul.f32 -1.442695, %v1543_v44 }
0x2017   :  { %2412 = vpow2.f32 %v2267_v46 }
0x201f   :  { %v2411_v45 = vpop.eup %2410 }
0x2020   :  { %1557 = vrot.lane.b32.xlu1 %v2411_v45, %s2483_s22 }
0x2021   :  { %v2413_v48 = vpop.eup %2412 }
0x2022   :  { %v1547_v49 = vadd.f32 1.0, %v2413_v48 }
0x2024   :  { %2414 = vrcp.f32 %v1547_v49 }
0x202e   :  { %v2415_v50 = vpop.eup %2414 }
0x202f   :  { %v1555_v56 = vmul.f32 %v2415_v50, %v1553_v55 }
0x2092   :  { %v1558_v52 = vpop.permute.xlu1 %1557 }
0x2093   :  { %v1560_v53 = vmul.f32 %v2415_v50, %v1558_v52 }
0x2095   :  { %1562 = vrot.lane.b32.xlu1 %v1560_v53, %s2484_s25 }
0x2107   :  { %v1563_v57 = vpop.permute.xlu1 %1562 }
0x2108   :  { %v1565_v58 = vadd.f32 %v1563_v57, %v1555_v56  ;;  %v2274_v56 = vld [vmem:[%s3380_s7 + $0x20] sm:$0xff] }
0x210a   :  { %2416 = vtanh.f32 %v1565_v58 }
0x2114   :  { %v2417_v63 = vpop.eup %2416 }
0x2115   :  { %1568 = vrot.lane.b32.xlu0 %v2417_v63, %s2483_s22  ;;  %v1719_v63 = vsub.f32 1.0, %v2274_v56 }
0x2119   :  { %1582 = vrot.lane.b32.xlu0 %v1565_v58, %s2485_s26 }
0x2187   :  { %v1569_v7 = vpop.permute.xlu0 %1568 }
0x2188   :  { %v1571_v0 = vmul.f32 %v2415_v50, %v1569_v7 }
0x218a   :  { %1575 = vrot.lane.b32.xlu1 %v1571_v0, %s2484_s25 }
0x218b   :  { %v1583_v20 = vpop.permute.xlu0 %1582 }
0x218c   :  { %v1585_v22 = vmul.f32 %v2268_v5, %v1583_v20 }
0x218e   :  { %v3132_v34 = vadd.f32 %v1586_v1, %v1585_v22 }
0x2190   :  { %1698 = vrot.lane.b32.xlu0 %v3132_v34, %s2484_s25  ;;  %v1732_v0 = vmul.f32 %v1719_v63, %v3132_v34  ;;  %v1740_v34 = vld [vmem:[#allocation3 + $0x28] sm:$0xff] }
0x21fc   :  { %v1576_v23 = vpop.permute.xlu1 %1575 }
0x21fd   :  { %v3137_v24 = vmul.f32 %v2268_v5, %v1576_v23 }
0x21ff   :  { %v3140_v26 = vadd.f32 %v1579_v3, %v3137_v24  ;;  %2269 = vst.msk [vmem:[%s3381_s8 + $0xc] sm:$0xf] %vm225_vm2, %v3137_v24 }
0x2201   :  { %v1598_v54 = vpack.c.bf16 %v3140_v26, %v3140_v26  ;;  %v1725_v22 = vmul.f32 %v1719_v63, %v3140_v26  ;;  %v1741_v26 = vpack.c.bf16 %v1740_v34, %v1740_v34 }
0x2202   :  { %v1699_v49 = vpop.permute.xlu0 %1698 }
0x2203   :  { %2271 = vmatmul.mubr.msk.bf16.vlgmr.msra.gmra.mrb[32].mxu1 %vm133_vm0, %v1598_v54 }
0x2204   :  { %1647 = vmatpush1.bf16.msra.mxu1 %v2825_v60  ;;  %1678 = vmatprep.mubr.bf16.mxu1 %v2482_v2 }
0x2205   :  { %1648 = vmatprep.subr.bf16.mxu1 %v2830_v61 }
0x2208   :  { %1649 = vmatpush1.bf16.msra.mxu1 %v2843_v41 }
0x2209   :  { %1650 = vmatprep.subr.bf16.mxu1 %v2862_v12 }
0x220c   :  { %1651 = vmatpush1.bf16.msra.mxu1 %v2872_v15 }
0x220d   :  { %1652 = vmatprep.subr.bf16.mxu1 %v2882_v18 }
0x2210   :  { %1653 = vmatpush1.bf16.msra.mxu1 %v2897_v21 }
0x2211   :  { %1890 = vmatprep.subr.bf16.mxu1 %v2835_v62 }
0x2213   :  { %2272 = vmatmul.mubr.msk.bf16.vlgmr.msra.gmra.mrb[36].mxu1 %vm1059_vm4, %v1597_v14 }
0x2214   :  { %1891 = vmatpush1.bf16.msra.mxu1 %v2856_v11  ;;  %1922 = vmatprep.mubr.bf16.mxu1 %v2482_v2 }
0x2215   :  { %1892 = vmatprep.subr.bf16.mxu1 %v2867_v13 }
0x2218   :  { %1893 = vmatpush1.bf16.msra.mxu1 %v2877_v16 }
0x2219   :  { %1934 = vmatprep.subr.bf16.mxu1 %v2820_v59 }
0x22d6   :  { %v1636_v27 = vpop.f32.mrb[32].mxu1 }
0x22d7   :  { %v1638_v33 = vpop.f32.mrb[33].mxu1 }
0x22d8   :  { %v1640_v47 = vpop.f32.mrb[34].mxu1 }
0x22d9   :  { %v1641_v51 = vpop.f32.mrb[35].mxu1 }
0x22e6   :  { %v1680_v29 = vpop.f32.mrb[36].mxu1 }
0x22e7   :  { %v1681_v36 = vadd.f32 %v1680_v29, %v1636_v27  ;;  %v1682_v6 = vpop.f32.mrb[37].mxu1 }
0x22e8   :  { %v1683_v9 = vadd.f32 %v1682_v6, %v1638_v33  ;;  %v1684_v25 = vpop.f32.mrb[38].mxu1 }
0x22e9   :  { %v1687_v31 = vadd.f32 %v1681_v36, %v2938_v40  ;;  %v1685_v32 = vpop.f32.mrb[39].mxu1 }
0x22ea   :  { %v1688_v19 = vadd.f32 %v1683_v9, %v2940_v43 }
0x22ec   :  { %v1689_v37 = vsel %vm51_vm1, %v1687_v31, %v1688_v19 }
0x22ed   :  { %2418 = vtanh.f32 %v1689_v37  ;;  %v2273_v39 = vmul.f32 -1.442695, %v1689_v37 }
0x22ef   :  { %2420 = vpow2.f32 %v2273_v39 }
0x22f7   :  { %v2419_v38 = vpop.eup %2418 }
0x22f8   :  { %1703 = vrot.lane.b32.xlu1 %v2419_v38, %s2483_s22 }
0x22f9   :  { %v2421_v42 = vpop.eup %2420 }
0x22fa   :  { %v1693_v44 = vadd.f32 1.0, %v2421_v42 }
0x22fc   :  { %2422 = vrcp.f32 %v1693_v44 }
0x2306   :  { %v2423_v45 = vpop.eup %2422 }
0x2307   :  { %v1701_v50 = vmul.f32 %v2423_v45, %v1699_v49 }
0x236a   :  { %v1704_v46 = vpop.permute.xlu1 %1703 }
0x236b   :  { %v1706_v48 = vmul.f32 %v2423_v45, %v1704_v46 }
0x236d   :  { %1708 = vrot.lane.b32.xlu1 %v1706_v48, %s2484_s25 }
0x23df   :  { %v1709_v52 = vpop.permute.xlu1 %1708 }
0x23e0   :  { %v1711_v53 = vadd.f32 %v1709_v52, %v1701_v50 }
0x23e2   :  { %2424 = vtanh.f32 %v1711_v53 }
0x23ec   :  { %v2425_v55 = vpop.eup %2424 }
0x23ed   :  { %1714 = vrot.lane.b32.xlu0 %v2425_v55, %s2483_s22 }
0x23f1   :  { %1728 = vrot.lane.b32.xlu0 %v1711_v53, %s2485_s26 }
0x245f   :  { %v1715_v57 = vpop.permute.xlu0 %1714 }
0x2460   :  { %v1717_v58 = vmul.f32 %v2423_v45, %v1715_v57  ;;  %v2280_v45 = vld [vmem:[%s3380_s7 + $0x28] sm:$0xff] }
0x2461   :  { %v1863_v49 = vsub.f32 1.0, %v2280_v45 }
0x2462   :  { %1721 = vrot.lane.b32.xlu1 %v1717_v58, %s2484_s25 }
0x2463   :  { %v1729_v5 = vpop.permute.xlu0 %1728 }
0x2464   :  { %v1731_v7 = vmul.f32 %v2274_v56, %v1729_v5 }
0x2466   :  { %v3178_v8 = vadd.f32 %v1732_v0, %v1731_v7  ;;  %v1884_v7 = vld [vmem:[#allocation3 + $0x30] sm:$0xff] }
0x2467   :  { %v1885_v0 = vpack.c.bf16 %v1884_v7, %v1884_v7 }
0x2468   :  { %1842 = vrot.lane.b32.xlu0 %v3178_v8, %s2484_s25  ;;  %v1876_v53 = vmul.f32 %v1863_v49, %v3178_v8 }
0x24d4   :  { %v1722_v20 = vpop.permute.xlu1 %1721 }
0x24d5   :  { %v3183_v1 = vmul.f32 %v2274_v56, %v1722_v20 }
0x24d7   :  { %v3186_v23 = vadd.f32 %v1725_v22, %v3183_v1 }
0x24d9   :  { %v1742_v3 = vpack.c.bf16 %v3186_v23, %v3186_v23  ;;  %v1869_v57 = vmul.f32 %v1863_v49, %v3186_v23  ;;  %v2455_v49 = vld [vmem:[%s3374_s1 + $0x20] ss:$8 sps:$4 sm:$0xff]  }
0x24da   :  { %v1843_v37 = vpop.permute.xlu0 %1842 }
0x24db   :  { %2277 = vmatmul.mubr.msk.bf16.vlgmr.msra.gmra.mrb[32].mxu0 %vm133_vm0, %v1742_v3 }
0x24dc   :  { %1791 = vmatpush1.bf16.msra.mxu0 %v2825_v60  ;;  %1822 = vmatprep.mubr.bf16.mxu0 %v2482_v2 }
0x24dd   :  { %1792 = vmatprep.subr.bf16.mxu0 %v2830_v61 }
0x24e0   :  { %1793 = vmatpush1.bf16.msra.mxu0 %v2843_v41 }
0x24e1   :  { %1794 = vmatprep.subr.bf16.mxu0 %v2862_v12 }
0x24e4   :  { %1795 = vmatpush1.bf16.msra.mxu0 %v2872_v15 }
0x24e5   :  { %1796 = vmatprep.subr.bf16.mxu0 %v2882_v18 }
0x24e8   :  { %1797 = vmatpush1.bf16.msra.mxu0 %v2897_v21 }
0x24e9   :  { %2034 = vmatprep.subr.bf16.mxu0 %v2835_v62 }
0x24eb   :  { %2278 = vmatmul.mubr.msk.bf16.vlgmr.msra.gmra.mrb[36].mxu0 %vm1059_vm4, %v1741_v26 }
0x24ec   :  { %2035 = vmatpush1.bf16.msra.mxu0 %v2856_v11  ;;  %2066 = vmatprep.mubr.bf16.mxu0 %v2482_v2 }
0x24ed   :  { %2036 = vmatprep.subr.bf16.mxu0 %v2867_v13 }
0x24f0   :  { %2037 = vmatpush1.bf16.msra.mxu0 %v2877_v16 }
0x24f1   :  { %2078 = vmatprep.subr.bf16.mxu0 %v2820_v59 }
0x25ae   :  { %v1780_v54 = vpop.f32.mrb[32].mxu0 }
0x25af   :  { %v1782_v17 = vpop.f32.mrb[33].mxu0 }
0x25b0   :  { %v1784_v14 = vpop.f32.mrb[34].mxu0 }
0x25b1   :  { %v1785_v27 = vpop.f32.mrb[35].mxu0 }
0x25be   :  { %v1824_v33 = vpop.f32.mrb[36].mxu0 }
0x25bf   :  { %v1825_v47 = vadd.f32 %v1824_v33, %v1780_v54  ;;  %v1826_v51 = vpop.f32.mrb[37].mxu0 }
0x25c0   :  { %v1827_v62 = vadd.f32 %v1826_v51, %v1782_v17  ;;  %v1828_v29 = vpop.f32.mrb[38].mxu0 }
0x25c1   :  { %v1831_v36 = vadd.f32 %v1825_v47, %v2938_v40  ;;  %v1829_v11 = vpop.f32.mrb[39].mxu0 }
0x25c2   :  { %v1832_v6 = vadd.f32 %v1827_v62, %v2940_v43 }
0x25c4   :  { %v1833_v13 = vsel %vm51_vm1, %v1831_v36, %v1832_v6  ;;  %v2286_v6 = vld [vmem:[%s3380_s7 + $0x30] sm:$0xff] }
0x25c5   :  { %2426 = vtanh.f32 %v1833_v13  ;;  %v2279_v59 = vmul.f32 -1.442695, %v1833_v13 }
0x25c7   :  { %2428 = vpow2.f32 %v2279_v59  ;;  %v2007_v59 = vsub.f32 1.0, %v2286_v6 }
0x25cf   :  { %v2427_v16 = vpop.eup %2426 }
0x25d0   :  { %1847 = vrot.lane.b32.xlu1 %v2427_v16, %s2483_s22 }
0x25d1   :  { %v2429_v9 = vpop.eup %2428 }
0x25d2   :  { %v1837_v25 = vadd.f32 1.0, %v2429_v9 }
0x25d4   :  { %2430 = vrcp.f32 %v1837_v25 }
0x25de   :  { %v2431_v31 = vpop.eup %2430 }
0x25df   :  { %v1845_v38 = vmul.f32 %v2431_v31, %v1843_v37 }
0x2642   :  { %v1848_v32 = vpop.permute.xlu1 %1847 }
0x2643   :  { %v1850_v19 = vmul.f32 %v2431_v31, %v1848_v32 }
0x2645   :  { %1852 = vrot.lane.b32.xlu1 %v1850_v19, %s2484_s25 }
0x26b7   :  { %v1853_v39 = vpop.permute.xlu1 %1852 }
0x26b8   :  { %v1855_v42 = vadd.f32 %v1853_v39, %v1845_v38 }
0x26ba   :  { %2432 = vtanh.f32 %v1855_v42 }
0x26c4   :  { %v2433_v44 = vpop.eup %2432 }
0x26c5   :  { %1858 = vrot.lane.b32.xlu0 %v2433_v44, %s2483_s22  ;;  %v2451_v44 = vld [vmem:[%s3374_s1] ss:$8 sps:$4 sm:$0xff]  }
0x26c9   :  { %1872 = vrot.lane.b32.xlu0 %v1855_v42, %s2485_s26 }
0x2737   :  { %v1859_v46 = vpop.permute.xlu0 %1858 }
0x2738   :  { %v1861_v48 = vmul.f32 %v2431_v31, %v1859_v46  ;;  %v2453_v46 = vld [vmem:[%s3374_s1 + $0x10] ss:$8 sps:$4 sm:$0xff]  }
0x273a   :  { %1865 = vrot.lane.b32.xlu1 %v1861_v48, %s2484_s25  ;;  %v2454_v48 = vld [vmem:[%s3374_s1 + $0x24] ss:$8 sps:$4 sm:$0xff]  }
0x273b   :  { %v1873_v50 = vpop.permute.xlu0 %1872 }
0x273c   :  { %v1875_v52 = vmul.f32 %v2280_v45, %v1873_v50  ;;  %v2028_v50 = vld [vmem:[#allocation3 + $0x38] sm:$0xff] }
0x273e   :  { %v1877_v55 = vadd.f32 %v1876_v53, %v1875_v52  ;;  %v2457_v52 = vld [vmem:[%s3374_s1 + $0x30] ss:$8 sps:$4 sm:$0xff]   ;;  %v2029_v53 = vpack.c.bf16 %v2028_v50, %v2028_v50 }
0x2740   :  { %1986 = vrot.lane.b32.xlu0 %v1877_v55, %s2484_s25  ;;  %v2020_v31 = vmul.f32 %v2007_v59, %v1877_v55 }
0x27ac   :  { %v1866_v56 = vpop.permute.xlu1 %1865 }
0x27ad   :  { %v3221_v58 = vmul.f32 %v2280_v45, %v1866_v56  ;;  %v2452_v45 = vld [vmem:[%s3374_s1 + $0x14] ss:$8 sps:$4 sm:$0xff]  }
0x27af   :  { %v1870_v63 = vadd.f32 %v1869_v57, %v3221_v58 }
0x27b1   :  { %v1886_v5 = vpack.c.bf16 %v1870_v63, %v1870_v63  ;;  %v2013_v37 = vmul.f32 %v2007_v59, %v1870_v63 }
0x27b2   :  { %v1987_v51 = vpop.permute.xlu0 %1986 }
0x27b3   :  { %2283 = vmatmul.mubr.msk.bf16.vlgmr.msra.gmra.mrb[40].mxu1 %vm133_vm0, %v1886_v5 }
0x27b4   :  { %1935 = vmatpush1.bf16.msra.mxu1 %v2825_v60  ;;  %1966 = vmatprep.mubr.bf16.mxu1 %v2482_v2 }
0x27b5   :  { %1936 = vmatprep.subr.bf16.mxu1 %v2830_v61 }
0x27b8   :  { %1937 = vmatpush1.bf16.msra.mxu1 %v2843_v41 }
0x27b9   :  { %1938 = vmatprep.subr.bf16.mxu1 %v2862_v12 }
0x27bc   :  { %1939 = vmatpush1.bf16.msra.mxu1 %v2872_v15 }
0x27bd   :  { %1940 = vmatprep.subr.bf16.mxu1 %v2882_v18 }
0x27c0   :  { %1941 = vmatpush1.bf16.msra.mxu1 %v2897_v21 }
0x27c3   :  { %2284 = vmatmul.mubr.msk.bf16.vlgmr.msra.gmra.mrb[44].mxu1 %vm1059_vm4, %v1885_v0 }
0x2886   :  { %v1924_v8 = vpop.f32.mrb[40].mxu1 }
0x2887   :  { %v1926_v60 = vpop.f32.mrb[41].mxu1 }
0x2888   :  { %v1928_v20 = vpop.f32.mrb[42].mxu1 }
0x2889   :  { %v1929_v22 = vpop.f32.mrb[43].mxu1 }
0x2896   :  { %v1968_v23 = vpop.f32.mrb[44].mxu1 }
0x2897   :  { %v1969_v61 = vadd.f32 %v1968_v23, %v1924_v8  ;;  %v1970_v3 = vpop.f32.mrb[45].mxu1 }
0x2898   :  { %v1971_v41 = vadd.f32 %v1970_v3, %v1926_v60  ;;  %v1972_v34 = vpop.f32.mrb[46].mxu1 }
0x2899   :  { %v1975_v12 = vadd.f32 %v1969_v61, %v2938_v40  ;;  %v1973_v15 = vpop.f32.mrb[47].mxu1 }
0x289a   :  { %v1976_v18 = vadd.f32 %v1971_v41, %v2940_v43 }
0x289c   :  { %v1977_v21 = vsel %vm51_vm1, %v1975_v12, %v1976_v18 }
0x289d   :  { %2434 = vtanh.f32 %v1977_v21  ;;  %v2285_v54 = vmul.f32 -1.442695, %v1977_v21 }
0x289f   :  { %2436 = vpow2.f32 %v2285_v54 }
0x28a7   :  { %v2435_v26 = vpop.eup %2434 }
0x28a8   :  { %1991 = vrot.lane.b32.xlu1 %v2435_v26, %s2483_s22 }
0x28a9   :  { %v2437_v17 = vpop.eup %2436 }
0x28aa   :  { %v1981_v14 = vadd.f32 1.0, %v2437_v17 }
0x28ac   :  { %2438 = vrcp.f32 %v1981_v14 }
0x28b6   :  { %v2439_v27 = vpop.eup %2438 }
0x28b7   :  { %v1989_v62 = vmul.f32 %v2439_v27, %v1987_v51 }
0x291a   :  { %v1992_v33 = vpop.permute.xlu1 %1991 }
0x291b   :  { %v1994_v47 = vmul.f32 %v2439_v27, %v1992_v33 }
0x291d   :  { %1996 = vrot.lane.b32.xlu1 %v1994_v47, %s2484_s25 }
0x298f   :  { %v1997_v29 = vpop.permute.xlu1 %1996 }
0x2990   :  { %v1999_v36 = vadd.f32 %v1997_v29, %v1989_v62 }
0x2992   :  { %2440 = vtanh.f32 %v1999_v36 }
0x299c   :  { %v2441_v11 = vpop.eup %2440 }
0x299d   :  { %2002 = vrot.lane.b32.xlu0 %v2441_v11, %s2483_s22 }
0x29a1   :  { %2016 = vrot.lane.b32.xlu0 %v1999_v36, %s2485_s26 }
0x2a0f   :  { %v2003_v13 = vpop.permute.xlu0 %2002 }
0x2a10   :  { %v2005_v16 = vmul.f32 %v2439_v27, %v2003_v13 }
0x2a12   :  { %2009 = vrot.lane.b32.xlu1 %v2005_v16, %s2484_s25 }
0x2a13   :  { %v2017_v9 = vpop.permute.xlu0 %2016 }
0x2a14   :  { %v2019_v25 = vmul.f32 %v2286_v6, %v2017_v9 }
0x2a16   :  { %v2021_v32 = vadd.f32 %v2020_v31, %v2019_v25 }
0x2a18   :  { %2130 = vrot.lane.b32.xlu0 %v2021_v32, %s2484_s25 }
0x2a84   :  { %v2010_v19 = vpop.permute.xlu1 %2009 }
0x2a85   :  { %v3247_v38 = vmul.f32 %v2286_v6, %v2010_v19 }
0x2a87   :  { %v3250_v39 = vadd.f32 %v2013_v37, %v3247_v38 }
0x2a89   :  { %v2030_v42 = vpack.c.bf16 %v3250_v39, %v3250_v39 }
0x2a8b   :  { %2289 = vmatmul.mubr.msk.bf16.vlgmr.msra.gmra.mrb[40].mxu0 %vm133_vm0, %v2030_v42 }
0x2a8c   :  { %2079 = vmatpush1.bf16.msra.mxu0 %v2451_v44  ;;  %2110 = vmatprep.mubr.bf16.mxu0 %v2482_v2  ;;  %v2456_v2 = vld [vmem:[%s3374_s1 + $0x34] ss:$8 sps:$4 sm:$0xff]  }
0x2a8d   :  { %2080 = vmatprep.subr.bf16.mxu0 %v2452_v45 }
0x2a90   :  { %2081 = vmatpush1.bf16.msra.mxu0 %v2453_v46 }
0x2a91   :  { %2082 = vmatprep.subr.bf16.mxu0 %v2454_v48 }
0x2a94   :  { %2083 = vmatpush1.bf16.msra.mxu0 %v2455_v49 }
0x2a95   :  { %2084 = vmatprep.subr.bf16.mxu0 %v2456_v2 }
0x2a98   :  { %2085 = vmatpush1.bf16.msra.mxu0 %v2457_v52 }
0x2a9b   :  { %2290 = vmatmul.mubr.msk.bf16.vlgmr.msra.gmra.mrb[44].mxu0 %vm1059_vm4, %v2029_v53 }
0x2b5e   :  { %v2068_v55 = vpop.f32.mrb[40].mxu0 }
0x2b5f   :  { %v2070_v56 = vpop.f32.mrb[41].mxu0 }
0x2b60   :  { %v2072_v57 = vpop.f32.mrb[42].mxu0 }
0x2b61   :  { %v2073_v63 = vpop.f32.mrb[43].mxu0 }
0x2b6e   :  { %v2112_v5 = vpop.f32.mrb[44].mxu0 }
0x2b6f   :  { %v2113_v7 = vadd.f32 %v2112_v5, %v2068_v55  ;;  %v2114_v0 = vpop.f32.mrb[45].mxu0 }
0x2b70   :  { %v2115_v8 = vadd.f32 %v2114_v0, %v2070_v56  ;;  %v2116_v60 = vpop.f32.mrb[46].mxu0 }
0x2b71   :  { %v2119_v20 = vadd.f32 %v2113_v7, %v2938_v40  ;;  %v2117_v22 = vpop.f32.mrb[47].mxu0  ;;  %v2131_v40 = vpop.permute.xlu0 %2130 }
0x2b72   :  { %v2120_v23 = vadd.f32 %v2115_v8, %v2940_v43 }
0x2b74   :  { %v2121_v61 = vsel %vm51_vm1, %v2119_v20, %v2120_v23 }
0x2b75   :  { %2442 = vtanh.f32 %v2121_v61  ;;  %v2291_v41 = vmul.f32 -1.442695, %v2121_v61 }
0x2b77   :  { %2444 = vpow2.f32 %v2291_v41 }
0x2b7f   :  { %v2443_v3 = vpop.eup %2442 }
0x2b80   :  { %2135 = vrot.lane.b32.xlu1 %v2443_v3, %s2483_s22 }
0x2b81   :  { %v2445_v34 = vpop.eup %2444 }
0x2b82   :  { %v2125_v12 = vadd.f32 1.0, %v2445_v34 }
0x2b84   :  { %2446 = vrcp.f32 %v2125_v12 }
0x2b8e   :  { %v2447_v15 = vpop.eup %2446 }
0x2b8f   :  { %v2133_v26 = vmul.f32 %v2447_v15, %v2131_v40 }
0x2bf2   :  { %v2136_v18 = vpop.permute.xlu1 %2135 }
0x2bf3   :  { %v2138_v21 = vmul.f32 %v2447_v15, %v2136_v18 }
0x2bf5   :  { %2140 = vrot.lane.b32.xlu1 %v2138_v21, %s2484_s25 }
0x2c67   :  { %v2141_v43 = vpop.permute.xlu1 %2140 }
0x2c68   :  { %v2143_v54 = vadd.f32 %v2141_v43, %v2133_v26 }
0x2c6a   :  { %2448 = vtanh.f32 %v2143_v54 }
0x2c74   :  { %v2449_v10 = vpop.eup %2448 }
0x2c75   :  { %2146 = vrot.lane.b32.xlu0 %v2449_v10, %s2483_s22 }
0x2c79   :  { %944 = vrot.lane.b32.xlu0 %v2913_v4, %s2484_s25 }
0x2c7d   :  { %1153 = vrot.lane.b32.xlu0 %v2970_v35, %s2484_s25 }
0x2c81   :  { %1445 = vrot.lane.b32.xlu0 %v3089_v30, %s2484_s25  ;;  %v2292_v30 = vld [vmem:[%s3380_s7 + $0x38] sm:$0xff] }
0x2c85   :  { %1880 = vrot.lane.b32.xlu0 %v3221_v58, %s2484_s25 }
0x2ce7   :  { %v2147_v17 = vpop.permute.xlu0 %2146 }
0x2ce8   :  { %v2149_v14 = vmul.f32 %v2447_v15, %v2147_v17 }
0x2cea   :  { %2153 = vrot.lane.b32.xlu1 %v2149_v14, %s2484_s25 }
0x2ceb   :  { %v945_v27 = vpop.permute.xlu0 %944 }
0x2cec   :  { %947 = vst.msk [vmem:[#allocation4 - $0x4] sm:$0xf0] %vm233_vm3, %v945_v27 }
0x2cee   :  { %1299 = vrot.lane.b32.xlu1 %v3029_v28, %s2484_s25 }
0x2cef   :  { %v1154_v4 = vpop.permute.xlu0 %1153 }
0x2cf0   :  { %2252 = vst.msk [vmem:[%s3381_s8 + $0x18] sm:$0xf0] %vm233_vm3, %v1154_v4 }
0x2cf2   :  { %1591 = vrot.lane.b32.xlu1 %v3137_v24, %s2484_s25  ;;  %v2151_v24 = vsub.f32 1.0, %v2292_v30 }
0x2cf3   :  { %v1446_v35 = vpop.permute.xlu0 %1445 }
0x2cf4   :  { %2264 = vst.msk [vmem:[%s3381_s8 + $0x10] sm:$0xf0] %vm233_vm3, %v1446_v35  ;;  %v2157_v47 = vmul.f32 %v2151_v24, %v3250_v39 }
0x2cf5   :  { %2281 = vst.msk [vmem:[%s3381_s8 + $0x14] sm:$0xf] %vm225_vm2, %v3221_v58 }
0x2cf6   :  { %1736 = vrot.lane.b32.xlu1 %v3183_v1, %s2484_s25 }
0x2cf7   :  { %v1881_v28 = vpop.permute.xlu0 %1880 }
0x2cf8   :  { %2282 = vst.msk [vmem:[%s3381_s8 + $0x4] sm:$0xf0] %vm233_vm3, %v1881_v28 }
0x2d5c   :  { %v2154_v33 = vpop.permute.xlu1 %2153 }
0x2d5d   :  { %v2156_v51 = vmul.f32 %v2292_v30, %v2154_v33 }
0x2d5f   :  { %v2158_v62 = vadd.f32 %v2157_v47, %v2156_v51  ;;  %2293 = vst.msk [vmem:[%s3381_s8 + $0x1c] sm:$0xf] %vm225_vm2, %v2156_v51 }
0x2d60   :  { %v1300_v58 = vpop.permute.xlu1 %1299 }
0x2d61   :  { %2258 = vst.msk [vmem:[%s3381_s8 + $0x14] sm:$0xf0] %vm233_vm3, %v1300_v58  ;;  %2171 = vrot.lane.b32.xlu0 %v2158_v62, %s2485_s26  ;;  %2166 = vrot.lane.b32.xlu1 %v2158_v62, %s2483_s22 }
0x2d62   :  { %2287 = vst.msk [vmem:[%s3381_s8 + $0x18] sm:$0xf] %vm225_vm2, %v3247_v38 }
0x2d64   :  { %v1592_v29 = vpop.permute.xlu1 %1591 }
0x2d65   :  { %2270 = vst.msk [vmem:[%s3381_s8 + $0xc] sm:$0xf0] %vm233_vm3, %v1592_v29  ;;  %2161 = vrot.lane.b32.xlu0 %v2156_v51, %s2484_s25  ;;  %2024 = vrot.lane.b32.xlu1 %v3247_v38, %s2484_s25  ;;  %s2458_s25 = scalar_lea.vmem %s2185_s21, 64 }
0x2d66   :  { %2275 = vst.msk [vmem:[%s3381_s8 + $0x10] sm:$0xf] %vm225_vm2, %v3183_v1  ;;  %p2459_p0 = scmp.ne.s32.totalorder %s2185_s21, %s2458_s25  ;;  %p2464_p2 = scmp.lt.s32.totalorder %s2458_s25, %s2458_s25 }
0x2d68   :  { %v1737_v36 = vpop.permute.xlu1 %1736  ;;  %p2465_p3 = por %p2464_p2, %p2463_p1 }
0x2d69   :  { %2276 = vst.msk [vmem:[%s3381_s8 + $0x8] sm:$0xf0] %vm233_vm3, %v1737_v36 }
0x2d6a   :  { %p2466_p4 = pnand %p2465_p3, %p2459_p0 }
0x2dd3   :  { %v2167_v11 = vpop.permute.xlu1 %2166  ;;  %v2172_v6 = vpop.permute.xlu0 %2171 }
0x2dd4   :  { %2170 = vst.msk [vmem:[#allocation4] sm:$0xf] %vm2169_vm5, %v2167_v11 }
0x2dd5   :  { %2175 = vst.msk [vmem:[#allocation4 - $0x4] sm:$0xf0] %vm2174_vm6, %v2172_v6 }
0x2dd6   :  { %2469 = shalt.err (!%p2466_p4)
}
0x2dd7   :  { %s2470_s27 = scalar_lea.hbm %s3382_s9, 64 }
0x2dd8   :  { %p2471_p5 = scmp.ne.s32.totalorder %s3382_s9, %s2470_s27  ;;  %p2474_p6 = scmp.lt.u32.totalorder %s2470_s27, %s3382_s9 }
0x2dda   :  { %p2476_p7 = pnand %p2474_p6, %p2471_p5 }
0x2ddc   :  { %2479 = shalt.err (!%p2476_p7)
}
0x2ddd   :  { %2187 = dma.vmem_to_hbm [thread:$0]  %s2185_s21, 64, %s3382_s9, [#allocation5]   ;;  %v2025_v1 = vpop.permute.xlu1 %2024  ;;  %v2162_v13 = vpop.permute.xlu0 %2161 }
0x2dde   :  { %2288 = vst.msk [vmem:[%s3381_s8] sm:$0xf0] %vm233_vm3, %v2025_v1  ;;  %2164 = vst.msk [vmem:[%s3381_s8 - $0x4] sm:$0xf0] %vm233_vm3, %v2162_v13 }
0x2ddf   :  { %2480 = dma.done.wait [#allocation5], 64  }
0x2de0   :  { %2481 = vsyncadd [#allocation5], 4294967232 }
0x2de1   :  { %2193 = vsyncpa [#allocation5], 1 }

</bundles_post_ra>
